<compile_context>
chip_gen: v7x
topology: tpu7x:2x2x1
jax: 0.10.0
libtpu: 0.0.40
codegen_flags: <defaults>
</compile_context>

<pallas_src>
import functools

import jax
import jax.numpy as jnp
import numpy as np
from jax.experimental import pallas as pl
from jax.experimental.pallas import tpu as pltpu


# ----------------------------------------------------------------------------
# Static planning helpers
# ----------------------------------------------------------------------------
def _round_up(a, b):
    return (a + b - 1) // b * b


def _level_specs(num_levels, h, w):
    """Per-level (kernel, oh, ow), floor mode, kernel = stride = h // 2**i."""
    levels = []
    for i in range(num_levels):
        k = h // (2 ** i)
        if k < 1 or k > w:
            raise ValueError(
                f"SPP level {i}: kernel_size={k} is invalid for input {h}x{w}")
        levels.append((k, h // k, w // k))
    return tuple(levels)


def _pick_vmem_limit():
    """Explicit scoped-VMEM limit: 3/4 of physical, capped at 96 MiB."""
    cap = 64 << 20                       # conservative fallback (works on v7x)
    try:
        cap = int(pltpu.get_tpu_info().vmem_capacity_bytes)
    except Exception:
        pass
    return int(min(cap * 3 // 4, 96 << 20))


def _choose_block_bs(bs, c, h, w, itemsize, budget_bytes):
    """Samples per grid step; block rows stay 8-aligned (or cover the array)."""
    per_sample = max(1, c * h * w * itemsize)
    blk = min(bs, max(1, budget_bytes // per_sample))
    # Prefer >=2 grid steps so ("parallel",) can use both v7x TensorCores, but
    # only when the blocks can stay multiples of 8 samples.
    if blk >= bs and bs >= 16:
        blk = min(bs, _round_up((bs + 1) // 2, 8))
    if blk < bs:
        blk8 = (blk // 8) * 8
        if blk8 >= 8:
            blk = blk8
        else:
            # TODO(synk): a block of <8 samples violates the (8,128) sublane
            # alignment; fall back to one block.  For very large c*h*w per
            # sample add a channel-tiling grid axis (per-level outputs) here.
            blk = bs
    return blk


def _build_avg_weights(levels, h, w, ncols_pad, dtype):
    """(h*w, ncols_pad) pooling matrix: 1/k^2 at window positions per column."""
    hw = h * w
    W = np.zeros((hw, ncols_pad), np.float32)
    off = 0
    for (k, oh, ow) in levels:
        inv = 1.0 / float(k * k)
        for i in range(oh):
            for j in range(ow):
                rows = np.arange(i * k, i * k + k)
                cols = np.arange(j * k, j * k + k)
                lanes = (rows[:, None] * w + cols[None, :]).reshape(-1)
                W[lanes, off + i * ow + j] = inv
        off += oh * ow
    return jnp.asarray(W, dtype=dtype)


# ----------------------------------------------------------------------------
# Kernels
# ----------------------------------------------------------------------------
def _lane_shift_left(v, s):
    """shifted[:, p] = v[:, p + s] for p < n - s (tail wraps; never read)."""
    if s == 0:
        return v
    return jnp.concatenate([v[:, s:], v[:, :s]], axis=1)


def _pad_and_store(feats, o_ref, block_bs, total, total_pad):
    if total_pad > total:
        feats = feats + [jnp.zeros((block_bs, total_pad - total),
                                   dtype=feats[0].dtype)]
    o_ref[...] = jnp.concatenate(feats, axis=-1).astype(o_ref.dtype)


def _spp_max_kernel(x_ref, o_ref, *, block_bs, c, h, w, levels, total,
                    total_pad):
    """Max pooling, all levels, from one lane-dense (bn, h*w) tile."""
    bn = block_bs * c
    xv = x_ref[...]                                   # (bn, h*w), dtype kept

    def direct_pool(k, oh, ow):                       # fallback (rare shapes)
        win = xv.reshape(bn, h, w)[:, :oh * k, :ow * k]
        win = win.reshape(bn, oh, k, ow, k)
        return win.max(axis=4).max(axis=2)

    order = sorted(range(len(levels)), key=lambda i: levels[i][0])  # finest 1st
    pooled = [None] * len(levels)
    prev = None                                       # (k, oh, ow, pooled map)

    for idx in order:
        k, oh, ow = levels[idx]
        if prev is None:
            if h % k == 0 and w % k == 0:
                # Column (w-direction) sliding max: full-lane shift+max tree.
                cur, cov = xv, 1
                while cov < k:
                    s = min(cov, k - cov)
                    cur = jnp.maximum(cur, _lane_shift_left(cur, s))
                    cov += s
                # Compact columns: keep window-start lanes -> (bn, h*ow).
                cur = cur.reshape(bn, h * ow, k)[:, :, 0]
                # Row (h-direction) sliding max on the compacted view.
                cov = 1
                while cov < k:
                    s = min(cov, k - cov)
                    cur = jnp.maximum(cur, _lane_shift_left(cur, s * ow))
                    cov += s
                # Compact rows -> (bn, oh, ow).
                p = cur.reshape(bn, oh, k, ow)[:, :, 0, :]
            else:
                p = direct_pool(k, oh, ow)
        else:
            pk, poh, pow_, pmap = prev
            if k % pk == 0 and (k // pk) * oh <= poh and (k // pk) * ow <= pow_:
                r = k // pk                           # exact for max pooling
                win = pmap[:, :oh * r, :ow * r].reshape(bn, oh, r, ow, r)
                p = win.max(axis=4).max(axis=2)
            else:
                p = direct_pool(k, oh, ow)
        pooled[idx] = p
        prev = (k, oh, ow, p)

    feats = [pooled[i].reshape(block_bs, c * levels[i][1] * levels[i][2])
             for i in range(len(levels))]
    _pad_and_store(feats, o_ref, block_bs, total, total_pad)


def _spp_avg_matmul_kernel(x_ref, w_ref, o_ref, *, block_bs, c, levels, total,
                           total_pad):
    """Avg pooling for all levels as one MXU matmul (f32 accumulation)."""
    acc = jnp.dot(x_ref[...], w_ref[...],
                  preferred_element_type=jnp.float32)  # (bn, ncols_pad)
    feats, off = [], 0
    for (k, oh, ow) in levels:
        n = oh * ow
        feats.append(acc[:, off:off + n].reshape(block_bs, c * n))
        off += n
    _pad_and_store(feats, o_ref, block_bs, total, total_pad)


def _spp_avg_direct_kernel(x_ref, o_ref, *, block_bs, c, h, w, levels, total,
                           total_pad):
    """Fallback avg path (only used when the pooling matrix would be huge)."""
    bn = block_bs * c
    xf = x_ref[...].astype(jnp.float32).reshape(bn, h, w)
    feats = []
    for (k, oh, ow) in levels:
        win = xf[:, :oh * k, :ow * k].reshape(bn, oh, k, ow, k)
        p = win.sum(axis=4).sum(axis=2) * (1.0 / float(k * k))
        feats.append(p.reshape(block_bs, c * oh * ow))
    _pad_and_store(feats, o_ref, block_bs, total, total_pad)


# ----------------------------------------------------------------------------
# Wrapper
# ----------------------------------------------------------------------------
def spp_layer(x, num_levels, pool_type="max_pool"):
    """JAX/Pallas equivalent of SPPLayer.forward (input NCHW)."""
    bs, c, h, w = x.shape
    hw = h * w
    levels = _level_specs(num_levels, h, w)
    ncols = sum(oh * ow for (_, oh, ow) in levels)
    total = c * ncols
    total_pad = _round_up(total, 128)                 # lane-dense output store

    vmem_limit = _pick_vmem_limit()
    block_bs = _choose_block_bs(bs, c, h, w, x.dtype.itemsize, vmem_limit // 8)
    grid = (pl.cdiv(bs, block_bs),)
    # NOTE: when bs % block_bs != 0 the last block reads padded (undefined)
    # rows; every output row depends only on its own input row and Pallas drops
    # out-of-bounds output rows, so this is safe.

    x2 = x.reshape(bs * c, hw)                        # contiguous => free view

    in_arrays = [x2]
    in_specs = [pl.BlockSpec((block_bs * c, hw), lambda i: (i, 0))]
    w_bytes = 0

    if pool_type == "max_pool":
        kern = functools.partial(
            _spp_max_kernel, block_bs=block_bs, c=c, h=h, w=w, levels=levels,
            total=total, total_pad=total_pad)
        flops = bs * c * hw * max(1, len(levels))
    else:
        ncols_pad = _round_up(ncols, 128)
        w_bytes = hw * ncols_pad * x.dtype.itemsize
        if w_bytes <= (4 << 20):                      # MXU pooling-matrix path
            W = _build_avg_weights(levels, h, w, ncols_pad, x.dtype)
            in_arrays.append(W)
            in_specs.append(pl.BlockSpec((hw, ncols_pad), lambda i: (0, 0)))
            kern = functools.partial(
                _spp_avg_matmul_kernel, block_bs=block_bs, c=c, levels=levels,
                total=total, total_pad=total_pad)
            flops = 2 * bs * c * hw * ncols
        else:                                         # huge pyramid fallback
            w_bytes = 0
            kern = functools.partial(
                _spp_avg_direct_kernel, block_bs=block_bs, c=c, h=h, w=w,
                levels=levels, total=total, total_pad=total_pad)
            flops = bs * c * hw * max(1, len(levels))

    cost = pl.CostEstimate(
        flops=int(flops),
        transcendentals=0,
        bytes_accessed=int(x2.size * x2.dtype.itemsize + w_bytes
                           + bs * total_pad * x.dtype.itemsize),
    )

    out = pl.pallas_call(
        kern,
        out_shape=jax.ShapeDtypeStruct((bs, total_pad), x.dtype),
        grid=grid,
        in_specs=in_specs,
        out_specs=pl.BlockSpec((block_bs, total_pad), lambda i: (i, 0)),
        compiler_params=pltpu.CompilerParams(
            dimension_semantics=("parallel",),
            vmem_limit_bytes=vmem_limit),
        cost_estimate=cost,
    )(*in_arrays)

    return out[:, :total] if total_pad != total else out


# ----------------------------------------------------------------------------
# Pure-jnp reference (same semantics as F.max_pool2d / F.avg_pool2d)
# ----------------------------------------------------------------------------
def _reference_spp(x, num_levels, pool_type="max_pool"):
    bs, c, h, w = x.shape
    outs = []
    for i in range(num_levels):
        k = h // (2 ** i)
        oh, ow = h // k, w // k
        xr = x[:, :, :oh * k, :ow * k].reshape(bs, c, oh, k, ow, k)
        if pool_type == "max_pool":
            p = xr.max(axis=(3, 5))
        else:
            p = xr.astype(jnp.float32).mean(axis=(3, 5)).astype(x.dtype)
        outs.append(p.reshape(bs, -1))
    return jnp.concatenate(outs, axis=-1)


if __name__ == "__main__":
    NUM_LEVELS = 3

    key = jax.random.PRNGKey(0)
    x = jax.random.normal(key, (2, 4, 16, 16), dtype=jnp.float32)

    # max_pool (module default): pure selection ops -> bitwise match expected.
    out_max = jax.block_until_ready(spp_layer(x, NUM_LEVELS, "max_pool"))
    assert out_max.shape == (2, 4 * (1 + 4 + 16)), out_max.shape
    ref_max = _reference_spp(x, NUM_LEVELS, "max_pool")
    np.testing.assert_array_equal(np.asarray(out_max), np.asarray(ref_max))

    # avg_pool: MXU pooling-matrix matmul.  The f32 matmul on the MXU may use
    # bf16-split passes, so allow a looser-than-reassociation tolerance
    # (pass precision=HIGHEST in the dot if ~1e-6 agreement is required).
    out_avg = jax.block_until_ready(spp_layer(x, NUM_LEVELS, "avg_pool"))
    ref_avg = _reference_spp(x, NUM_LEVELS, "avg_pool")
    np.testing.assert_allclose(np.asarray(out_avg), np.asarray(ref_avg),
                               rtol=2e-3, atol=2e-3)

    print("KERNEL_OK")
</pallas_src>

<mosaic_0001>
module attributes {stable_mosaic.version = 11 : i64} {
  func.func @_spp_max_kernel(%arg0: i32, %arg1: memref<8x256xf32, #tpu.memory_space<vmem>>, %arg2: memref<2x128xf32, #tpu.memory_space<vmem>>) attributes {dimension_semantics = [#tpu.dimension_semantics<parallel>], iteration_bounds = array<i64: 1>, scalar_prefetch = 0 : i64, scratch_operands = 0 : i64, tpu.core_type = #tpu.core_type<tc>, window_params = [{transform_indices = @transform_0, window_bounds = array<i64: 8, 256>}, {transform_indices = @transform_1, window_bounds = array<i64: 2, 128>}]} {
    %c0 = arith.constant 0 : index
    %c0_0 = arith.constant 0 : index
    %0 = vector.load %arg1[%c0, %c0_0] : memref<8x256xf32, #tpu.memory_space<vmem>>, vector<8x256xf32>
    %1 = vector.extract_strided_slice %0 {offsets = [0, 1], sizes = [8, 255], strides = [1, 1]} : vector<8x256xf32> to vector<8x255xf32>
    %2 = vector.extract_strided_slice %0 {offsets = [0, 0], sizes = [8, 1], strides = [1, 1]} : vector<8x256xf32> to vector<8x1xf32>
    %3 = tpu.concatenate %1, %2 in 1 : vector<8x255xf32>, vector<8x1xf32> -> vector<8x256xf32>
    %4 = arith.maximumf %0, %3 : vector<8x256xf32>
    %5 = vector.extract_strided_slice %4 {offsets = [0, 2], sizes = [8, 254], strides = [1, 1]} : vector<8x256xf32> to vector<8x254xf32>
    %6 = vector.extract_strided_slice %4 {offsets = [0, 0], sizes = [8, 2], strides = [1, 1]} : vector<8x256xf32> to vector<8x2xf32>
    %7 = tpu.concatenate %5, %6 in 1 : vector<8x254xf32>, vector<8x2xf32> -> vector<8x256xf32>
    %8 = arith.maximumf %4, %7 : vector<8x256xf32>
    %9 = vector.shape_cast %8 : vector<8x256xf32> to vector<8x64x4xf32>
    %10 = vector.extract_strided_slice %9 {offsets = [0, 0, 0], sizes = [8, 64, 1], strides = [1, 1, 1]} : vector<8x64x4xf32> to vector<8x64x1xf32>
    %11 = vector.shape_cast %10 : vector<8x64x1xf32> to vector<8x64xf32>
    %12 = vector.extract_strided_slice %11 {offsets = [0, 4], sizes = [8, 60], strides = [1, 1]} : vector<8x64xf32> to vector<8x60xf32>
    %13 = vector.extract_strided_slice %11 {offsets = [0, 0], sizes = [8, 4], strides = [1, 1]} : vector<8x64xf32> to vector<8x4xf32>
    %14 = tpu.concatenate %12, %13 in 1 : vector<8x60xf32>, vector<8x4xf32> -> vector<8x64xf32>
    %15 = arith.maximumf %11, %14 : vector<8x64xf32>
    %16 = vector.extract_strided_slice %15 {offsets = [0, 8], sizes = [8, 56], strides = [1, 1]} : vector<8x64xf32> to vector<8x56xf32>
    %17 = vector.extract_strided_slice %15 {offsets = [0, 0], sizes = [8, 8], strides = [1, 1]} : vector<8x64xf32> to vector<8x8xf32>
    %18 = tpu.concatenate %16, %17 in 1 : vector<8x56xf32>, vector<8x8xf32> -> vector<8x64xf32>
    %19 = arith.maximumf %15, %18 : vector<8x64xf32>
    %20 = vector.shape_cast %19 : vector<8x64xf32> to vector<8x4x4x4xf32>
    %21 = vector.extract_strided_slice %20 {offsets = [0, 0, 0, 0], sizes = [8, 4, 1, 4], strides = [1, 1, 1, 1]} : vector<8x4x4x4xf32> to vector<8x4x1x4xf32>
    %22 = vector.shape_cast %21 : vector<8x4x1x4xf32> to vector<8x4x4xf32>
    %23 = vector.shape_cast %22 : vector<8x4x4xf32> to vector<8x2x2x2x2xf32>
    %cst = arith.constant dense<0xFF800000> : vector<8x2x2x2xf32>
    %24 = vector.multi_reduction <maximumf>, %23, %cst [4] : vector<8x2x2x2x2xf32> to vector<8x2x2x2xf32>
    %cst_1 = arith.constant dense<0xFF800000> : vector<8x2x2xf32>
    %25 = vector.multi_reduction <maximumf>, %24, %cst_1 [2] : vector<8x2x2x2xf32> to vector<8x2x2xf32>
    %26 = vector.shape_cast %25 : vector<8x2x2xf32> to vector<8x1x2x1x2xf32>
    %cst_2 = arith.constant dense<0xFF800000> : vector<8x1x2x1xf32>
    %27 = vector.multi_reduction <maximumf>, %26, %cst_2 [4] : vector<8x1x2x1x2xf32> to vector<8x1x2x1xf32>
    %cst_3 = arith.constant dense<0xFF800000> : vector<8x1x1xf32>
    %28 = vector.multi_reduction <maximumf>, %27, %cst_3 [2] : vector<8x1x2x1xf32> to vector<8x1x1xf32>
    %29 = vector.shape_cast %28 : vector<8x1x1xf32> to vector<2x4xf32>
    %30 = vector.shape_cast %25 : vector<8x2x2xf32> to vector<2x16xf32>
    %31 = vector.shape_cast %22 : vector<8x4x4xf32> to vector<2x64xf32>
    %cst_4 = arith.constant 0.000000e+00 : f32
    %32 = vector.broadcast %cst_4 : f32 to vector<2x44xf32>
    %33 = tpu.concatenate %29, %30, %31, %32 in 1 : vector<2x4xf32>, vector<2x16xf32>, vector<2x64xf32>, vector<2x44xf32> -> vector<2x128xf32>
    %c0_5 = arith.constant 0 : index
    %c0_6 = arith.constant 0 : index
    %34 = vector.load %arg2[%c0_5, %c0_6] : memref<2x128xf32, #tpu.memory_space<vmem>>, vector<2x128xf32>
    tpu.vector_store %arg2[%c0_5, %c0_6], %33 {strides = array<i32>} : memref<2x128xf32, #tpu.memory_space<vmem>>, vector<2x128xf32>,
    return
  }
  func.func @transform_0(%arg0: i32) -> (i32, i32) {
    %c0_i32 = arith.constant 0 : i32
    %c0_i32_0 = arith.constant 0 : i32
    return %arg0, %c0_i32 : i32, i32
  }
  func.func @transform_1(%arg0: i32) -> (i32, i32) {
    %c0_i32 = arith.constant 0 : i32
    %c0_i32_0 = arith.constant 0 : i32
    return %arg0, %c0_i32 : i32, i32
  }
}

</mosaic_0001>

<bundles_post_ra>
// kernel: tpu_custom_call.1
= control target key start
LH: loop header
LB: loop body
LE: loop exit
PB: predicated region body
PF: predicated region fallthrough
CT: control target
= control target key end

     0   :  { %6 = vsyncpa [#allocation3], 0  ;;  %s7313_s0 = inlined_call_operand.hbm [shape: f32[8,256], index: 0, kind: input, shape index: {}]   ;;  %s7314_s1 = inlined_call_operand.hbm [shape: f32[2,128], index: 1, kind: output, shape index: {}]  }
   0x1   :  { %7 = vsyncpa [#allocation4], 0  ;;  %s4878_s6 = smov [#allocation2]   ;;  %s4830_s10 = scalar_lea.hbm %s7313_s0, 256 }
   0x2   :  { %s14_s7 = sshll.u32 %s4878_s6, 4  ;;  %p4831_p0 = scmp.ne.s32.totalorder %s7313_s0, %s4830_s10  ;;  %s15_s7 = int_to_ptr.vmem [resolvable:$true] %s14_s7 }
   0x3   :  { %p4834_p1 = scmp.lt.u32.totalorder %s4830_s10, %s7313_s0 }
   0x5   :  { %p4836_p2 = pnand %p4834_p1, %p4831_p0 }
   0x7   :  { %4839 = shalt.err (!%p4836_p2)
}
   0x8   :  { %s4840_s15 = scalar_lea.vmem %s15_s7, 256  ;;  %p4845_p4 = scmp.lt.s32.totalorder %s15_s7, %s15_s7 }
   0x9   :  { %p4841_p3 = scmp.ne.s32.totalorder %s15_s7, %s4840_s15  ;;  %p4846_p5 = scmp.lt.s32.totalorder %s4840_s15, %s4840_s15 }
   0xb   :  { %p4847_p6 = por %p4846_p5, %p4845_p4 }
   0xd   :  { %p4848_p7 = pnand %p4847_p6, %p4841_p3 }
   0xf   :  { %4851 = shalt.err (!%p4848_p7)
}
  0x10   :  { %17 = dma.hbm_to_vmem [thread:$0]  %s7313_s0, 256, %s15_s7, [#allocation3]  }
  0x11   :  { %4874 = dma.done.wait [#allocation3], 256  }
  0x12   :  { %4875 = vsyncadd [#allocation3], 4294967040  ;;  %v21_v0 = vld [vmem:[#allocation2] sm:$0xff]  ;;  %s4879_s18 = smov 127   ;;  %v22_v1 = vld [vmem:[#allocation2 + $0x8] sm:$0xff]  ;;  %vm29_vm0 = vcmask 1039360   ;;  %v7316_v17 = vlaneseq }
  0x13   :  { %25 = vrot.lane.b32.xlu0 %v21_v0, %s4879_s18  ;;  %s4880_s19 = smov 126   ;;  %vm43_vm1 = vcmask 1031168   ;;  %s4881_s0 = smov 120   ;;  %v4887_v12 = vmov 0   ;;  %v4913_v15 = vmov 1983009808  }
  0x14   :  { %s4882_s20 = smov 124   ;;  %s4883_s21 = smov 112   ;;  %4828 = vset.pattern.permute.xlu0 %v4887_v12  ;;  %4829 = vset.pattern.permute.xlu1 %v4887_v12  ;;  %v242_v16 = vunpack.c.l.s4 %v4913_v15  ;;  %v5073_v19 = vshrl.u32 %v7316_v17, 7  ;;  %v4914_v29 = vmov 1934713408   ;;  %vm1595_vm2 = vcmask 97312  }
  0x15   :  { %s4884_s22 = smov 116   ;;  %s4885_s23 = smov 104   ;;  %v306_v30 = vunpack.c.l.s4 %v4914_v29  ;;  %vm7473_vm3 = vcmask 162912   ;;  %vm1609_vm4 = vcmask 228512   ;;  %vm1616_vm5 = vcmask 294112  }
  0x16   :  { %s4886_s24 = smov 108   ;;  %s4888_s25 = smov 96   ;;  %v243_v18 = vunpack.c.0.s8 %v242_v16  ;;  %7484 = vst [vmem:[#allocation9_spill] sm:$0xff] %v5073_v19  ;;  %vm1623_vm6 = vcmask 359712   ;;  %vm1630_vm7 = vcmask 425312   ;;  %vm7474_vm8 = vcmask 490912  }
  0x17   :  { %27 = vrot.lane.b32.xlu0 %v22_v1, %s4879_s18  ;;  %s4889_s26 = smov 100   ;;  %s4890_s27 = smov 88   ;;  %v307_v35 = vunpack.c.0.s8 %v306_v30  ;;  %vm1912_vm9 = vcmask 1045509   ;;  %vm1914_vm10 = vcmask 1046534   ;;  %vm1916_vm11 = vcmask 1047559  }
  0x18   :  { %s4891_s28 = smov 92   ;;  %s4892_s29 = smov 80   ;;  %v5084_v22 = vsub.s32 %v243_v18, %v5073_v19  ;;  %vm1967_vm12 = vcmask 490496   ;;  %vm1918_vm13 = vcmask 1041409   ;;  %vm1920_vm14 = vcmask 1042434  }
  0x19   :  { %s4893_s30 = smov 84   ;;  %s4894_s2 = smov 72   ;;  %v5115_v42 = vsub.s32 %v307_v35, %v5073_v19  ;;  %vm1922_vm15 = vcmask 1043459  }
  0x1a   :  { %s4895_s3 = smov 76   ;;  %s4896_s4 = smov 64   ;;  %7486 = vst [vmem:[#allocation10_spill] sm:$0xff] %v5084_v22 }
  0x1b   :  { %s4897_s5 = smov 68   ;;  %s4898_s6 = smov 56   ;;  %7488 = vst [vmem:[#allocation12_spill] sm:$0xff] %v5115_v42 }
  0x1c   :  { %s4899_s7 = smov 60   ;;  %s4900_s8 = smov 48  }
  0x1d   :  { %s4901_s9 = smov 52   ;;  %s4902_s10 = smov 40  }
  0x1e   :  { %s4903_s11 = smov 44   ;;  %s4904_s12 = smov 32  }
  0x1f   :  { %s4905_s13 = smov 36   ;;  %s4906_s14 = smov 24  }
  0x20   :  { %s4907_s15 = smov 28   ;;  %s7315_s16 = smov 16  }
  0x21   :  { %s4909_s17 = smov 20   ;;  %s4910_s18 = smov 8  }
  0x85   :  { %v26_v2 = vpop.permute.xlu0 %25 }
  0x89   :  { %v28_v3 = vpop.permute.xlu0 %27 }
  0x8a   :  { %v30_v4 = vsel %vm29_vm0, %v26_v2, %v28_v3  ;;  %v34_v6 = vsel %vm29_vm0, %v28_v3, %v26_v2  ;;  %vm2613_vm0 = vcmask 130112  }
  0x8b   :  { %v35_v5 = vmax.f32 %v21_v0, %v30_v4  ;;  %v4938_v7 = vmax.f32 %v22_v1, %v34_v6 }
  0x8d   :  { %39 = vrot.lane.b32.xlu1 %v35_v5, %s4880_s19 }
  0x91   :  { %41 = vrot.lane.b32.xlu1 %v4938_v7, %s4880_s19  ;;  %s4911_s19 = smov 12  }
  0xff   :  { %v4941_v8 = vpop.permute.xlu1 %39 }
 0x103   :  { %v4943_v9 = vpop.permute.xlu1 %41 }
 0x104   :  { %v44_v10 = vsel %vm43_vm1, %v4941_v8, %v4943_v9  ;;  %v48_v13 = vsel %vm43_vm1, %v4943_v9, %v4941_v8  ;;  %vm2620_vm1 = vcmask 195712  }
 0x105   :  { %v4948_v11 = vmax.f32 %v35_v5, %v44_v10  ;;  %v5014_v14 = vmax.f32 %v4938_v7, %v48_v13 }
 0x107   :  { %55 = vrot.lane.b32.xlu1 %v4948_v11, %s4881_s0  ;;  %52 = vrot.lane.b32.xlu0 %v4948_v11, %s4882_s20  ;;  %7483 = vst [vmem:[#allocation8_spill] sm:$0xff] %v5014_v14 }
 0x10b   :  { %61 = vrot.lane.b32.xlu1 %v4948_v11, %s4883_s21  ;;  %58 = vrot.lane.b32.xlu0 %v4948_v11, %s4884_s22 }
 0x10f   :  { %67 = vrot.lane.b32.xlu1 %v4948_v11, %s4885_s23  ;;  %64 = vrot.lane.b32.xlu0 %v4948_v11, %s4886_s24 }
 0x113   :  { %73 = vrot.lane.b32.xlu1 %v4948_v11, %s4888_s25  ;;  %70 = vrot.lane.b32.xlu0 %v4948_v11, %s4889_s26 }
 0x117   :  { %79 = vrot.lane.b32.xlu1 %v4948_v11, %s4890_s27  ;;  %76 = vrot.lane.b32.xlu0 %v4948_v11, %s4891_s28 }
 0x11b   :  { %85 = vrot.lane.b32.xlu1 %v4948_v11, %s4892_s29  ;;  %82 = vrot.lane.b32.xlu0 %v4948_v11, %s4893_s30 }
 0x11f   :  { %91 = vrot.lane.b32.xlu1 %v4948_v11, %s4894_s2  ;;  %88 = vrot.lane.b32.xlu0 %v4948_v11, %s4895_s3 }
 0x123   :  { %97 = vrot.lane.b32.xlu1 %v4948_v11, %s4896_s4  ;;  %94 = vrot.lane.b32.xlu0 %v4948_v11, %s4897_s5 }
 0x127   :  { %103 = vrot.lane.b32.xlu1 %v4948_v11, %s4898_s6  ;;  %100 = vrot.lane.b32.xlu0 %v4948_v11, %s4899_s7 }
 0x12b   :  { %109 = vrot.lane.b32.xlu1 %v4948_v11, %s4900_s8  ;;  %106 = vrot.lane.b32.xlu0 %v4948_v11, %s4901_s9 }
 0x12f   :  { %115 = vrot.lane.b32.xlu1 %v4948_v11, %s4902_s10  ;;  %112 = vrot.lane.b32.xlu0 %v4948_v11, %s4903_s11 }
 0x133   :  { %121 = vrot.lane.b32.xlu1 %v4948_v11, %s4904_s12  ;;  %118 = vrot.lane.b32.xlu0 %v4948_v11, %s4905_s13 }
 0x137   :  { %127 = vrot.lane.b32.xlu1 %v4948_v11, %s4906_s14  ;;  %124 = vrot.lane.b32.xlu0 %v4948_v11, %s4907_s15 }
 0x13b   :  { %133 = vrot.lane.b32.xlu1 %v4948_v11, %s7315_s16  ;;  %130 = vrot.lane.b32.xlu0 %v4948_v11, %s4909_s17  ;;  %s4912_s16 = smov 4  }
 0x13f   :  { %139 = vrot.lane.b32.xlu1 %v4948_v11, %s4910_s18  ;;  %136 = vrot.lane.b32.xlu0 %v4948_v11, %s4911_s19 }
 0x143   :  { %146 = vrot.lane.b32.xlu1 %v5014_v14, %s4882_s20  ;;  %142 = vrot.lane.b32.xlu0 %v4948_v11, %s4912_s16  ;;  %s4915_s20 = smov [#allocation5]  }
 0x147   :  { %152 = vrot.lane.b32.xlu1 %v5014_v14, %s4884_s22  ;;  %149 = vrot.lane.b32.xlu0 %v5014_v14, %s4881_s0  ;;  %s7485_s0 = smov 16  }
 0x14b   :  { %158 = vrot.lane.b32.xlu1 %v5014_v14, %s4886_s24  ;;  %155 = vrot.lane.b32.xlu0 %v5014_v14, %s4883_s21  ;;  %s4749_s21 = sshll.u32 %s4915_s20, 4  ;;  %s4750_s21 = int_to_ptr.vmem [resolvable:$true] %s4749_s21 }
 0x14c   :  { %s4852_s22 = scalar_lea.vmem %s4750_s21, 32  ;;  %p4857_p9 = scmp.lt.s32.totalorder %s4750_s21, %s4750_s21 }
 0x14d   :  { %p4853_p8 = scmp.ne.s32.totalorder %s4750_s21, %s4852_s22  ;;  %p4858_p10 = scmp.lt.s32.totalorder %s4852_s22, %s4852_s22 }
 0x14f   :  { %164 = vrot.lane.b32.xlu1 %v5014_v14, %s4889_s26  ;;  %161 = vrot.lane.b32.xlu0 %v5014_v14, %s4885_s23  ;;  %p4859_p11 = por %p4858_p10, %p4857_p9 }
 0x151   :  { %p4860_p12 = pnand %p4859_p11, %p4853_p8 }
 0x153   :  { %170 = vrot.lane.b32.xlu1 %v5014_v14, %s4891_s28  ;;  %167 = vrot.lane.b32.xlu0 %v5014_v14, %s4888_s25 }
 0x157   :  { %176 = vrot.lane.b32.xlu1 %v5014_v14, %s4893_s30  ;;  %173 = vrot.lane.b32.xlu0 %v5014_v14, %s4890_s27 }
 0x15b   :  { %182 = vrot.lane.b32.xlu1 %v5014_v14, %s4895_s3  ;;  %179 = vrot.lane.b32.xlu0 %v5014_v14, %s4892_s29 }
 0x15f   :  { %188 = vrot.lane.b32.xlu1 %v5014_v14, %s4897_s5  ;;  %185 = vrot.lane.b32.xlu0 %v5014_v14, %s4894_s2 }
 0x163   :  { %194 = vrot.lane.b32.xlu1 %v5014_v14, %s4899_s7  ;;  %191 = vrot.lane.b32.xlu0 %v5014_v14, %s4896_s4 }
 0x167   :  { %200 = vrot.lane.b32.xlu1 %v5014_v14, %s4901_s9  ;;  %197 = vrot.lane.b32.xlu0 %v5014_v14, %s4898_s6 }
 0x16b   :  { %206 = vrot.lane.b32.xlu1 %v5014_v14, %s4903_s11  ;;  %203 = vrot.lane.b32.xlu0 %v5014_v14, %s4900_s8 }
 0x16f   :  { %212 = vrot.lane.b32.xlu1 %v5014_v14, %s4905_s13  ;;  %209 = vrot.lane.b32.xlu0 %v5014_v14, %s4902_s10 }
 0x173   :  { %218 = vrot.lane.b32.xlu1 %v5014_v14, %s4907_s15  ;;  %215 = vrot.lane.b32.xlu0 %v5014_v14, %s4904_s12 }
 0x177   :  { %224 = vrot.lane.b32.xlu1 %v5014_v14, %s4909_s17  ;;  %221 = vrot.lane.b32.xlu0 %v5014_v14, %s4906_s14 }
 0x179   :  { %v5075_v20 = vpop.permute.xlu1 %55  ;;  %v5077_v21 = vpop.permute.xlu0 %52 }
 0x17a   :  { %v239_v23 = vcombine.low %v4948_v11, %v5075_v20 }
 0x17b   :  { %230 = vrot.lane.b32.xlu1 %v5014_v14, %s4911_s19  ;;  %227 = vrot.lane.b32.xlu0 %v5014_v14, %s7485_s0 }
 0x17c   :  { %v247_v27 = vrot.slane %v239_v23, %v5084_v22 }
 0x17d   :  { %v5088_v24 = vpop.permute.xlu1 %61  ;;  %v5090_v25 = vpop.permute.xlu0 %58 }
 0x17e   :  { %v255_v26 = vcombine.low %v5077_v21, %v5090_v25 }
 0x17f   :  { %236 = vrot.lane.b32.xlu1 %v5014_v14, %s4912_s16  ;;  %233 = vrot.lane.b32.xlu0 %v5014_v14, %s4910_s18 }
 0x180   :  { %v263_v28 = vrot.slane %v255_v26, %v5084_v22 }
 0x181   :  { %v5100_v31 = vpop.permute.xlu1 %67  ;;  %v5102_v32 = vpop.permute.xlu0 %64 }
 0x182   :  { %v304_v33 = vcombine.high %v247_v27, %v263_v28  ;;  %v271_v34 = vcombine.low %v5088_v24, %v5100_v31  ;;  %v303_v39 = vcombine.low %v247_v27, %v263_v28 }
 0x184   :  { %v279_v40 = vrot.slane %v271_v34, %v5084_v22  ;;  %v311_v48 = vrot.slane %v303_v39, %v5115_v42  ;;  %v318_v53 = vrot.slane %v304_v33, %v5115_v42 }
 0x185   :  { %v5106_v36 = vpop.permute.xlu1 %73  ;;  %v5108_v37 = vpop.permute.xlu0 %70 }
 0x186   :  { %7487 = vst [vmem:[#allocation11_spill] sm:$0xff] %v5106_v36  ;;  %v287_v38 = vcombine.low %v5102_v32, %v5108_v37 }
 0x188   :  { %v295_v41 = vrot.slane %v287_v38, %v5084_v22 }
 0x189   :  { %v5117_v43 = vpop.permute.xlu1 %79  ;;  %v5119_v44 = vpop.permute.xlu0 %76 }
 0x18a   :  { %7489 = vst [vmem:[#allocation13_spill] sm:$0xff] %v5117_v43  ;;  %7490 = vst [vmem:[#allocation14_spill] sm:$0xff] %v5119_v44  ;;  %v335_v45 = vcombine.low %v279_v40, %v295_v41  ;;  %v336_v46 = vcombine.high %v279_v40, %v295_v41  ;;  %v375_v47 = vcombine.low %v5106_v36, %v5117_v43 }
 0x18c   :  { %v343_v49 = vrot.slane %v335_v45, %v5115_v42  ;;  %v350_v50 = vrot.slane %v336_v46, %v5115_v42  ;;  %v383_v59 = vrot.slane %v375_v47, %v5084_v22 }
 0x18d   :  { %v5126_v51 = vpop.permute.xlu1 %85  ;;  %v5128_v52 = vpop.permute.xlu0 %82 }
 0x18e   :  { %7491 = vst [vmem:[#allocation15_spill] sm:$0xff] %v5126_v51  ;;  %7492 = vst [vmem:[#allocation16_spill] sm:$0xff] %v5128_v52  ;;  %v391_v54 = vcombine.low %v5119_v44, %v5128_v52  ;;  %v5133_v55 = vcombine.low %v311_v48, %v343_v49  ;;  %v5135_v56 = vcombine.high %v311_v48, %v343_v49 }
 0x18f   :  { %v5137_v57 = vcombine.low %v318_v53, %v350_v50  ;;  %v5139_v58 = vcombine.high %v318_v53, %v350_v50 }
 0x190   :  { %7493 = vst [vmem:[#allocation17_spill] sm:$0xff] %v5133_v55  ;;  %7494 = vst [vmem:[#allocation18_spill] sm:$0xff] %v5135_v56  ;;  %v399_v60 = vrot.slane %v391_v54, %v5084_v22  ;;  %1392 = vperm.xlu0 %4828, %v5133_v55  }
 0x191   :  { %7495 = vst [vmem:[#allocation19_spill] sm:$0xff] %v5137_v57  ;;  %7496 = vst [vmem:[#allocation20_spill] sm:$0xff] %v5139_v58  ;;  %v5144_v61 = vpop.permute.xlu1 %91  ;;  %v5146_v62 = vpop.permute.xlu0 %88 }
 0x192   :  { %7497 = vst [vmem:[#allocation21_spill] sm:$0xff] %v5144_v61  ;;  %7498 = vst [vmem:[#allocation22_spill] sm:$0xff] %v5146_v62  ;;  %v440_v63 = vcombine.high %v383_v59, %v399_v60  ;;  %v407_v0 = vcombine.low %v5126_v51, %v5144_v61  ;;  %v439_v4 = vcombine.low %v383_v59, %v399_v60 }
 0x194   :  { %v415_v5 = vrot.slane %v407_v0, %v5084_v22  ;;  %v447_v13 = vrot.slane %v439_v4, %v5115_v42  ;;  %v454_v26 = vrot.slane %v440_v63, %v5115_v42 }
 0x195   :  { %v5150_v1 = vpop.permute.xlu1 %97  ;;  %v5152_v2 = vpop.permute.xlu0 %94 }
 0x196   :  { %7499 = vst [vmem:[#allocation23_spill] sm:$0xff] %v5152_v2  ;;  %v423_v3 = vcombine.low %v5146_v62, %v5152_v2 }
 0x198   :  { %v431_v6 = vrot.slane %v423_v3, %v5084_v22 }
 0x199   :  { %v5158_v7 = vpop.permute.xlu1 %103  ;;  %v5160_v8 = vpop.permute.xlu0 %100 }
 0x19a   :  { %v471_v9 = vcombine.low %v415_v5, %v431_v6  ;;  %v472_v10 = vcombine.high %v415_v5, %v431_v6  ;;  %v511_v12 = vcombine.low %v5150_v1, %v5158_v7 }
 0x19c   :  { %v479_v15 = vrot.slane %v471_v9, %v5115_v42  ;;  %v486_v16 = vrot.slane %v472_v10, %v5115_v42  ;;  %v519_v34 = vrot.slane %v511_v12, %v5084_v22 }
 0x19d   :  { %v5167_v18 = vpop.permute.xlu1 %109  ;;  %v5169_v23 = vpop.permute.xlu0 %106 }
 0x19e   :  { %v527_v27 = vcombine.low %v5160_v8, %v5169_v23  ;;  %v5174_v28 = vcombine.low %v447_v13, %v479_v15  ;;  %v5176_v29 = vcombine.high %v447_v13, %v479_v15  ;;  %v5178_v30 = vcombine.low %v454_v26, %v486_v16 }
 0x19f   :  { %v5180_v33 = vcombine.high %v454_v26, %v486_v16 }
 0x1a0   :  { %7500 = vst [vmem:[#allocation24_spill] sm:$0xff] %v5174_v28  ;;  %7501 = vst [vmem:[#allocation25_spill] sm:$0xff] %v5178_v30  ;;  %v535_v35 = vrot.slane %v527_v27, %v5084_v22  ;;  %1395 = vperm.xlu1 %4829, %v5174_v28  }
 0x1a1   :  { %7502 = vst [vmem:[#allocation26_spill] sm:$0xff] %v5180_v33  ;;  %v5185_v38 = vpop.permute.xlu1 %115  ;;  %v5187_v39 = vpop.permute.xlu0 %112 }
 0x1a2   :  { %v576_v40 = vcombine.high %v519_v34, %v535_v35  ;;  %v543_v41 = vcombine.low %v5167_v18, %v5185_v38  ;;  %v575_v48 = vcombine.low %v519_v34, %v535_v35 }
 0x1a4   :  { %v551_v49 = vrot.slane %v543_v41, %v5084_v22  ;;  %v583_v0 = vrot.slane %v575_v48, %v5115_v42  ;;  %v590_v9 = vrot.slane %v576_v40, %v5115_v42 }
 0x1a5   :  { %v5191_v45 = vpop.permute.xlu1 %121  ;;  %v5193_v46 = vpop.permute.xlu0 %118 }
 0x1a6   :  { %7503 = vst [vmem:[#allocation27_spill] sm:$0xff] %v5191_v45  ;;  %v559_v47 = vcombine.low %v5187_v39, %v5193_v46 }
 0x1a8   :  { %v567_v50 = vrot.slane %v559_v47, %v5084_v22 }
 0x1a9   :  { %v5199_v53 = vpop.permute.xlu1 %127  ;;  %v5201_v54 = vpop.permute.xlu0 %124 }
 0x1aa   :  { %7504 = vst [vmem:[#allocation28_spill] sm:$0xff] %v5199_v53  ;;  %7505 = vst [vmem:[#allocation29_spill] sm:$0xff] %v5201_v54  ;;  %v607_v59 = vcombine.low %v551_v49, %v567_v50  ;;  %v608_v60 = vcombine.high %v551_v49, %v567_v50  ;;  %v647_v63 = vcombine.low %v5191_v45, %v5199_v53 }
 0x1ac   :  { %v615_v3 = vrot.slane %v607_v59, %v5115_v42  ;;  %v622_v4 = vrot.slane %v608_v60, %v5115_v42  ;;  %v655_v26 = vrot.slane %v647_v63, %v5084_v22 }
 0x1ad   :  { %v5208_v5 = vpop.permute.xlu1 %133  ;;  %v5210_v6 = vpop.permute.xlu0 %130 }
 0x1ae   :  { %7506 = vst [vmem:[#allocation30_spill] sm:$0xff] %v5208_v5  ;;  %7507 = vst [vmem:[#allocation31_spill] sm:$0xff] %v5210_v6  ;;  %v663_v10 = vcombine.low %v5201_v54, %v5210_v6  ;;  %v5215_v12 = vcombine.low %v583_v0, %v615_v3  ;;  %v5217_v13 = vcombine.high %v583_v0, %v615_v3 }
 0x1af   :  { %v5219_v15 = vcombine.low %v590_v9, %v622_v4  ;;  %v5221_v16 = vcombine.high %v590_v9, %v622_v4 }
 0x1b0   :  { %7508 = vst [vmem:[#allocation32_spill] sm:$0xff] %v5215_v12  ;;  %v671_v27 = vrot.slane %v663_v10, %v5084_v22  ;;  %1398 = vperm.xlu1 %4829, %v5215_v12  }
 0x1b1   :  { %7509 = vst [vmem:[#allocation33_spill] sm:$0xff] %v5219_v15  ;;  %7510 = vst [vmem:[#allocation34_spill] sm:$0xff] %v5221_v16  ;;  %v5226_v34 = vpop.permute.xlu1 %139  ;;  %v5228_v35 = vpop.permute.xlu0 %136 }
 0x1b2   :  { %7511 = vst [vmem:[#allocation35_spill] sm:$0xff] %v5226_v34  ;;  %7512 = vst [vmem:[#allocation36_spill] sm:$0xff] %v5228_v35  ;;  %v712_v40 = vcombine.high %v655_v26, %v671_v27  ;;  %v679_v41 = vcombine.low %v5208_v5, %v5226_v34  ;;  %v711_v50 = vcombine.low %v655_v26, %v671_v27 }
 0x1b4   :  { %v687_v59 = vrot.slane %v679_v41, %v5084_v22  ;;  %v719_v9 = vrot.slane %v711_v50, %v5115_v42  ;;  %v726_v17 = vrot.slane %v712_v40, %v5115_v42 }
 0x1b5   :  { %v5232_v47 = vpop.permute.xlu1 %146  ;;  %v5234_v48 = vpop.permute.xlu0 %142 }
 0x1b6   :  { %7513 = vst [vmem:[#allocation37_spill] sm:$0xff] %v5232_v47  ;;  %7514 = vst [vmem:[#allocation38_spill] sm:$0xff] %v5234_v48  ;;  %v695_v49 = vcombine.low %v5228_v35, %v5234_v48 }
 0x1b8   :  { %v703_v60 = vrot.slane %v695_v49, %v5084_v22 }
 0x1b9   :  { %v5240_v63 = vpop.permute.xlu1 %152  ;;  %v5242_v0 = vpop.permute.xlu0 %149 }
 0x1ba   :  { %7515 = vst [vmem:[#allocation39_spill] sm:$0xff] %v5242_v0  ;;  %v743_v3 = vcombine.low %v687_v59, %v703_v60  ;;  %v744_v4 = vcombine.high %v687_v59, %v703_v60  ;;  %v799_v26 = vcombine.low %v5232_v47, %v5240_v63  ;;  %v783_v27 = vcombine.low %v5014_v14, %v5242_v0 }
 0x1bc   :  { %v751_v10 = vrot.slane %v743_v3, %v5115_v42  ;;  %v758_v55 = vrot.slane %v744_v4, %v5115_v42  ;;  %v5266_v40 = vrot.slane %v799_v26, %v5084_v22  ;;  %v5269_v3 = vrot.slane %v783_v27, %v5084_v22 }
 0x1bd   :  { %v5252_v41 = vpop.permute.xlu1 %158  ;;  %v5254_v49 = vpop.permute.xlu0 %155 }
 0x1be   :  { %v5256_v12 = vcombine.low %v719_v9, %v751_v10  ;;  %v5258_v59 = vcombine.high %v719_v9, %v751_v10  ;;  %v5260_v50 = vcombine.low %v726_v17, %v758_v55  ;;  %v5262_v60 = vcombine.high %v726_v17, %v758_v55 }
 0x1bf   :  { %v847_v26 = vcombine.low %v5269_v3, %v5266_v40 }
 0x1c0   :  { %7516 = vst [vmem:[#allocation40_spill] sm:$0xff] %v5256_v12  ;;  %7517 = vst [vmem:[#allocation41_spill] sm:$0xff] %v5260_v50  ;;  %1401 = vperm.xlu0 %4828, %v5256_v12  }
 0x1c1   :  { %7518 = vst [vmem:[#allocation42_spill] sm:$0xff] %v5262_v60  ;;  %v5271_v4 = vpop.permute.xlu1 %164  ;;  %v5273_v28 = vpop.permute.xlu0 %161 }
 0x1c2   :  { %v831_v9 = vcombine.low %v5252_v41, %v5271_v4  ;;  %v815_v10 = vcombine.low %v5254_v49, %v5273_v28 }
 0x1c4   :  { %v5280_v17 = vrot.slane %v831_v9, %v5084_v22  ;;  %v5283_v55 = vrot.slane %v815_v10, %v5084_v22  ;;  %v5301_v10 = vrot.slane %v847_v26, %v5115_v42 }
 0x1c5   :  { %v5287_v27 = vpop.permute.xlu1 %170  ;;  %v5289_v12 = vpop.permute.xlu0 %167 }
 0x1c6   :  { %7519 = vst [vmem:[#allocation43_spill] sm:$0xff] %v5287_v27  ;;  %7520 = vst [vmem:[#allocation44_spill] sm:$0xff] %v5289_v12  ;;  %v879_v19 = vcombine.low %v5283_v55, %v5280_v17 }
 0x1c8   :  { %v5294_v60 = vrot.slane %v879_v19, %v5115_v42 }
 0x1c9   :  { %v5296_v45 = vpop.permute.xlu1 %176  ;;  %v5298_v9 = vpop.permute.xlu0 %173 }
 0x1ca   :  { %7521 = vst [vmem:[#allocation45_spill] sm:$0xff] %v5296_v45  ;;  %7522 = vst [vmem:[#allocation46_spill] sm:$0xff] %v5298_v9  ;;  %v5305_v53 = vcombine.low %v5301_v10, %v5294_v60  ;;  %v935_v5 = vcombine.low %v5287_v27, %v5296_v45  ;;  %v919_v34 = vcombine.low %v5289_v12, %v5298_v9 }
 0x1cc   :  { %7523 = vst [vmem:[#allocation47_spill] sm:$0xff] %v5305_v53  ;;  %1404 = vperm.xlu1 %4829, %v5305_v53   ;;  %v5317_v6 = vrot.slane %v935_v5, %v5084_v22  ;;  %v5320_v26 = vrot.slane %v919_v34, %v5084_v22 }
 0x1cd   :  { %v5312_v19 = vpop.permute.xlu1 %182  ;;  %v5314_v54 = vpop.permute.xlu0 %179 }
 0x1ce   :  { %7524 = vst [vmem:[#allocation48_spill] sm:$0xff] %v5312_v19  ;;  %7525 = vst [vmem:[#allocation49_spill] sm:$0xff] %v5314_v54  ;;  %v983_v5 = vcombine.low %v5320_v26, %v5317_v6 }
 0x1d1   :  { %v5322_v35 = vpop.permute.xlu1 %188  ;;  %v5324_v48 = vpop.permute.xlu0 %185 }
 0x1d2   :  { %7526 = vst [vmem:[#allocation50_spill] sm:$0xff] %v5322_v35  ;;  %7527 = vst [vmem:[#allocation51_spill] sm:$0xff] %v5324_v48  ;;  %v967_v27 = vcombine.low %v5312_v19, %v5322_v35  ;;  %v951_v53 = vcombine.low %v5314_v54, %v5324_v48 }
 0x1d4   :  { %v5331_v12 = vrot.slane %v967_v27, %v5084_v22  ;;  %v5334_v9 = vrot.slane %v951_v53, %v5084_v22  ;;  %v991_v27 = vrot.slane %v983_v5, %v5115_v42 }
 0x1d5   :  { %v5338_v34 = vpop.permute.xlu1 %194  ;;  %v5340_v45 = vpop.permute.xlu0 %191 }
 0x1d6   :  { %7528 = vst [vmem:[#allocation52_spill] sm:$0xff] %v5338_v34  ;;  %7529 = vst [vmem:[#allocation53_spill] sm:$0xff] %v5340_v45  ;;  %v1015_v33 = vcombine.low %v5334_v9, %v5331_v12 }
 0x1d8   :  { %v1023_v19 = vrot.slane %v1015_v33, %v5115_v42 }
 0x1d9   :  { %v5345_v35 = vpop.permute.xlu1 %200  ;;  %v5347_v54 = vpop.permute.xlu0 %197 }
 0x1da   :  { %7530 = vst [vmem:[#allocation54_spill] sm:$0xff] %v5345_v35  ;;  %7531 = vst [vmem:[#allocation55_spill] sm:$0xff] %v5347_v54  ;;  %v5350_v53 = vcombine.low %v991_v27, %v1023_v19  ;;  %v1071_v48 = vcombine.low %v5338_v34, %v5345_v35  ;;  %v1055_v36 = vcombine.low %v5340_v45, %v5347_v54 }
 0x1dc   :  { %7532 = vst [vmem:[#allocation56_spill] sm:$0xff] %v5350_v53  ;;  %1407 = vperm.xlu0 %4828, %v5350_v53   ;;  %v1079_v33 = vrot.slane %v1071_v48, %v5084_v22  ;;  %v1063_v61 = vrot.slane %v1055_v36, %v5084_v22 }
 0x1dd   :  { %v5357_v43 = vpop.permute.xlu1 %206  ;;  %v5359_v51 = vpop.permute.xlu0 %203 }
 0x1de   :  { %7533 = vst [vmem:[#allocation57_spill] sm:$0xff] %v5357_v43  ;;  %7534 = vst [vmem:[#allocation58_spill] sm:$0xff] %v5359_v51  ;;  %v1119_v34 = vcombine.low %v1063_v61, %v1079_v33 }
 0x1e1   :  { %v5363_v44 = vpop.permute.xlu1 %212  ;;  %v5365_v5 = vpop.permute.xlu0 %209 }
 0x1e2   :  { %7535 = vst [vmem:[#allocation59_spill] sm:$0xff] %v5363_v44  ;;  %7536 = vst [vmem:[#allocation60_spill] sm:$0xff] %v5365_v5  ;;  %v1103_v52 = vcombine.low %v5357_v43, %v5363_v44  ;;  %v1087_v45 = vcombine.low %v5359_v51, %v5365_v5  ;;  %v1127_v43 = vrot.slane %v1119_v34, %v5115_v42 }
 0x1e4   :  { %v1111_v53 = vrot.slane %v1103_v52, %v5084_v22  ;;  %v1095_v54 = vrot.slane %v1087_v45, %v5084_v22 }
 0x1e5   :  { %v5373_v35 = vpop.permute.xlu1 %218  ;;  %v5375_v48 = vpop.permute.xlu0 %215 }
 0x1e6   :  { %7537 = vst [vmem:[#allocation61_spill] sm:$0xff] %v5373_v35  ;;  %7538 = vst [vmem:[#allocation62_spill] sm:$0xff] %v5375_v48  ;;  %v1151_v36 = vcombine.low %v1095_v54, %v1111_v53 }
 0x1e8   :  { %v1159_v62 = vrot.slane %v1151_v36, %v5115_v42 }
 0x1e9   :  { %v5378_v2 = vpop.permute.xlu1 %224  ;;  %v5380_v14 = vpop.permute.xlu0 %221 }
 0x1ea   :  { %7539 = vst [vmem:[#allocation63_spill] sm:$0xff] %v5378_v2  ;;  %7540 = vst [vmem:[#allocation64_spill] sm:$0xff] %v5380_v14  ;;  %v5383_v44 = vcombine.low %v1127_v43, %v1159_v62  ;;  %v1207_v52 = vcombine.low %v5373_v35, %v5378_v2  ;;  %v1191_v45 = vcombine.low %v5375_v48, %v5380_v14 }
 0x1eb   :  { %v5416_v2 = vcombine.high %v5301_v10, %v5294_v60  ;;  %v5437_v10 = vcombine.high %v991_v27, %v1023_v19  ;;  %v1016_v19 = vcombine.high %v5334_v9, %v5331_v12  ;;  %v256_v27 = vcombine.high %v5077_v21, %v5090_v25 }
 0x1ec   :  { %7541 = vst [vmem:[#allocation65_spill] sm:$0xff] %v5383_v44  ;;  %1410 = vperm.xlu1 %4829, %v5383_v44   ;;  %v5395_v36 = vrot.slane %v1207_v52, %v5084_v22  ;;  %v5398_v0 = vrot.slane %v1191_v45, %v5084_v22  ;;  %v816_v9 = vcombine.high %v5254_v49, %v5273_v28  ;;  %v7550_v28 = vld [vmem:[#allocation39_spill] sm:$0xff]  ;;  %v7551_v49 = vld [vmem:[#allocation8_spill] sm:$0xff] }
 0x1ed   :  { %v5390_v51 = vpop.permute.xlu1 %230  ;;  %v5392_v5 = vpop.permute.xlu0 %227  ;;  %v5471_v25 = vrot.slane %v1016_v19, %v5115_v42  ;;  %v7556_v19 = vld [vmem:[#allocation58_spill] sm:$0xff] }
 0x1ee   :  { %7542 = vst [vmem:[#allocation66_spill] sm:$0xff] %v5390_v51  ;;  %7543 = vst [vmem:[#allocation67_spill] sm:$0xff] %v5392_v5  ;;  %v1255_v14 = vcombine.low %v5398_v0, %v5395_v36 }
 0x1f0   :  { %1416 = vperm.xlu1 %4829, %v5135_v56   ;;  %v1263_v47 = vrot.slane %v1255_v14, %v5115_v42  ;;  %v848_v14 = vcombine.high %v5269_v3, %v5266_v40 }
 0x1f1   :  { %v5401_v34 = vpop.permute.xlu1 %236  ;;  %v5403_v35 = vpop.permute.xlu0 %233 }
 0x1f2   :  { %7544 = vst [vmem:[#allocation68_spill] sm:$0xff] %v5403_v35  ;;  %v1239_v48 = vcombine.low %v5390_v51, %v5401_v34  ;;  %v1223_v44 = vcombine.low %v5392_v5, %v5403_v35  ;;  %v5423_v35 = vcombine.high %v1127_v43, %v1159_v62  ;;  %v1120_v43 = vcombine.high %v1063_v61, %v1079_v33  ;;  %v7549_v33 = vld [vmem:[#allocation37_spill] sm:$0xff] }
 0x1f3   :  { %v862_v62 = vrot.slane %v848_v14, %v5115_v42  ;;  %v288_v61 = vcombine.high %v5102_v32, %v5108_v37  ;;  %v560_v37 = vcombine.high %v5187_v39, %v5193_v46 }
 0x1f4   :  { %v1247_v52 = vrot.slane %v1239_v48, %v5084_v22  ;;  %v1231_v45 = vrot.slane %v1223_v44, %v5084_v22  ;;  %1422 = vperm.xlu1 %4829, %v5217_v13   ;;  %v880_v44 = vcombine.high %v5283_v55, %v5280_v17  ;;  %v800_v48 = vcombine.high %v7549_v33, %v5240_v63  ;;  %v7564_v33 = vld [vmem:[#allocation16_spill] sm:$0xff] }
 0x1f5   :  { %v5465_v32 = vrot.slane %v288_v61, %v5084_v22  ;;  %v7555_v61 = vld [vmem:[#allocation60_spill] sm:$0xff] }
 0x1f6   :  { %v1287_v56 = vcombine.low %v1231_v45, %v1247_v52  ;;  %v894_v60 = vrot.slane %v880_v44, %v5115_v42  ;;  %v1288_v21 = vcombine.high %v1231_v45, %v1247_v52 }
 0x1f8   :  { %v1295_v51 = vrot.slane %v1287_v56, %v5115_v42  ;;  %1428 = vperm.xlu1 %4829, %v5416_v2   ;;  %v1152_v56 = vcombine.high %v1095_v54, %v1111_v53  ;;  %v5439_v17 = vcombine.low %v862_v62, %v894_v60  ;;  %v1134_v54 = vrot.slane %v1120_v43, %v5115_v42  ;;  %v7554_v43 = vld [vmem:[#allocation57_spill] sm:$0xff] }
 0x1f9   :  { %v272_v53 = vcombine.high %v5088_v24, %v5100_v31  ;;  %v5474_v24 = vrot.slane %v256_v27, %v5084_v22  ;;  %v1088_v27 = vcombine.high %v7556_v19, %v7555_v61 }
 0x1fa   :  { %v5421_v5 = vcombine.low %v1263_v47, %v1295_v51  ;;  %7545 = vst [vmem:[#allocation69_spill] sm:$0xff] %v5439_v17  ;;  %v1166_v55 = vrot.slane %v1152_v56, %v5115_v42  ;;  %v5445_v40 = vcombine.high %v1263_v47, %v1295_v51  ;;  %v984_v51 = vcombine.high %v5320_v26, %v5317_v6 }
 0x1fb   :  { %v240_v47 = vcombine.high %v4948_v11, %v5075_v20  ;;  %v5477_v31 = vrot.slane %v272_v53, %v5084_v22  ;;  %v528_v11 = vcombine.high %v5160_v8, %v5169_v23  ;;  %v544_v20 = vcombine.high %v5167_v18, %v5185_v38 }
 0x1fc   :  { %1413 = vperm.xlu0 %4828, %v5421_v5   ;;  %1434 = vperm.xlu1 %4829, %v5423_v35   ;;  %v5447_v3 = vcombine.low %v1134_v54, %v1166_v55  ;;  %v1256_v6 = vcombine.high %v5398_v0, %v5395_v36  ;;  %v5487_v39 = vrot.slane %v984_v51, %v5115_v42  ;;  %v7558_v51 = vld [vmem:[#allocation23_spill] sm:$0xff] }
 0x1fd   :  { %v5490_v46 = vrot.slane %v240_v47, %v5084_v22  ;;  %v351_v12 = vcombine.low %v5477_v31, %v5465_v32  ;;  %v512_v8 = vcombine.high %v5150_v1, %v5158_v7  ;;  %v5498_v18 = vrot.slane %v560_v37, %v5084_v22  ;;  %v7559_v47 = vld [vmem:[#allocation22_spill] sm:$0xff] }
 0x1fe   :  { %7546 = vst [vmem:[#allocation70_spill] sm:$0xff] %v5447_v3  ;;  %v832_v23 = vcombine.high %v5252_v41, %v5271_v4  ;;  %v5504_v38 = vcombine.low %v5487_v39, %v5471_v25  ;;  %v5507_v0 = vrot.slane %v1288_v21, %v5115_v42  ;;  %v5511_v26 = vcombine.high %v862_v62, %v894_v60  ;;  %v7553_v60 = vld [vmem:[#allocation59_spill] sm:$0xff] }
 0x1ff   :  { %v319_v1 = vcombine.low %v5490_v46, %v5474_v24  ;;  %v5516_v7 = vrot.slane %v528_v11, %v5084_v22  ;;  %v5519_v41 = vrot.slane %v544_v20, %v5084_v22  ;;  %v5523_v4 = vrot.slane %v1256_v6, %v5115_v42 }
 0x200   :  { %1419 = vperm.xlu0 %4828, %v5176_v29   ;;  %1440 = vperm.xlu1 %4829, %v5137_v57   ;;  %7547 = vst [vmem:[#allocation71_spill] sm:$0xff] %v5504_v38  ;;  %7548 = vst [vmem:[#allocation72_spill] sm:$0xff] %v5511_v26  ;;  %v784_v36 = vcombine.high %v7551_v49, %v7550_v28  ;;  %v5531_v52 = vrot.slane %v351_v12, %v5115_v42  ;;  %v7560_v12 = vld [vmem:[#allocation54_spill] sm:$0xff] }
 0x201   :  { %v5534_v45 = vrot.slane %v512_v8, %v5084_v22  ;;  %v623_v44 = vcombine.low %v5519_v41, %v5498_v18  ;;  %v5539_v14 = vrot.slane %v832_v23, %v5084_v22  ;;  %v5543_v63 = vcombine.low %v5523_v4, %v5507_v0  ;;  %v7562_v8 = vld [vmem:[#allocation55_spill] sm:$0xff]  ;;  %v7563_v23 = vld [vmem:[#allocation53_spill] sm:$0xff]  ;;  %v7565_v28 = vld [vmem:[#allocation14_spill] sm:$0xff] }
 0x202   :  { %v5546_v56 = vrot.slane %v816_v9, %v5084_v22  ;;  %v1104_v62 = vcombine.high %v7554_v43, %v7553_v60  ;;  %v5552_v53 = vcombine.high %v1134_v54, %v1166_v55  ;;  %v424_v37 = vcombine.high %v7559_v47, %v7558_v51  ;;  %v7561_v55 = vld [vmem:[#allocation52_spill] sm:$0xff]  ;;  %v7566_v60 = vld [vmem:[#allocation21_spill] sm:$0xff] }
 0x203   :  { %7552 = vst [vmem:[#allocation37_spill] sm:$0xff] %v5543_v63  ;;  %v591_v21 = vcombine.low %v5534_v45, %v5516_v7  ;;  %v5560_v11 = vrot.slane %v319_v1, %v5115_v42  ;;  %v5563_v20 = vrot.slane %v800_v48, %v5084_v22  ;;  %v5566_v6 = vrot.slane %v784_v36, %v5084_v22  ;;  %v7567_v1 = vld [vmem:[#allocation15_spill] sm:$0xff]  ;;  %v7569_v47 = vld [vmem:[#allocation13_spill] sm:$0xff] }
 0x204   :  { %1425 = vperm.xlu0 %4828, %v5258_v59   ;;  %1446 = vperm.xlu1 %4829, %v5219_v15   ;;  %7557 = vst [vmem:[#allocation39_spill] sm:$0xff] %v5552_v53  ;;  %v1072_v54 = vcombine.high %v7561_v55, %v7560_v12  ;;  %v1056_v9 = vcombine.high %v7563_v23, %v7562_v8  ;;  %v7570_v12 = vld [vmem:[#allocation11_spill] sm:$0xff]  ;;  %v7571_v23 = vld [vmem:[#allocation26_spill] sm:$0xff]  ;;  %v7591_v15 = vld [vmem:[#allocation44_spill] sm:$0xff] }
 0x205   :  { %v392_v49 = vcombine.high %v7565_v28, %v7564_v33  ;;  %v408_v43 = vcombine.high %v7567_v1, %v7566_v60  ;;  %v5579_v48 = vcombine.low %v5560_v11, %v5531_v52  ;;  %v895_v36 = vcombine.low %v5546_v56, %v5539_v14  ;;  %v7572_v28 = vld [vmem:[#allocation38_spill] sm:$0xff] }
 0x206   :  { %v5584_v61 = vrot.slane %v1104_v62, %v5084_v22  ;;  %v5587_v19 = vrot.slane %v1088_v27, %v5084_v22  ;;  %v5590_v51 = vrot.slane %v623_v44, %v5115_v42  ;;  %v376_v55 = vcombine.high %v7570_v12, %v7569_v47  ;;  %v7573_v62 = vld [vmem:[#allocation36_spill] sm:$0xff]  ;;  %v7574_v47 = vld [vmem:[#allocation31_spill] sm:$0xff]  ;;  %v7575_v12 = vld [vmem:[#allocation29_spill] sm:$0xff] }
 0x207   :  { %7568 = vst [vmem:[#allocation8_spill] sm:$0xff] %v5579_v48  ;;  %v5595_v8 = vrot.slane %v424_v37, %v5084_v22  ;;  %v5599_v33 = vrot.slane %v591_v21, %v5115_v42  ;;  %v696_v60 = vcombine.high %v7573_v62, %v7572_v28  ;;  %v863_v27 = vcombine.low %v5566_v6, %v5563_v20  ;;  %v7576_v62 = vld [vmem:[#allocation35_spill] sm:$0xff] }
 0x208   :  { %1431 = vperm.xlu0 %4828, %v5437_v10   ;;  %1452 = vperm.xlu1 %4829, %v5439_v17   ;;  %v5606_v44 = vrot.slane %v1072_v54, %v5084_v22  ;;  %v5609_v1 = vrot.slane %v1056_v9, %v5084_v22  ;;  %v5613_v37 = vrot.slane %v392_v49, %v5084_v22 }
 0x209   :  { %v5616_v21 = vrot.slane %v408_v43, %v5084_v22  ;;  %v664_v28 = vcombine.high %v7575_v12, %v7574_v47  ;;  %v1167_v54 = vcombine.low %v5587_v19, %v5584_v61  ;;  %v5626_v9 = vcombine.low %v5599_v33, %v5590_v51  ;;  %v7580_v47 = vld [vmem:[#allocation27_spill] sm:$0xff] }
 0x20a   :  { %v5630_v49 = vrot.slane %v376_v55, %v5084_v22  ;;  %v871_v55 = vrot.slane %v863_v27, %v5115_v42 }
 0x20b   :  { %7578 = vst [vmem:[#allocation59_spill] sm:$0xff] %v5626_v9  ;;  %v487_v43 = vcombine.low %v5616_v21, %v5595_v8  ;;  %v1175_v27 = vrot.slane %v1167_v54, %v5115_v42 }
 0x20c   :  { %1437 = vperm.xlu0 %4828, %v5445_v40   ;;  %1458 = vperm.xlu1 %4829, %v5447_v3   ;;  %v7584_v3 = vld [vmem:[#allocation51_spill] sm:$0xff] }
 0x210   :  { %1443 = vperm.xlu0 %4828, %v5178_v30   ;;  %1464 = vperm.xlu1 %4829, %v5139_v58   ;;  %v7577_v58 = vld [vmem:[#allocation30_spill] sm:$0xff] }
 0x211   :  { %v680_v57 = vcombine.high %v7577_v58, %v7576_v62  ;;  %v5638_v58 = vrot.slane %v696_v60, %v5084_v22  ;;  %v7582_v62 = vld [vmem:[#allocation50_spill] sm:$0xff]  ;;  %v5652_v60 = vcombine.high %v5487_v39, %v5471_v25  ;;  %v495_v25 = vrot.slane %v487_v43, %v5115_v42  ;;  %v7594_v43 = vld [vmem:[#allocation67_spill] sm:$0xff] }
 0x212   :  { %v7599_v30 = vld [vmem:[#allocation62_spill] sm:$0xff] }
 0x213   :  { %7586 = vst [vmem:[#allocation57_spill] sm:$0xff] %v5652_v60 }
 0x214   :  { %1449 = vperm.xlu0 %4828, %v5260_v50   ;;  %1470 = vperm.xlu1 %4829, %v5221_v16   ;;  %v7583_v16 = vld [vmem:[#allocation48_spill] sm:$0xff]  ;;  %v7590_v50 = vld [vmem:[#allocation46_spill] sm:$0xff] }
 0x218   :  { %1455 = vperm.xlu0 %4828, %v5504_v38   ;;  %1476 = vperm.xlu1 %4829, %v5511_v26   ;;  %v7581_v26 = vld [vmem:[#allocation42_spill] sm:$0xff]  ;;  %v7589_v38 = vld [vmem:[#allocation43_spill] sm:$0xff] }
 0x21c   :  { %1461 = vperm.xlu0 %4828, %v5543_v63   ;;  %1482 = vperm.xlu1 %4829, %v5552_v53   ;;  %v7579_v53 = vld [vmem:[#allocation28_spill] sm:$0xff]  ;;  %v455_v63 = vcombine.low %v5630_v49, %v5613_v37 }
 0x21d   :  { %v648_v12 = vcombine.high %v7580_v47, %v7579_v53  ;;  %v7585_v53 = vld [vmem:[#allocation49_spill] sm:$0xff] }
 0x21e   :  { %v952_v47 = vcombine.high %v7585_v53, %v7584_v3  ;;  %v920_v3 = vcombine.high %v7591_v15, %v7590_v50  ;;  %v7592_v15 = vld [vmem:[#allocation66_spill] sm:$0xff]  ;;  %v5688_v53 = vcombine.high %v5523_v4, %v5507_v0 }
 0x21f   :  { %v5670_v39 = vrot.slane %v648_v12, %v5084_v22  ;;  %v1240_v50 = vcombine.high %v7592_v15, %v5401_v34  ;;  %v7596_v34 = vld [vmem:[#allocation63_spill] sm:$0xff]  ;;  %v7597_v15 = vld [vmem:[#allocation61_spill] sm:$0xff] }
 0x220   :  { %1467 = vperm.xlu0 %4828, %v7571_v23   ;;  %1488 = vperm.xlu1 %4829, %v5579_v48   ;;  %v903_v48 = vrot.slane %v895_v36, %v5115_v42  ;;  %v968_v23 = vcombine.high %v7583_v16, %v7582_v62  ;;  %v1135_v36 = vcombine.low %v5609_v1, %v5606_v44 }
 0x221   :  { %v5658_v16 = vrot.slane %v680_v57, %v5084_v22  ;;  %v5680_v54 = vrot.slane %v952_v47, %v5084_v22 }
 0x222   :  { %v5660_v62 = vcombine.low %v871_v55, %v903_v48 }
 0x223   :  { %v759_v57 = vcombine.low %v5658_v16, %v5638_v58 }
 0x224   :  { %1473 = vperm.xlu0 %4828, %v7581_v26   ;;  %1494 = vperm.xlu1 %4829, %v5626_v9   ;;  %v5655_v26 = vrot.slane %v664_v28, %v5084_v22  ;;  %7587 = vst [vmem:[#allocation60_spill] sm:$0xff] %v5660_v62  ;;  %v7588_v9 = vld [vmem:[#allocation45_spill] sm:$0xff]  ;;  %v5675_v28 = vrot.slane %v968_v23, %v5084_v22 }
 0x225   :  { %v936_v17 = vcombine.high %v7589_v38, %v7588_v9  ;;  %v1143_v38 = vrot.slane %v1135_v36, %v5115_v42  ;;  %v7593_v9 = vld [vmem:[#allocation68_spill] sm:$0xff]  ;;  %v463_v36 = vrot.slane %v455_v63, %v5115_v42 }
 0x226   :  { %v1224_v12 = vcombine.high %v7594_v43, %v7593_v9  ;;  %v727_v23 = vcombine.low %v5670_v39, %v5655_v26  ;;  %v1208_v9 = vcombine.high %v7597_v15, %v7596_v34  ;;  %v7598_v43 = vld [vmem:[#allocation64_spill] sm:$0xff]  ;;  %v1031_v63 = vcombine.low %v5680_v54, %v5675_v28 }
 0x227   :  { %v5696_v47 = vrot.slane %v936_v17, %v5084_v22  ;;  %v1192_v0 = vcombine.high %v7599_v30, %v7598_v43  ;;  %v5707_v4 = vcombine.low %v463_v36, %v495_v25  ;;  %v5712_v17 = vrot.slane %v1240_v50, %v5084_v22 }
 0x228   :  { %1479 = vperm.xlu0 %4828, %v5652_v60   ;;  %1500 = vperm.xlu1 %4829, %v5660_v62   ;;  %v5692_v60 = vcombine.low %v1143_v38, %v1175_v27  ;;  %v5699_v62 = vrot.slane %v920_v3, %v5084_v22  ;;  %v5715_v3 = vrot.slane %v1224_v12, %v5084_v22 }
 0x229   :  { %v767_v34 = vrot.slane %v759_v57, %v5115_v42  ;;  %v5720_v30 = vcombine.high %v5560_v11, %v5531_v52  ;;  %v5725_v43 = vrot.slane %v1208_v9, %v5084_v22  ;;  %v735_v50 = vrot.slane %v727_v23, %v5115_v42 }
 0x22a   :  { %7595 = vst [vmem:[#allocation58_spill] sm:$0xff] %v5692_v60  ;;  %v999_v15 = vcombine.low %v5699_v62, %v5696_v47  ;;  %v1303_v57 = vcombine.low %v5715_v3, %v5712_v17  ;;  %v1039_v11 = vrot.slane %v1031_v63, %v5115_v42  ;;  %v5740_v12 = vcombine.high %v5599_v33, %v5590_v51 }
 0x22b   :  { %7600 = vst [vmem:[#allocation23_spill] sm:$0xff] %v5720_v30  ;;  %v5735_v52 = vcombine.low %v735_v50, %v767_v34  ;;  %v352_v63 = vcombine.high %v5477_v31, %v5465_v32  ;;  %v320_v33 = vcombine.high %v5490_v46, %v5474_v24  ;;  %v592_v31 = vcombine.high %v5534_v45, %v5516_v7 }
 0x22c   :  { %1485 = vperm.xlu0 %4828, %v5688_v53   ;;  %1506 = vperm.xlu1 %4829, %v5692_v60   ;;  %v5728_v60 = vrot.slane %v1192_v0, %v5084_v22  ;;  %7601 = vst [vmem:[#allocation22_spill] sm:$0xff] %v5740_v12  ;;  %v1007_v23 = vrot.slane %v999_v15, %v5115_v42 }
 0x22d   :  { %v1311_v22 = vrot.slane %v1303_v57, %v5115_v42  ;;  %v5763_v57 = vcombine.high %v1143_v38, %v1175_v27  ;;  %v366_v32 = vrot.slane %v352_v63, %v5115_v42  ;;  %v334_v24 = vrot.slane %v320_v33, %v5115_v42 }
 0x22e   :  { %v1271_v9 = vcombine.low %v5728_v60, %v5725_v43  ;;  %v5747_v0 = vcombine.low %v1007_v23, %v1039_v11  ;;  %v5771_v46 = vcombine.high %v463_v36, %v495_v25  ;;  %v606_v7 = vrot.slane %v592_v31, %v5115_v42 }
 0x22f   :  { %7603 = vst [vmem:[#allocation52_spill] sm:$0xff] %v5763_v57  ;;  %v5783_v45 = vcombine.high %v735_v50, %v767_v34  ;;  %v1168_v27 = vcombine.high %v5587_v19, %v5584_v61  ;;  %v5797_v38 = vcombine.high %v1007_v23, %v1039_v11  ;;  %v456_v19 = vcombine.high %v5630_v49, %v5613_v37 }
 0x230   :  { %1491 = vperm.xlu0 %4828, %v5707_v4   ;;  %1512 = vperm.xlu1 %4829, %v5720_v30   ;;  %v5752_v30 = vcombine.high %v871_v55, %v903_v48  ;;  %v1279_v51 = vrot.slane %v1271_v9, %v5115_v42  ;;  %v896_v48 = vcombine.high %v5546_v56, %v5539_v14 }
 0x231   :  { %v5775_v55 = vcombine.low %v334_v24, %v366_v32  ;;  %7605 = vst [vmem:[#allocation53_spill] sm:$0xff] %v5783_v45  ;;  %v1136_v56 = vcombine.high %v5609_v1, %v5606_v44  ;;  %7607 = vst [vmem:[#allocation14_spill] sm:$0xff] %v5797_v38  ;;  %v1182_v61 = vrot.slane %v1168_v27, %v5115_v42 }
 0x232   :  { %7602 = vst [vmem:[#allocation54_spill] sm:$0xff] %v5752_v30  ;;  %v5759_v15 = vcombine.low %v1279_v51, %v1311_v22  ;;  %v910_v14 = vrot.slane %v896_v48, %v5115_v42  ;;  %v760_v1 = vcombine.high %v5658_v16, %v5638_v58  ;;  %v5809_v34 = vcombine.high %v1279_v51, %v1311_v22  ;;  %v5859_v51 = vpop.permute.xlu1 %1395 }
 0x233   :  { %7604 = vst [vmem:[#allocation55_spill] sm:$0xff] %v5775_v55  ;;  %v1150_v44 = vrot.slane %v1136_v56, %v5115_v42  ;;  %v728_v50 = vcombine.high %v5670_v39, %v5655_v26  ;;  %v470_v37 = vrot.slane %v456_v19, %v5115_v42  ;;  %v1032_v49 = vcombine.high %v5680_v54, %v5675_v28 }
 0x234   :  { %1497 = vperm.xlu0 %4828, %v5735_v52   ;;  %1518 = vperm.xlu1 %4829, %v5740_v12   ;;  %v624_v12 = vcombine.high %v5519_v41, %v5498_v18  ;;  %v864_v41 = vcombine.high %v5566_v6, %v5563_v20  ;;  %v488_v6 = vcombine.high %v5616_v21, %v5595_v8 }
 0x235   :  { %7609 = vst [vmem:[#allocation15_spill] sm:$0xff] %v5809_v34  ;;  %v5812_v21 = vcombine.low %v1150_v44, %v1182_v61  ;;  %v774_v22 = vrot.slane %v760_v1, %v5115_v42  ;;  %v5824_v58 = vcombine.high %v334_v24, %v366_v32  ;;  %v1000_v16 = vcombine.high %v5699_v62, %v5696_v47 }
 0x236   :  { %v638_v18 = vrot.slane %v624_v12, %v5115_v42  ;;  %v878_v20 = vrot.slane %v864_v41, %v5115_v42  ;;  %v502_v8 = vrot.slane %v488_v6, %v5115_v42  ;;  %v742_v26 = vrot.slane %v728_v50, %v5115_v42  ;;  %v5864_v32 = vpop.permute.xlu1 %1398  ;;  %v5877_v41 = vpop.permute.xlu0 %1392 }
 0x237   :  { %7610 = vst [vmem:[#allocation13_spill] sm:$0xff] %v5812_v21  ;;  %7612 = vst [vmem:[#allocation38_spill] sm:$0xff] %v5824_v58  ;;  %v1304_v39 = vcombine.high %v5715_v3, %v5712_v17  ;;  %v1046_v28 = vrot.slane %v1032_v49, %v5115_v42  ;;  %v1272_v9 = vcombine.high %v5728_v60, %v5725_v43 }
 0x238   :  { %1503 = vperm.xlu0 %4828, %v5747_v0   ;;  %1524 = vperm.xlu1 %4829, %v5752_v30   ;;  %v5787_v25 = vcombine.low %v606_v7, %v638_v18  ;;  %v5799_v36 = vcombine.low %v878_v20, %v910_v14  ;;  %v5821_v11 = vcombine.low %v470_v37, %v502_v8 }
 0x239   :  { %v5833_v12 = vcombine.low %v742_v26, %v774_v22  ;;  %v5836_v54 = vcombine.high %v606_v7, %v638_v18  ;;  %v1014_v62 = vrot.slane %v1000_v16, %v5115_v42  ;;  %v1318_v23 = vrot.slane %v1304_v39, %v5115_v42 }
 0x23a   :  { %7606 = vst [vmem:[#allocation16_spill] sm:$0xff] %v5787_v25  ;;  %7608 = vst [vmem:[#allocation21_spill] sm:$0xff] %v5799_v36  ;;  %v5846_v17 = vcombine.high %v878_v20, %v910_v14  ;;  %v1286_v3 = vrot.slane %v1272_v9, %v5115_v42  ;;  %v5853_v60 = vcombine.high %v1150_v44, %v1182_v61  ;;  %v7623_v39 = vlaneseq }
 0x23b   :  { %7611 = vst [vmem:[#allocation11_spill] sm:$0xff] %v5821_v11  ;;  %7613 = vst [vmem:[#allocation36_spill] sm:$0xff] %v5833_v12  ;;  %v5843_v47 = vcombine.low %v1014_v62, %v1046_v28  ;;  %v5857_v43 = vcombine.high %v470_v37, %v502_v8  ;;  %v5862_v33 = vcombine.high %v742_v26, %v774_v22 }
 0x23c   :  { %1509 = vperm.xlu0 %4828, %v5759_v15   ;;  %1530 = vperm.xlu1 %4829, %v5763_v57   ;;  %7614 = vst [vmem:[#allocation31_spill] sm:$0xff] %v5836_v54  ;;  %7616 = vst [vmem:[#allocation35_spill] sm:$0xff] %v5846_v17  ;;  %v5851_v63 = vcombine.low %v1286_v3, %v1318_v23  ;;  %v5867_v31 = vcombine.high %v1014_v62, %v1046_v28  ;;  %v5910_v28 = vand.u32 127, %v7623_v39 }
 0x23d   :  { %7615 = vst [vmem:[#allocation29_spill] sm:$0xff] %v5843_v47  ;;  %7618 = vst [vmem:[#allocation28_spill] sm:$0xff] %v5853_v60  ;;  %v5872_v48 = vcombine.high %v1286_v3, %v1318_v23 }
 0x23e   :  { %7617 = vst [vmem:[#allocation30_spill] sm:$0xff] %v5851_v63  ;;  %7619 = vst [vmem:[#allocation27_spill] sm:$0xff] %v5857_v43  ;;  %v1590_v9 = vadd.s32 4294967292, %v5910_v28  ;;  %v1585_v3 = vadd.s32 4, %v5910_v28  ;;  %v1926_v42 = vadd.s32 4294967236, %v5910_v28  ;;  %v1611_v39 = vadd.s32 4294967268, %v5910_v28 }
 0x23f   :  { %7620 = vst [vmem:[#allocation50_spill] sm:$0xff] %v5862_v33  ;;  %7621 = vst [vmem:[#allocation48_spill] sm:$0xff] %v5867_v31  ;;  %v5881_v27 = vpop.permute.xlu0 %1401 }
 0x240   :  { %1515 = vperm.xlu0 %4828, %v5771_v46   ;;  %1536 = vperm.xlu1 %4829, %v5775_v55   ;;  %7622 = vst [vmem:[#allocation51_spill] sm:$0xff] %v5872_v48  ;;  %7624 = vst [vmem:[#allocation49_spill] sm:$0xff] %v5910_v28  ;;  %v7625_v55 = vld [vmem:[#allocation9_spill] sm:$0xff] }
 0x244   :  { %1521 = vperm.xlu0 %4828, %v5783_v45   ;;  %1542 = vperm.xlu1 %4829, %v5787_v25   ;;  %v1632_v25 = vadd.s32 4294967244, %v5910_v28 }
 0x248   :  { %1527 = vperm.xlu0 %4828, %v5797_v38   ;;  %1548 = vperm.xlu1 %4829, %v5799_v36  }
 0x24b   :  { %v5869_v24 = vpop.permute.xlu1 %1404 }
 0x24c   :  { %1533 = vperm.xlu0 %4828, %v5809_v34   ;;  %1554 = vperm.xlu1 %4829, %v5812_v21  }
 0x250   :  { %1539 = vperm.xlu0 %4828, %v5821_v11   ;;  %1560 = vperm.xlu1 %4829, %v5824_v58   ;;  %v1597_v58 = vadd.s32 4294967284, %v5910_v28 }
 0x254   :  { %1545 = vperm.xlu0 %4828, %v5833_v12   ;;  %1566 = vperm.xlu1 %4829, %v5836_v54   ;;  %v5931_v54 = vsub.s32 %v1926_v42, %v7625_v55 }
 0x256   :  { %7627 = vst [vmem:[#allocation43_spill] sm:$0xff] %v5931_v54 }
 0x258   :  { %1551 = vperm.xlu0 %4828, %v5843_v47   ;;  %1572 = vperm.xlu1 %4829, %v5846_v17  }
 0x25b   :  { %v5885_v56 = vpop.permute.xlu0 %1407 }
 0x25c   :  { %1557 = vperm.xlu0 %4828, %v5851_v63   ;;  %1578 = vperm.xlu1 %4829, %v5853_v60   ;;  %v1625_v63 = vadd.s32 4294967252, %v5910_v28 }
 0x25e   :  { %v5965_v11 = vsub.s32 %v1625_v63, %v7625_v55 }
 0x260   :  { %1563 = vperm.xlu0 %4828, %v5857_v43   ;;  %v5934_v43 = vsub.s32 %v1597_v58, %v7625_v55  ;;  %v5948_v58 = vsub.s32 %v1611_v39, %v7625_v55  ;;  %7632 = vst [vmem:[#allocation67_spill] sm:$0xff] %v5965_v11 }
 0x262   :  { %7628 = vst [vmem:[#allocation46_spill] sm:$0xff] %v5934_v43  ;;  %7630 = vst [vmem:[#allocation66_spill] sm:$0xff] %v5948_v58 }
 0x264   :  { %1569 = vperm.xlu0 %4828, %v5862_v33   ;;  %v5928_v33 = vsub.s32 %v1585_v3, %v7625_v55 }
 0x268   :  { %1575 = vperm.xlu0 %4828, %v5867_v31   ;;  %v1604_v31 = vadd.s32 4294967276, %v5910_v28 }
 0x26a   :  { %v5945_v42 = vsub.s32 %v1604_v31, %v7625_v55 }
 0x26b   :  { %v5874_v18 = vpop.permute.xlu1 %1410 }
 0x26c   :  { %1581 = vperm.xlu0 %4828, %v5872_v48   ;;  %v5919_v48 = vsub.s32 %v1590_v9, %v7625_v55  ;;  %v1618_v9 = vadd.s32 4294967260, %v5910_v28  ;;  %7629 = vst [vmem:[#allocation44_spill] sm:$0xff] %v5945_v42 }
 0x26e   :  { %7626 = vst [vmem:[#allocation45_spill] sm:$0xff] %v5919_v48  ;;  %v1594_v47 = vrot.slane %v5859_v51, %v5919_v48  ;;  %v1589_v51 = vrot.slane %v5877_v41, %v5928_v33  ;;  %v5962_v39 = vsub.s32 %v1618_v9, %v7625_v55  ;;  %v1608_v9 = vrot.slane %v5881_v27, %v5945_v42 }
 0x26f   :  { %v5879_v7 = vpop.permute.xlu1 %1416 }
 0x270   :  { %v1642_v12 = vrot.slane %v5879_v7, %v5928_v33  ;;  %7631 = vst [vmem:[#allocation68_spill] sm:$0xff] %v5962_v39  ;;  %v1596_v38 = vsel %vm1595_vm2, %v1594_v47, %v1589_v51 }
 0x273   :  { %v5883_v14 = vpop.permute.xlu1 %1422 }
 0x277   :  { %v5887_v20 = vpop.permute.xlu1 %1428 }
 0x27b   :  { %v5889_v6 = vpop.permute.xlu0 %1413  ;;  %v5891_v61 = vpop.permute.xlu1 %1434 }
 0x27f   :  { %v1420_v19 = vpop.permute.xlu0 %1419  ;;  %v5893_v44 = vpop.permute.xlu1 %1440 }
 0x280   :  { %v1646_v21 = vrot.slane %v1420_v19, %v5919_v48  ;;  %v1681_v31 = vrot.slane %v5893_v44, %v5928_v33 }
 0x282   :  { %v1647_v34 = vsel %vm1595_vm2, %v1646_v21, %v1642_v12 }
 0x283   :  { %v5895_v1 = vpop.permute.xlu0 %1425  ;;  %v5897_v8 = vpop.permute.xlu1 %1446 }
 0x284   :  { %v1656_v57 = vrot.slane %v5895_v1, %v5945_v42  ;;  %v1690_v21 = vrot.slane %v5897_v8, %v5934_v43 }
 0x287   :  { %v5899_v50 = vpop.permute.xlu0 %1431  ;;  %v5901_v37 = vpop.permute.xlu1 %1452 }
 0x28b   :  { %v5903_v49 = vpop.permute.xlu0 %1437  ;;  %v5905_v22 = vpop.permute.xlu1 %1458 }
 0x28f   :  { %v1444_v16 = vpop.permute.xlu0 %1443  ;;  %v5907_v26 = vpop.permute.xlu1 %1464 }
 0x290   :  { %v1685_v3 = vrot.slane %v1444_v16, %v5919_v48  ;;  %v1601_v16 = vrot.slane %v5864_v32, %v5934_v43  ;;  %v1651_v32 = vrot.slane %v5883_v14, %v5934_v43  ;;  %v1720_v12 = vrot.slane %v5907_v26, %v5928_v33 }
 0x291   :  { %v1930_v14 = vrot.slane %v5877_v41, %v5931_v54  ;;  %v1661_v41 = vrot.slane %v5887_v20, %v5948_v58 }
 0x292   :  { %v1686_v28 = vsel %vm1595_vm2, %v1685_v3, %v1681_v31  ;;  %v1603_v1 = vsel %vm7473_vm3, %v1601_v16, %v1596_v38  ;;  %v1652_v27 = vsel %vm7473_vm3, %v1651_v32, %v1647_v34  ;;  %v1666_v3 = vrot.slane %v5899_v50, %v5962_v39 }
 0x293   :  { %v1450_v62 = vpop.permute.xlu0 %1449  ;;  %v5913_v23 = vpop.permute.xlu1 %1470  ;;  %v1657_v8 = vsel %vm1609_vm4, %v1656_v57, %v1652_v27  ;;  %v1691_v51 = vsel %vm7473_vm3, %v1690_v21, %v1686_v28  ;;  %v1610_v16 = vsel %vm1609_vm4, %v1608_v9, %v1603_v1  ;;  %v1615_v50 = vrot.slane %v5869_v24, %v5948_v58 }
 0x294   :  { %v1695_v30 = vrot.slane %v1450_v62, %v5945_v42  ;;  %v5988_v62 = vsub.s32 %v1632_v25, %v7625_v55  ;;  %v1729_v25 = vrot.slane %v5913_v23, %v5934_v43  ;;  %v1700_v28 = vrot.slane %v5901_v37, %v5948_v58 }
 0x295   :  { %v1622_v23 = vrot.slane %v5885_v56, %v5962_v39  ;;  %v1617_v27 = vsel %vm1616_vm5, %v1615_v50, %v1610_v16 }
 0x296   :  { %7633 = vst [vmem:[#allocation63_spill] sm:$0xff] %v5988_v62  ;;  %v1696_v38 = vsel %vm1609_vm4, %v1695_v30, %v1691_v51  ;;  %v1629_v30 = vrot.slane %v5874_v18, %v5965_v11  ;;  %v1676_v24 = vrot.slane %v5903_v49, %v5988_v62  ;;  %v1636_v49 = vrot.slane %v5889_v6, %v5988_v62 }
 0x297   :  { %v5921_v60 = vpop.permute.xlu0 %1455  ;;  %v5925_v17 = vpop.permute.xlu1 %1476  ;;  %v1701_v37 = vsel %vm1616_vm5, %v1700_v28, %v1696_v38  ;;  %v1934_v51 = vrot.slane %v5879_v7, %v5931_v54 }
 0x298   :  { %v1705_v34 = vrot.slane %v5921_v60, %v5962_v39  ;;  %v1662_v60 = vsel %vm1616_vm5, %v1661_v41, %v1657_v8  ;;  %v1739_v56 = vrot.slane %v5925_v17, %v5948_v58  ;;  %v1710_v8 = vrot.slane %v5905_v22, %v5965_v11 }
 0x299   :  { %v1667_v9 = vsel %vm1623_vm6, %v1666_v3, %v1662_v60  ;;  %v1624_v17 = vsel %vm1623_vm6, %v1622_v23, %v1617_v27  ;;  %v1938_v41 = vrot.slane %v5893_v44, %v5931_v54 }
 0x29a   :  { %v1706_v18 = vsel %vm1623_vm6, %v1705_v34, %v1701_v37  ;;  %v1631_v38 = vsel %vm1630_vm7, %v1629_v30, %v1624_v17  ;;  %v1942_v34 = vrot.slane %v5907_v26, %v5931_v54  ;;  %v7419_v30 = vsub.s32 4, %v7625_v55 }
 0x29b   :  { %v5942_v36 = vpop.permute.xlu0 %1461  ;;  %v5952_v19 = vpop.permute.xlu1 %1482  ;;  %v1711_v22 = vsel %vm1630_vm7, %v1710_v8, %v1706_v18  ;;  %v1638_v50 = vsel %vm7474_vm8, %v1636_v49, %v1631_v38  ;;  %v7418_v8 = vsub.s32 5, %v7625_v55 }
 0x29c   :  { %v1749_v7 = vrot.slane %v5952_v19, %v5965_v11 }
 0x29f   :  { %v1468_v45 = vpop.permute.xlu0 %1467  ;;  %v5981_v63 = vpop.permute.xlu1 %1488 }
 0x2a0   :  { %v1724_v47 = vrot.slane %v1468_v45, %v5919_v48 }
 0x2a2   :  { %v1725_v45 = vsel %vm1595_vm2, %v1724_v47, %v1720_v12  ;;  %v1671_v12 = vrot.slane %v5891_v61, %v5965_v11  ;;  %v1715_v47 = vrot.slane %v5942_v36, %v5988_v62 }
 0x2a3   :  { %v1474_v57 = vpop.permute.xlu0 %1473  ;;  %v6008_v31 = vpop.permute.xlu1 %1494  ;;  %v1730_v32 = vsel %vm7473_vm3, %v1729_v25, %v1725_v45 }
 0x2a4   :  { %v1734_v20 = vrot.slane %v1474_v57, %v5945_v42  ;;  %v1672_v36 = vsel %vm1630_vm7, %v1671_v12, %v1667_v9  ;;  %v1716_v57 = vsel %vm7474_vm8, %v1715_v47, %v1711_v22 }
 0x2a5   :  { %v1677_v6 = vsel %vm7474_vm8, %v1676_v24, %v1672_v36 }
 0x2a6   :  { %v1735_v21 = vsel %vm1609_vm4, %v1734_v20, %v1730_v32  ;;  %v1959_v20 = vsel %vm1912_vm9, %v1934_v51, %v1930_v14  ;;  %v1913_v23 = vsel %vm1912_vm9, %v1677_v6, %v1638_v50 }
 0x2a7   :  { %v1480_v1 = vpop.permute.xlu0 %1479  ;;  %v6034_v3 = vpop.permute.xlu1 %1500  ;;  %v1740_v45 = vsel %vm1616_vm5, %v1739_v56, %v1735_v21  ;;  %v1960_v19 = vsel %vm1914_vm10, %v1938_v41, %v1959_v20  ;;  %v1915_v60 = vsel %vm1914_vm10, %v1716_v57, %v1913_v23  ;;  %v7420_v20 = vsub.s32 7, %v7625_v55 }
 0x2a8   :  { %v1744_v61 = vrot.slane %v1480_v1, %v5962_v39  ;;  %v1961_v9 = vsel %vm1916_vm11, %v1942_v34, %v1960_v19 }
 0x2aa   :  { %v1745_v25 = vsel %vm1623_vm6, %v1744_v61, %v1740_v45 }
 0x2ab   :  { %v1486_v16 = vpop.permute.xlu0 %1485  ;;  %v6054_v44 = vpop.permute.xlu1 %1506  ;;  %v1750_v26 = vsel %vm1630_vm7, %v1749_v7, %v1745_v25  ;;  %v7417_v25 = vsub.s32 6, %v7625_v55 }
 0x2ac   :  { %v1754_v28 = vrot.slane %v1486_v16, %v5988_v62 }
 0x2ae   :  { %v1755_v32 = vsel %vm7474_vm8, %v1754_v28, %v1750_v26  ;;  %v1759_v26 = vrot.slane %v5981_v63, %v5928_v33 }
 0x2af   :  { %v1917_v24 = vsel %vm1916_vm11, %v1755_v32, %v1915_v60  ;;  %v1492_v37 = vpop.permute.xlu0 %1491  ;;  %v6067_v14 = vpop.permute.xlu1 %1512 }
 0x2b0   :  { %v1968_v21 = vsel %vm1967_vm12, %v1917_v24, %v1961_v9  ;;  %v1763_v28 = vrot.slane %v1492_v37, %v5919_v48  ;;  %v1798_v32 = vrot.slane %v6067_v14, %v5928_v33  ;;  %v1768_v24 = vrot.slane %v6008_v31, %v5934_v43 }
 0x2b1   :  { %v1975_v12 = vrot.slane %v1968_v21, %v7419_v30  ;;  %v2010_v51 = vrot.slane %v1968_v21, %v7418_v8  ;;  %v2045_v7 = vrot.slane %v1968_v21, %v7417_v25 }
 0x2b2   :  { %v1764_v37 = vsel %vm1595_vm2, %v1763_v28, %v1759_v26 }
 0x2b3   :  { %1981 = vbcast.lane.b32.xlu0 %v1975_v12, 264  ;;  %1977 = vbcast.lane.b32.xlu1 %v1975_v12, 256  ;;  %v6071_v56 = vpop.permute.xlu0 %1497  ;;  %v6073_v18 = vpop.permute.xlu1 %1518 }
 0x2b4   :  { %v1807_v31 = vrot.slane %v6073_v18, %v5934_v43 }
 0x2b7   :  { %1989 = vbcast.lane.b32.xlu0 %v1975_v12, 280  ;;  %1985 = vbcast.lane.b32.xlu1 %v1975_v12, 272  ;;  %v6075_v47 = vpop.permute.xlu0 %1503  ;;  %v6077_v1 = vpop.permute.xlu1 %1524 }
 0x2b8   :  { %v1817_v18 = vrot.slane %v6077_v1, %v5948_v58 }
 0x2bb   :  { %1997 = vbcast.lane.b32.xlu0 %v1975_v12, 296  ;;  %1993 = vbcast.lane.b32.xlu1 %v1975_v12, 288  ;;  %v6079_v27 = vpop.permute.xlu0 %1509  ;;  %v6081_v49 = vpop.permute.xlu1 %1530 }
 0x2bf   :  { %2005 = vbcast.lane.b32.xlu0 %v1975_v12, 312  ;;  %2001 = vbcast.lane.b32.xlu1 %v1975_v12, 304  ;;  %v1516_v61 = vpop.permute.xlu0 %1515  ;;  %v6084_v17 = vpop.permute.xlu1 %1536  ;;  %v1773_v12 = vrot.slane %v6071_v56, %v5945_v42 }
 0x2c0   :  { %v1802_v23 = vrot.slane %v1516_v61, %v5919_v48  ;;  %v1837_v61 = vrot.slane %v6084_v17, %v5928_v33 }
 0x2c2   :  { %v1803_v25 = vsel %vm1595_vm2, %v1802_v23, %v1798_v32 }
 0x2c3   :  { %2016 = vbcast.lane.b32.xlu0 %v2010_v51, 264  ;;  %2012 = vbcast.lane.b32.xlu1 %v2010_v51, 256  ;;  %v1522_v36 = vpop.permute.xlu0 %1521  ;;  %v1543_v45 = vpop.permute.xlu1 %1542 }
 0x2c4   :  { %v1812_v8 = vrot.slane %v1522_v36, %v5945_v42  ;;  %v1846_v30 = vrot.slane %v1543_v45, %v5934_v43 }
 0x2c7   :  { %2024 = vbcast.lane.b32.xlu0 %v2010_v51, 280  ;;  %2020 = vbcast.lane.b32.xlu1 %v2010_v51, 272  ;;  %v6088_v41 = vpop.permute.xlu0 %1527  ;;  %v6090_v6 = vpop.permute.xlu1 %1548 }
 0x2c8   :  { %v1822_v45 = vrot.slane %v6088_v41, %v5962_v39 }
 0x2cb   :  { %2032 = vbcast.lane.b32.xlu0 %v2010_v51, 296  ;;  %2028 = vbcast.lane.b32.xlu1 %v2010_v51, 288  ;;  %v6092_v22 = vpop.permute.xlu0 %1533  ;;  %v6095_v34 = vpop.permute.xlu1 %1554 }
 0x2cf   :  { %2040 = vbcast.lane.b32.xlu0 %v2010_v51, 312  ;;  %2036 = vbcast.lane.b32.xlu1 %v2010_v51, 304  ;;  %v1540_v38 = vpop.permute.xlu0 %1539  ;;  %v6099_v16 = vpop.permute.xlu1 %1560  ;;  %v1778_v51 = vrot.slane %v6034_v3, %v5948_v58  ;;  %v1769_v3 = vsel %vm7473_vm3, %v1768_v24, %v1764_v37 }
 0x2d0   :  { %v1841_v19 = vrot.slane %v1540_v38, %v5919_v48  ;;  %v6122_v38 = vrot.slane %v1968_v21, %v7420_v20  ;;  %v1876_v21 = vrot.slane %v6099_v16, %v5928_v33  ;;  %v1774_v36 = vsel %vm1609_vm4, %v1773_v12, %v1769_v3 }
 0x2d1   :  { %v1779_v41 = vsel %vm1616_vm5, %v1778_v51, %v1774_v36 }
 0x2d2   :  { %v1842_v28 = vsel %vm1595_vm2, %v1841_v19, %v1837_v61 }
 0x2d3   :  { %2051 = vbcast.lane.b32.xlu0 %v2045_v7, 264  ;;  %2047 = vbcast.lane.b32.xlu1 %v2045_v7, 256  ;;  %v1546_v57 = vpop.permute.xlu0 %1545  ;;  %v1567_v9 = vpop.permute.xlu1 %1566  ;;  %v1847_v32 = vsel %vm7473_vm3, %v1846_v30, %v1842_v28  ;;  %v1856_v30 = vrot.slane %v6090_v6, %v5948_v58 }
 0x2d4   :  { %v1851_v56 = vrot.slane %v1546_v57, %v5945_v42  ;;  %v1783_v57 = vrot.slane %v6075_v47, %v5962_v39  ;;  %v1885_v37 = vrot.slane %v1567_v9, %v5934_v43 }
 0x2d6   :  { %v1852_v12 = vsel %vm1609_vm4, %v1851_v56, %v1847_v32  ;;  %v1784_v9 = vsel %vm1623_vm6, %v1783_v57, %v1779_v41  ;;  %v1958_v32 = vrot.slane %v6099_v16, %v5931_v54 }
 0x2d7   :  { %2059 = vbcast.lane.b32.xlu0 %v2045_v7, 280  ;;  %2055 = vbcast.lane.b32.xlu1 %v2045_v7, 272  ;;  %v1552_v50 = vpop.permute.xlu0 %1551  ;;  %v1573_v33 = vpop.permute.xlu1 %1572  ;;  %v1857_v51 = vsel %vm1616_vm5, %v1856_v30, %v1852_v12 }
 0x2d8   :  { %v1861_v1 = vrot.slane %v1552_v50, %v5962_v39  ;;  %v1827_v50 = vrot.slane %v6081_v49, %v5965_v11  ;;  %v1895_v56 = vrot.slane %v1573_v33, %v5948_v58 }
 0x2db   :  { %2067 = vbcast.lane.b32.xlu0 %v2045_v7, 296  ;;  %2063 = vbcast.lane.b32.xlu1 %v2045_v7, 288  ;;  %v6107_v60 = vpop.permute.xlu0 %1557  ;;  %v1579_v36 = vpop.permute.xlu1 %1578 }
 0x2dc   :  { %v1871_v49 = vrot.slane %v6107_v60, %v5988_v62  ;;  %v1950_v60 = vrot.slane %v6067_v14, %v5931_v54  ;;  %v1905_v14 = vrot.slane %v1579_v36, %v5965_v11 }
 0x2df   :  { %2075 = vbcast.lane.b32.xlu0 %v2045_v7, 312  ;;  %2071 = vbcast.lane.b32.xlu1 %v2045_v7, 304  ;;  %v1564_v26 = vpop.permute.xlu0 %1563  ;;  %v1808_v7 = vsel %vm7473_vm3, %v1807_v31, %v1803_v25 }
 0x2e0   :  { %v1880_v23 = vrot.slane %v1564_v26, %v5919_v48  ;;  %v1813_v19 = vsel %vm1609_vm4, %v1812_v8, %v1808_v7  ;;  %v1788_v8 = vrot.slane %v6054_v44, %v5965_v11  ;;  %v1832_v44 = vrot.slane %v6092_v22, %v5988_v62 }
 0x2e1   :  { %v1818_v61 = vsel %vm1616_vm5, %v1817_v18, %v1813_v19  ;;  %v1862_v26 = vsel %vm1623_vm6, %v1861_v1, %v1857_v51  ;;  %v1946_v22 = vrot.slane %v5981_v63, %v5931_v54  ;;  %v1954_v63 = vrot.slane %v6084_v17, %v5931_v54 }
 0x2e2   :  { %v1881_v24 = vsel %vm1595_vm2, %v1880_v23, %v1876_v21  ;;  %v1823_v28 = vsel %vm1623_vm6, %v1822_v45, %v1818_v61  ;;  %v1793_v21 = vrot.slane %v6079_v27, %v5988_v62  ;;  %v1866_v23 = vrot.slane %v6095_v34, %v5965_v11 }
 0x2e3   :  { %2086 = vbcast.lane.b32.xlu0 %v6122_v38, 264  ;;  %2082 = vbcast.lane.b32.xlu1 %v6122_v38, 256  ;;  %v1570_v47 = vpop.permute.xlu0 %1569  ;;  %v1886_v31 = vsel %vm7473_vm3, %v1885_v37, %v1881_v24  ;;  %v1789_v57 = vsel %vm1630_vm7, %v1788_v8, %v1784_v9  ;;  %v1828_v7 = vsel %vm1630_vm7, %v1827_v50, %v1823_v28  ;;  %v7421_v51 = vsub.s32 3, %v7625_v55 }
 0x2e4   :  { %v1890_v25 = vrot.slane %v1570_v47, %v5945_v42  ;;  %v1833_v27 = vsel %vm7474_vm8, %v1832_v44, %v1828_v7  ;;  %v1867_v45 = vsel %vm1630_vm7, %v1866_v23, %v1862_v26  ;;  %v1794_v17 = vsel %vm7474_vm8, %v1793_v21, %v1789_v57  ;;  %v7634_v23 = vld [vmem:[#allocation24_spill] sm:$0xff] }
 0x2e5   :  { %v1872_v33 = vsel %vm7474_vm8, %v1871_v49, %v1867_v45  ;;  %v1962_v12 = vsel %vm1918_vm13, %v1950_v60, %v1946_v22  ;;  %v1919_v1 = vsel %vm1918_vm13, %v1833_v27, %v1794_v17  ;;  %v7424_v47 = vsub.s32 0, %v7625_v55  ;;  %v7638_v27 = vld [vmem:[#allocation47_spill] sm:$0xff] }
 0x2e6   :  { %v1891_v6 = vsel %vm1609_vm4, %v1890_v25, %v1886_v31  ;;  %v1963_v8 = vsel %vm1920_vm14, %v1954_v63, %v1962_v12  ;;  %v1921_v41 = vsel %vm1920_vm14, %v1872_v33, %v1919_v1  ;;  %v7423_v31 = vsub.s32 1, %v7625_v55 }
 0x2e7   :  { %2094 = vbcast.lane.b32.xlu0 %v6122_v38, 280  ;;  %2090 = vbcast.lane.b32.xlu1 %v6122_v38, 272  ;;  %v1576_v3 = vpop.permute.xlu0 %1575  ;;  %v1896_v19 = vsel %vm1616_vm5, %v1895_v56, %v1891_v6  ;;  %v1964_v25 = vsel %vm1922_vm15, %v1958_v32, %v1963_v8  ;;  %vm2627_vm2 = vcmask 261312   ;;  %vm2634_vm4 = vcmask 326912  }
 0x2e8   :  { %v1900_v18 = vrot.slane %v1576_v3, %v5962_v39  ;;  %vm2648_vm3 = vcmask 458112  }
 0x2ea   :  { %v1901_v34 = vsel %vm1623_vm6, %v1900_v18, %v1896_v19  ;;  %v7635_v18 = vld [vmem:[#allocation32_spill] sm:$0xff] }
 0x2eb   :  { %2102 = vbcast.lane.b32.xlu0 %v6122_v38, 296  ;;  %2098 = vbcast.lane.b32.xlu1 %v6122_v38, 288  ;;  %v1582_v24 = vpop.permute.xlu0 %1581  ;;  %v1906_v16 = vsel %vm1630_vm7, %v1905_v14, %v1901_v34  ;;  %v7637_v19 = vld [vmem:[#allocation40_spill] sm:$0xff] }
 0x2ec   :  { %v1910_v37 = vrot.slane %v1582_v24, %v5988_v62  ;;  %v7640_v14 = vld [vmem:[#allocation56_spill] sm:$0xff]  ;;  %v7641_v24 = vld [vmem:[#allocation65_spill] sm:$0xff] }
 0x2ee   :  { %v1911_v30 = vsel %vm7474_vm8, %v1910_v37, %v1906_v16  ;;  %vm2891_vm8 = vcmask 1044484  }
 0x2ef   :  { %v1923_v9 = vsel %vm1922_vm15, %v1911_v30, %v1921_v41  ;;  %2110 = vbcast.lane.b32.xlu0 %v6122_v38, 312  ;;  %2106 = vbcast.lane.b32.xlu1 %v6122_v38, 304  ;;  %v7422_v38 = vsub.s32 2, %v7625_v55 }
 0x2f0   :  { %v1969_v50 = vsel %vm1967_vm12, %v1923_v9, %v1964_v25  ;;  %vm2641_vm12 = vcmask 392512  }
 0x2f1   :  { %v2115_v61 = vrot.slane %v1969_v50, %v7424_v47  ;;  %v2150_v28 = vrot.slane %v1969_v50, %v7423_v31  ;;  %v2185_v44 = vrot.slane %v1969_v50, %v7422_v38  ;;  %v2220_v6 = vrot.slane %v1969_v50, %v7421_v51 }
 0x2f3   :  { %2121 = vbcast.lane.b32.xlu0 %v2115_v61, 264  ;;  %2117 = vbcast.lane.b32.xlu1 %v2115_v61, 256 }
 0x2f7   :  { %2129 = vbcast.lane.b32.xlu0 %v2115_v61, 280  ;;  %2125 = vbcast.lane.b32.xlu1 %v2115_v61, 272 }
 0x2fb   :  { %2137 = vbcast.lane.b32.xlu0 %v2115_v61, 296  ;;  %2133 = vbcast.lane.b32.xlu1 %v2115_v61, 288 }
 0x2ff   :  { %2145 = vbcast.lane.b32.xlu0 %v2115_v61, 312  ;;  %2141 = vbcast.lane.b32.xlu1 %v2115_v61, 304 }
 0x303   :  { %2156 = vbcast.lane.b32.xlu0 %v2150_v28, 264  ;;  %2152 = vbcast.lane.b32.xlu1 %v2150_v28, 256 }
 0x307   :  { %2164 = vbcast.lane.b32.xlu0 %v2150_v28, 280  ;;  %2160 = vbcast.lane.b32.xlu1 %v2150_v28, 272 }
 0x30b   :  { %2172 = vbcast.lane.b32.xlu0 %v2150_v28, 296  ;;  %2168 = vbcast.lane.b32.xlu1 %v2150_v28, 288 }
 0x30f   :  { %2180 = vbcast.lane.b32.xlu0 %v2150_v28, 312  ;;  %2176 = vbcast.lane.b32.xlu1 %v2150_v28, 304 }
 0x313   :  { %2191 = vbcast.lane.b32.xlu0 %v2185_v44, 264  ;;  %2187 = vbcast.lane.b32.xlu1 %v2185_v44, 256 }
 0x317   :  { %2199 = vbcast.lane.b32.xlu0 %v2185_v44, 280  ;;  %2195 = vbcast.lane.b32.xlu1 %v2185_v44, 272 }
 0x31b   :  { %2207 = vbcast.lane.b32.xlu0 %v2185_v44, 296  ;;  %2203 = vbcast.lane.b32.xlu1 %v2185_v44, 288 }
 0x31f   :  { %2215 = vbcast.lane.b32.xlu0 %v2185_v44, 312  ;;  %2211 = vbcast.lane.b32.xlu1 %v2185_v44, 304 }
 0x323   :  { %2226 = vbcast.lane.b32.xlu0 %v2220_v6, 264  ;;  %2222 = vbcast.lane.b32.xlu1 %v2220_v6, 256 }
 0x325   :  { %v6221_v56 = vpop.permute.xlu1 %1977  ;;  %v1982_v26 = vpop.permute.xlu0 %1981 }
 0x326   :  { %v2317_v36 = vmax.f32 %v7634_v23, %v1982_v26  ;;  %v7650_v23 = vld [vmem:[#allocation69_spill] sm:$0xff] }
 0x327   :  { %2234 = vbcast.lane.b32.xlu0 %v2220_v6, 280  ;;  %2230 = vbcast.lane.b32.xlu1 %v2220_v6, 272 }
 0x329   :  { %v1986_v49 = vpop.permute.xlu1 %1985  ;;  %v1990_v3 = vpop.permute.xlu0 %1989 }
 0x32a   :  { %v6225_v60 = vmax.f32 %v7635_v18, %v1986_v49  ;;  %v2319_v63 = vmax.f32 %v7637_v19, %v1990_v3  ;;  %v7647_v49 = vld [vmem:[#allocation33_spill] sm:$0xff]  ;;  %v7653_v19 = vld [vmem:[#allocation70_spill] sm:$0xff] }
 0x32b   :  { %2242 = vbcast.lane.b32.xlu0 %v2220_v6, 296  ;;  %2238 = vbcast.lane.b32.xlu1 %v2220_v6, 288 }
 0x32c   :  { %7636 = vst [vmem:[#allocation61_spill] sm:$0xff] %v6225_v60 }
 0x32d   :  { %v1994_v22 = vpop.permute.xlu1 %1993  ;;  %v1998_v21 = vpop.permute.xlu0 %1997 }
 0x32e   :  { %v6230_v45 = vmax.f32 %v7638_v27, %v1994_v22  ;;  %v2321_v33 = vmax.f32 %v7640_v14, %v1998_v21  ;;  %v7649_v21 = vld [vmem:[#allocation41_spill] sm:$0xff] }
 0x32f   :  { %2250 = vbcast.lane.b32.xlu0 %v2220_v6, 312  ;;  %2246 = vbcast.lane.b32.xlu1 %v2220_v6, 304  ;;  %v7655_v14 = vld [vmem:[#allocation37_spill] sm:$0xff] }
 0x330   :  { %7639 = vst [vmem:[#allocation64_spill] sm:$0xff] %v6230_v45 }
 0x331   :  { %v2002_v57 = vpop.permute.xlu1 %2001  ;;  %v2006_v7 = vpop.permute.xlu0 %2005 }
 0x332   :  { %v6237_v17 = vmax.f32 %v7641_v24, %v2002_v57  ;;  %v2323_v1 = vmax.f32 %v5421_v5, %v2006_v7  ;;  %v7652_v57 = vld [vmem:[#allocation71_spill] sm:$0xff]  ;;  %v7656_v24 = vld [vmem:[#allocation26_spill] sm:$0xff] }
 0x333   :  { %2440 = vperm.xlu0 %4828, %v6225_v60   ;;  %2437 = vperm.xlu1 %4829, %v2317_v36  }
 0x334   :  { %7642 = vst [vmem:[#allocation62_spill] sm:$0xff] %v6237_v17 }
 0x335   :  { %v6232_v34 = vpop.permute.xlu1 %2012  ;;  %v2017_v32 = vpop.permute.xlu0 %2016 }
 0x336   :  { %v2325_v16 = vmax.f32 %v5176_v29, %v2017_v32 }
 0x337   :  { %2446 = vperm.xlu0 %4828, %v6230_v45   ;;  %2443 = vperm.xlu1 %4829, %v2319_v63  }
 0x339   :  { %v2021_v37 = vpop.permute.xlu1 %2020  ;;  %v2025_v12 = vpop.permute.xlu0 %2024 }
 0x33a   :  { %v6243_v30 = vmax.f32 %v5217_v13, %v2021_v37  ;;  %v2327_v25 = vmax.f32 %v5258_v59, %v2025_v12 }
 0x33b   :  { %2452 = vperm.xlu0 %4828, %v6237_v17   ;;  %2449 = vperm.xlu1 %4829, %v2321_v33  }
 0x33c   :  { %7643 = vst [vmem:[#allocation24_spill] sm:$0xff] %v6243_v30 }
 0x33d   :  { %v2029_v8 = vpop.permute.xlu1 %2028  ;;  %v2033_v41 = vpop.permute.xlu0 %2032 }
 0x33e   :  { %v6248_v61 = vmax.f32 %v5416_v2, %v2029_v8  ;;  %v2329_v5 = vmax.f32 %v5437_v10, %v2033_v41  ;;  %v7646_v2 = vld [vmem:[#allocation25_spill] sm:$0xff]  ;;  %v7659_v41 = vld [vmem:[#allocation42_spill] sm:$0xff] }
 0x33f   :  { %2455 = vperm.xlu1 %4829, %v2323_v1   ;;  %2458 = vperm.xlu0 %4828, %v2325_v16   ;;  %v7657_v16 = vld [vmem:[#allocation34_spill] sm:$0xff] }
 0x340   :  { %7644 = vst [vmem:[#allocation32_spill] sm:$0xff] %v6248_v61 }
 0x341   :  { %v2037_v9 = vpop.permute.xlu1 %2036  ;;  %v2041_v50 = vpop.permute.xlu0 %2040 }
 0x342   :  { %v6255_v13 = vmax.f32 %v5423_v35, %v2037_v9  ;;  %v2331_v59 = vmax.f32 %v5445_v40, %v2041_v50 }
 0x343   :  { %2461 = vperm.xlu1 %4829, %v6243_v30   ;;  %2464 = vperm.xlu0 %4828, %v2327_v25  }
 0x344   :  { %7645 = vst [vmem:[#allocation40_spill] sm:$0xff] %v6255_v13 }
 0x345   :  { %v6251_v29 = vpop.permute.xlu1 %2047  ;;  %v2052_v28 = vpop.permute.xlu0 %2051 }
 0x346   :  { %v2333_v26 = vmax.f32 %v7646_v2, %v2052_v28 }
 0x347   :  { %2467 = vperm.xlu1 %4829, %v6248_v61   ;;  %2470 = vperm.xlu0 %4828, %v2329_v5   ;;  %v7660_v5 = vld [vmem:[#allocation72_spill] sm:$0xff] }
 0x349   :  { %v2056_v44 = vpop.permute.xlu1 %2055  ;;  %v2060_v6 = vpop.permute.xlu0 %2059 }
 0x34a   :  { %v6261_v10 = vmax.f32 %v7647_v49, %v2056_v44  ;;  %v2335_v35 = vmax.f32 %v7649_v21, %v2060_v6 }
 0x34b   :  { %2473 = vperm.xlu1 %4829, %v6255_v13   ;;  %2476 = vperm.xlu0 %4828, %v2331_v59   ;;  %v7662_v59 = vld [vmem:[#allocation57_spill] sm:$0xff] }
 0x34c   :  { %7648 = vst [vmem:[#allocation47_spill] sm:$0xff] %v6261_v10 }
 0x34d   :  { %v2064_v3 = vpop.permute.xlu1 %2063  ;;  %v2068_v22 = vpop.permute.xlu0 %2067 }
 0x34e   :  { %v6266_v36 = vmax.f32 %v7650_v23, %v2064_v3  ;;  %v2337_v7 = vmax.f32 %v7652_v57, %v2068_v22 }
 0x34f   :  { %2482 = vperm.xlu0 %4828, %v6261_v10   ;;  %2479 = vperm.xlu1 %4829, %v2333_v26   ;;  %v7663_v26 = vld [vmem:[#allocation39_spill] sm:$0xff] }
 0x350   :  { %7651 = vst [vmem:[#allocation56_spill] sm:$0xff] %v6266_v36 }
 0x351   :  { %v2072_v40 = vpop.permute.xlu1 %2071  ;;  %v2076_v18 = vpop.permute.xlu0 %2075 }
 0x352   :  { %v6271_v63 = vmax.f32 %v7653_v19, %v2072_v40  ;;  %v2339_v33 = vmax.f32 %v7655_v14, %v2076_v18  ;;  %v7665_v18 = vld [vmem:[#allocation59_spill] sm:$0xff] }
 0x353   :  { %2488 = vperm.xlu0 %4828, %v6266_v36   ;;  %2485 = vperm.xlu1 %4829, %v2335_v35  }
 0x354   :  { %7654 = vst [vmem:[#allocation65_spill] sm:$0xff] %v6271_v63 }
 0x355   :  { %v6273_v27 = vpop.permute.xlu1 %2082  ;;  %v2087_v32 = vpop.permute.xlu0 %2086 }
 0x356   :  { %v2341_v37 = vmax.f32 %v7656_v24, %v2087_v32  ;;  %v7667_v32 = vld [vmem:[#allocation60_spill] sm:$0xff] }
 0x357   :  { %2494 = vperm.xlu0 %4828, %v6271_v63   ;;  %2491 = vperm.xlu1 %4829, %v2337_v7  }
 0x359   :  { %v2091_v12 = vpop.permute.xlu1 %2090  ;;  %v2095_v1 = vpop.permute.xlu0 %2094 }
 0x35a   :  { %v6279_v8 = vmax.f32 %v7657_v16, %v2091_v12  ;;  %v2343_v25 = vmax.f32 %v7659_v41, %v2095_v1 }
 0x35b   :  { %2497 = vperm.xlu1 %4829, %v2339_v33   ;;  %2500 = vperm.xlu0 %4828, %v2341_v37   ;;  %v7669_v37 = vld [vmem:[#allocation58_spill] sm:$0xff] }
 0x35c   :  { %7658 = vst [vmem:[#allocation25_spill] sm:$0xff] %v6279_v8 }
 0x35d   :  { %v2099_v9 = vpop.permute.xlu1 %2098  ;;  %v2103_v50 = vpop.permute.xlu0 %2102 }
 0x35e   :  { %v6284_v28 = vmax.f32 %v7660_v5, %v2099_v9  ;;  %v2345_v44 = vmax.f32 %v7662_v59, %v2103_v50  ;;  %v7673_v5 = vld [vmem:[#allocation53_spill] sm:$0xff] }
 0x35f   :  { %2503 = vperm.xlu1 %4829, %v6279_v8   ;;  %2506 = vperm.xlu0 %4828, %v2343_v25  }
 0x360   :  { %7661 = vst [vmem:[#allocation33_spill] sm:$0xff] %v6284_v28 }
 0x361   :  { %v2107_v6 = vpop.permute.xlu1 %2106  ;;  %v2111_v2 = vpop.permute.xlu0 %2110 }
 0x362   :  { %v6289_v49 = vmax.f32 %v7663_v26, %v2107_v6  ;;  %v2347_v3 = vmax.f32 %v5688_v53, %v2111_v2  ;;  %v7676_v26 = vld [vmem:[#allocation14_spill] sm:$0xff] }
 0x363   :  { %2509 = vperm.xlu1 %4829, %v6284_v28   ;;  %2512 = vperm.xlu0 %4828, %v2345_v44   ;;  %v7716_v28 = vld [vmem:[#allocation49_spill] sm:$0xff] }
 0x364   :  { %7664 = vst [vmem:[#allocation41_spill] sm:$0xff] %v6289_v49  ;;  %v2608_v36 = vadd.s32 4294967288, %v7716_v28  ;;  %v2615_v61 = vadd.s32 4294967280, %v7716_v28  ;;  %v2629_v8 = vadd.s32 4294967264, %v7716_v28  ;;  %v2636_v10 = vadd.s32 4294967256, %v7716_v28 }
 0x365   :  { %v6292_v22 = vpop.permute.xlu1 %2117  ;;  %v2122_v21 = vpop.permute.xlu0 %2121 }
 0x366   :  { %v2349_v35 = vmax.f32 %v5707_v4, %v2122_v21  ;;  %v6531_v60 = vsub.s32 %v2636_v10, %v7625_v55 }
 0x367   :  { %2515 = vperm.xlu1 %4829, %v6289_v49   ;;  %2518 = vperm.xlu0 %4828, %v2347_v3  }
 0x369   :  { %v2126_v23 = vpop.permute.xlu1 %2125  ;;  %v2130_v40 = vpop.permute.xlu0 %2129 }
 0x36a   :  { %v6297_v57 = vmax.f32 %v7665_v18, %v2126_v23  ;;  %v2351_v7 = vmax.f32 %v5735_v52, %v2130_v40  ;;  %v7679_v40 = vld [vmem:[#allocation15_spill] sm:$0xff] }
 0x36b   :  { %2521 = vperm.xlu1 %4829, %v2349_v35   ;;  %v7677_v35 = vld [vmem:[#allocation52_spill] sm:$0xff] }
 0x36c   :  { %7666 = vst [vmem:[#allocation69_spill] sm:$0xff] %v6297_v57  ;;  %2524 = vperm.xlu0 %4828, %v6297_v57  }
 0x36d   :  { %v2134_v19 = vpop.permute.xlu1 %2133  ;;  %v2138_v53 = vpop.permute.xlu0 %2137 }
 0x36e   :  { %v6302_v14 = vmax.f32 %v7667_v32, %v2134_v19  ;;  %v2353_v4 = vmax.f32 %v5747_v0, %v2138_v53  ;;  %v7671_v0 = vld [vmem:[#allocation22_spill] sm:$0xff]  ;;  %v7680_v53 = vld [vmem:[#allocation11_spill] sm:$0xff] }
 0x36f   :  { %2527 = vperm.xlu1 %4829, %v2351_v7  }
 0x370   :  { %7668 = vst [vmem:[#allocation71_spill] sm:$0xff] %v6302_v14  ;;  %2530 = vperm.xlu0 %4828, %v6302_v14  }
 0x371   :  { %v2142_v33 = vpop.permute.xlu1 %2141  ;;  %v2146_v24 = vpop.permute.xlu0 %2145 }
 0x372   :  { %v6307_v12 = vmax.f32 %v7669_v37, %v2142_v33  ;;  %v2355_v52 = vmax.f32 %v5759_v15, %v2146_v24  ;;  %v7674_v15 = vld [vmem:[#allocation54_spill] sm:$0xff]  ;;  %v7681_v24 = vld [vmem:[#allocation16_spill] sm:$0xff] }
 0x373   :  { %2533 = vperm.xlu1 %4829, %v2353_v4  }
 0x374   :  { %7670 = vst [vmem:[#allocation70_spill] sm:$0xff] %v6307_v12  ;;  %2536 = vperm.xlu0 %4828, %v6307_v12  }
 0x375   :  { %v6311_v1 = vpop.permute.xlu1 %2152  ;;  %v2157_v16 = vpop.permute.xlu0 %2156 }
 0x376   :  { %v2357_v41 = vmax.f32 %v5771_v46, %v2157_v16 }
 0x377   :  { %2539 = vperm.xlu1 %4829, %v2355_v52   ;;  %v7683_v52 = vld [vmem:[#allocation36_spill] sm:$0xff] }
 0x378   :  { %2542 = vperm.xlu0 %4828, %v2357_v41  }
 0x379   :  { %v2161_v25 = vpop.permute.xlu1 %2160  ;;  %v2165_v9 = vpop.permute.xlu0 %2164 }
 0x37a   :  { %v6315_v50 = vmax.f32 %v7671_v0, %v2161_v25  ;;  %v2359_v59 = vmax.f32 %v7673_v5, %v2165_v9  ;;  %v7684_v9 = vld [vmem:[#allocation21_spill] sm:$0xff] }
 0x37b   :  { %v7686_v5 = vld [vmem:[#allocation29_spill] sm:$0xff] }
 0x37c   :  { %7672 = vst [vmem:[#allocation37_spill] sm:$0xff] %v6315_v50  ;;  %2545 = vperm.xlu1 %4829, %v6315_v50   ;;  %2548 = vperm.xlu0 %4828, %v2359_v59  }
 0x37d   :  { %v2169_v44 = vpop.permute.xlu1 %2168  ;;  %v2173_v6 = vpop.permute.xlu0 %2172 }
 0x37e   :  { %v6320_v2 = vmax.f32 %v7674_v15, %v2169_v44  ;;  %v2361_v3 = vmax.f32 %v7676_v26, %v2173_v6  ;;  %v7687_v15 = vld [vmem:[#allocation13_spill] sm:$0xff] }
 0x380   :  { %7675 = vst [vmem:[#allocation26_spill] sm:$0xff] %v6320_v2  ;;  %2551 = vperm.xlu1 %4829, %v6320_v2   ;;  %2554 = vperm.xlu0 %4828, %v2361_v3   ;;  %v7689_v3 = vld [vmem:[#allocation30_spill] sm:$0xff] }
 0x381   :  { %v2177_v46 = vpop.permute.xlu1 %2176  ;;  %v2181_v21 = vpop.permute.xlu0 %2180 }
 0x382   :  { %v6325_v23 = vmax.f32 %v7677_v35, %v2177_v46  ;;  %v2363_v18 = vmax.f32 %v7679_v40, %v2181_v21  ;;  %v7690_v40 = vld [vmem:[#allocation27_spill] sm:$0xff] }
 0x384   :  { %7678 = vst [vmem:[#allocation34_spill] sm:$0xff] %v6325_v23  ;;  %2557 = vperm.xlu1 %4829, %v6325_v23   ;;  %2560 = vperm.xlu0 %4828, %v2363_v18  }
 0x385   :  { %v2188_v7 = vpop.permute.xlu1 %2187  ;;  %v2192_v19 = vpop.permute.xlu0 %2191 }
 0x386   :  { %v2365_v32 = vmax.f32 %v7680_v53, %v2192_v19 }
 0x388   :  { %2563 = vperm.xlu1 %4829, %v2365_v32   ;;  %v7691_v32 = vld [vmem:[#allocation31_spill] sm:$0xff] }
 0x389   :  { %v2196_v4 = vpop.permute.xlu1 %2195  ;;  %v2200_v33 = vpop.permute.xlu0 %2199 }
 0x38a   :  { %v6331_v37 = vmax.f32 %v7681_v24, %v2196_v4  ;;  %v2367_v16 = vmax.f32 %v7683_v52, %v2200_v33  ;;  %v7693_v33 = vld [vmem:[#allocation50_spill] sm:$0xff] }
 0x38c   :  { %7682 = vst [vmem:[#allocation42_spill] sm:$0xff] %v6331_v37  ;;  %2566 = vperm.xlu0 %4828, %v6331_v37   ;;  %2569 = vperm.xlu1 %4829, %v2367_v16   ;;  %v6495_v37 = vsub.s32 %v2615_v61, %v7625_v55 }
 0x38d   :  { %v2204_v41 = vpop.permute.xlu1 %2203  ;;  %v2208_v25 = vpop.permute.xlu0 %2207 }
 0x38e   :  { %v6336_v0 = vmax.f32 %v7684_v9, %v2204_v41  ;;  %v2369_v59 = vmax.f32 %v7686_v5, %v2208_v25  ;;  %v7694_v41 = vld [vmem:[#allocation35_spill] sm:$0xff]  ;;  %v7696_v9 = vld [vmem:[#allocation48_spill] sm:$0xff] }
 0x390   :  { %7685 = vst [vmem:[#allocation72_spill] sm:$0xff] %v6336_v0  ;;  %2572 = vperm.xlu0 %4828, %v6336_v0   ;;  %2575 = vperm.xlu1 %4829, %v2369_v59  }
 0x391   :  { %v2212_v44 = vpop.permute.xlu1 %2211  ;;  %v2216_v6 = vpop.permute.xlu0 %2215 }
 0x392   :  { %v6341_v26 = vmax.f32 %v7687_v15, %v2212_v44  ;;  %v2371_v46 = vmax.f32 %v7689_v3, %v2216_v6  ;;  %v7697_v6 = vld [vmem:[#allocation28_spill] sm:$0xff]  ;;  %v7699_v3 = vld [vmem:[#allocation51_spill] sm:$0xff] }
 0x394   :  { %7688 = vst [vmem:[#allocation57_spill] sm:$0xff] %v6341_v26  ;;  %2578 = vperm.xlu0 %4828, %v6341_v26   ;;  %2581 = vperm.xlu1 %4829, %v2371_v46  }
 0x395   :  { %v2223_v21 = vpop.permute.xlu1 %2222  ;;  %v2227_v35 = vpop.permute.xlu0 %2226 }
 0x396   :  { %v2373_v18 = vmax.f32 %v7690_v40, %v2227_v35  ;;  %v7700_v35 = vld [vmem:[#allocation17_spill] sm:$0xff] }
 0x397   :  { %v6363_v40 = vmax.f32 %v7700_v35, %v6221_v56  ;;  %v7708_v56 = vld [vmem:[#allocation8_spill] sm:$0xff] }
 0x398   :  { %2584 = vperm.xlu0 %4828, %v2373_v18   ;;  %v7702_v18 = vld [vmem:[#allocation18_spill] sm:$0xff] }
 0x399   :  { %v2231_v19 = vpop.permute.xlu1 %2230  ;;  %v2235_v53 = vpop.permute.xlu0 %2234  ;;  %7701 = vst [vmem:[#allocation58_spill] sm:$0xff] %v6363_v40 }
 0x39a   :  { %v6347_v4 = vmax.f32 %v7691_v32, %v2231_v19  ;;  %v2375_v24 = vmax.f32 %v7693_v33, %v2235_v53  ;;  %v6367_v19 = vmax.f32 %v7702_v18, %v6232_v34  ;;  %v7704_v53 = vld [vmem:[#allocation19_spill] sm:$0xff]  ;;  %v7706_v33 = vld [vmem:[#allocation20_spill] sm:$0xff]  ;;  %v6383_v34 = vmax.f32 %v7708_v56, %v6292_v22 }
 0x39b   :  { %v6373_v32 = vmax.f32 %v7704_v53, %v6251_v29  ;;  %v7712_v29 = vld [vmem:[#allocation55_spill] sm:$0xff] }
 0x39c   :  { %7692 = vst [vmem:[#allocation39_spill] sm:$0xff] %v6347_v4  ;;  %2587 = vperm.xlu1 %4829, %v6347_v4   ;;  %2590 = vperm.xlu0 %4828, %v2375_v24   ;;  %7703 = vst [vmem:[#allocation22_spill] sm:$0xff] %v6367_v19  ;;  %v6377_v24 = vmax.f32 %v7706_v33, %v6273_v27  ;;  %v7714_v27 = vld [vmem:[#allocation38_spill] sm:$0xff]  ;;  %v6489_v4 = vsub.s32 %v7716_v28, %v7625_v55 }
 0x39d   :  { %v2239_v52 = vpop.permute.xlu1 %2238  ;;  %v2243_v16 = vpop.permute.xlu0 %2242  ;;  %7705 = vst [vmem:[#allocation53_spill] sm:$0xff] %v6373_v32  ;;  %7709 = vst [vmem:[#allocation14_spill] sm:$0xff] %v6383_v34 }
 0x39e   :  { %v6352_v25 = vmax.f32 %v7694_v41, %v2239_v52  ;;  %v2377_v5 = vmax.f32 %v7696_v9, %v2243_v16  ;;  %7707 = vst [vmem:[#allocation54_spill] sm:$0xff] %v6377_v24  ;;  %v7710_v52 = vld [vmem:[#allocation23_spill] sm:$0xff]  ;;  %v6392_v41 = vmax.f32 %v7712_v29, %v2188_v7  ;;  %v6395_v9 = vmax.f32 %v7714_v27, %v2223_v21 }
 0x39f   :  { %v6387_v16 = vmax.f32 %v7710_v52, %v6311_v1 }
 0x3a0   :  { %7695 = vst [vmem:[#allocation59_spill] sm:$0xff] %v6352_v25  ;;  %2593 = vperm.xlu1 %4829, %v6352_v25   ;;  %2596 = vperm.xlu0 %4828, %v2377_v5   ;;  %7713 = vst [vmem:[#allocation15_spill] sm:$0xff] %v6392_v41 }
 0x3a1   :  { %v2247_v59 = vpop.permute.xlu1 %2246  ;;  %v2251_v44 = vpop.permute.xlu0 %2250  ;;  %7711 = vst [vmem:[#allocation52_spill] sm:$0xff] %v6387_v16  ;;  %7715 = vst [vmem:[#allocation11_spill] sm:$0xff] %v6395_v9 }
 0x3a2   :  { %v6357_v15 = vmax.f32 %v7697_v6, %v2247_v59  ;;  %v2379_v46 = vmax.f32 %v7699_v3, %v2251_v44 }
 0x3a4   :  { %7698 = vst [vmem:[#allocation60_spill] sm:$0xff] %v6357_v15  ;;  %2599 = vperm.xlu1 %4829, %v6357_v15   ;;  %2602 = vperm.xlu0 %4828, %v2379_v46  }
 0x3a8   :  { %2906 = vperm.xlu1 %4829, %v6363_v40   ;;  %2909 = vperm.xlu0 %4828, %v6367_v19   ;;  %v2643_v40 = vadd.s32 4294967248, %v7716_v28 }
 0x3ac   :  { %2912 = vperm.xlu1 %4829, %v6373_v32   ;;  %2915 = vperm.xlu0 %4828, %v6377_v24  }
 0x3b0   :  { %2918 = vperm.xlu1 %4829, %v6383_v34   ;;  %2921 = vperm.xlu0 %4828, %v6387_v16   ;;  %v2622_v16 = vadd.s32 4294967272, %v7716_v28 }
 0x3b2   :  { %v6397_v5 = vpop.permute.xlu1 %2437  ;;  %v6399_v59 = vpop.permute.xlu0 %2440  ;;  %v6511_v32 = vsub.s32 %v2622_v16, %v7625_v55  ;;  %v6524_v16 = vsub.s32 %v2629_v8, %v7625_v55 }
 0x3b3   :  { %v2607_v57 = vrot.slane %v6397_v5, %v6489_v4 }
 0x3b4   :  { %2924 = vperm.xlu1 %4829, %v6392_v41   ;;  %2927 = vperm.xlu0 %4828, %v6395_v9   ;;  %v6492_v41 = vsub.s32 %v2608_v36, %v7625_v55 }
 0x3b6   :  { %v6403_v22 = vpop.permute.xlu1 %2443  ;;  %v6405_v1 = vpop.permute.xlu0 %2446  ;;  %v2612_v24 = vrot.slane %v6399_v59, %v6492_v41 }
 0x3b7   :  { %v2619_v61 = vrot.slane %v6403_v22, %v6495_v37 }
 0x3b8   :  { %v2614_v22 = vsel %vm2613_vm0, %v2612_v24, %v2607_v57 }
 0x3ba   :  { %v6407_v44 = vpop.permute.xlu1 %2449  ;;  %v6409_v6 = vpop.permute.xlu0 %2452 }
 0x3be   :  { %v6411_v7 = vpop.permute.xlu1 %2455  ;;  %v2459_v21 = vpop.permute.xlu0 %2458 }
 0x3c2   :  { %v2462_v3 = vpop.permute.xlu1 %2461  ;;  %v6413_v46 = vpop.permute.xlu0 %2464 }
 0x3c3   :  { %v2657_v34 = vrot.slane %v2462_v3, %v6492_v41  ;;  %v2653_v3 = vrot.slane %v2459_v21, %v6489_v4  ;;  %v2662_v5 = vrot.slane %v6413_v46, %v6495_v37  ;;  %v2621_v21 = vsel %vm2620_vm1, %v2619_v61, %v2614_v22 }
 0x3c4   :  { %v2626_v46 = vrot.slane %v6405_v1, %v6511_v32 }
 0x3c5   :  { %v2658_v59 = vsel %vm2613_vm0, %v2657_v34, %v2653_v3  ;;  %v2633_v3 = vrot.slane %v6407_v44, %v6524_v16 }
 0x3c6   :  { %v6415_v35 = vpop.permute.xlu1 %2467  ;;  %v6417_v18 = vpop.permute.xlu0 %2470  ;;  %v2663_v34 = vsel %vm2620_vm1, %v2662_v5, %v2658_v59 }
 0x3c7   :  { %v2667_v30 = vrot.slane %v6415_v35, %v6511_v32  ;;  %v2672_v35 = vrot.slane %v6417_v18, %v6524_v16  ;;  %v6550_v18 = vsub.s32 %v2643_v40, %v7625_v55 }
 0x3c9   :  { %v2668_v1 = vsel %vm2627_vm2, %v2667_v30, %v2663_v34  ;;  %v2929_v30 = vadd.s32 4294967240, %v7716_v28 }
 0x3ca   :  { %v6419_v53 = vpop.permute.xlu1 %2473  ;;  %v6421_v33 = vpop.permute.xlu0 %2476  ;;  %v2673_v44 = vsel %vm2634_vm4, %v2672_v35, %v2668_v1  ;;  %v2647_v35 = vrot.slane %v6411_v7, %v6550_v18 }
 0x3ce   :  { %v6423_v56 = vpop.permute.xlu1 %2479  ;;  %v6425_v52 = vpop.permute.xlu0 %2482 }
 0x3cf   :  { %v2687_v8 = vrot.slane %v6423_v56, %v6489_v4  ;;  %v2691_v57 = vrot.slane %v6425_v52, %v6492_v41  ;;  %v2677_v56 = vrot.slane %v6419_v53, %v6531_v60  ;;  %v2628_v52 = vsel %vm2627_vm2, %v2626_v46, %v2621_v21 }
 0x3d0   :  { %v2682_v21 = vrot.slane %v6421_v33, %v6550_v18  ;;  %v2635_v34 = vsel %vm2634_vm4, %v2633_v3, %v2628_v52 }
 0x3d1   :  { %v2692_v59 = vsel %vm2613_vm0, %v2691_v57, %v2687_v8 }
 0x3d2   :  { %v6427_v29 = vpop.permute.xlu1 %2485  ;;  %v6429_v27 = vpop.permute.xlu0 %2488 }
 0x3d3   :  { %v2696_v10 = vrot.slane %v6427_v29, %v6495_v37  ;;  %v2640_v29 = vrot.slane %v6409_v6, %v6531_v60  ;;  %v2701_v40 = vrot.slane %v6429_v27, %v6511_v32  ;;  %v2678_v27 = vsel %vm2641_vm12, %v2677_v56, %v2673_v44 }
 0x3d4   :  { %v2683_v56 = vsel %vm2648_vm3, %v2682_v21, %v2678_v27 }
 0x3d6   :  { %v6431_v20 = vpop.permute.xlu1 %2491  ;;  %v6433_v51 = vpop.permute.xlu0 %2494 }
 0x3d7   :  { %v2706_v46 = vrot.slane %v6431_v20, %v6524_v16  ;;  %v2711_v7 = vrot.slane %v6433_v51, %v6531_v60 }
 0x3da   :  { %v6435_v38 = vpop.permute.xlu1 %2497  ;;  %v6437_v31 = vpop.permute.xlu0 %2500 }
 0x3db   :  { %v2721_v6 = vrot.slane %v6437_v31, %v6489_v4 }
 0x3de   :  { %v6439_v47 = vpop.permute.xlu1 %2503  ;;  %v6441_v48 = vpop.permute.xlu0 %2506 }
 0x3df   :  { %v2725_v5 = vrot.slane %v6439_v47, %v6492_v41  ;;  %v2697_v47 = vsel %vm2620_vm1, %v2696_v10, %v2692_v59  ;;  %v2730_v8 = vrot.slane %v6441_v48, %v6495_v37 }
 0x3e0   :  { %v2702_v1 = vsel %vm2627_vm2, %v2701_v40, %v2697_v47 }
 0x3e1   :  { %v2726_v33 = vsel %vm2613_vm0, %v2725_v5, %v2721_v6  ;;  %v6605_v5 = vsub.s32 %v2929_v30, %v7625_v55 }
 0x3e2   :  { %v6443_v43 = vpop.permute.xlu1 %2509  ;;  %v6445_v54 = vpop.permute.xlu0 %2512  ;;  %v2731_v51 = vsel %vm2620_vm1, %v2730_v8, %v2726_v33 }
 0x3e3   :  { %v2735_v57 = vrot.slane %v6443_v43, %v6511_v32  ;;  %v2642_v43 = vsel %vm2641_vm12, %v2640_v29, %v2635_v34 }
 0x3e4   :  { %v2649_v52 = vsel %vm2648_vm3, %v2647_v35, %v2642_v43 }
 0x3e5   :  { %v2736_v44 = vsel %vm2627_vm2, %v2735_v57, %v2731_v51  ;;  %v6614_v40 = vsel %vm1918_vm13, %v2683_v56, %v2649_v52 }
 0x3e6   :  { %v6447_v62 = vpop.permute.xlu1 %2515  ;;  %v6449_v11 = vpop.permute.xlu0 %2518 }
 0x3ea   :  { %v6451_v39 = vpop.permute.xlu1 %2521 }
 0x3eb   :  { %v6453_v42 = vpop.permute.xlu0 %2524  ;;  %v2755_v20 = vrot.slane %v6451_v39, %v6489_v4  ;;  %v2707_v39 = vsel %vm2634_vm4, %v2706_v46, %v2702_v1 }
 0x3ec   :  { %v2759_v31 = vrot.slane %v6453_v42, %v6492_v41  ;;  %v2716_v42 = vrot.slane %v6435_v38, %v6550_v18  ;;  %v2712_v21 = vsel %vm2641_vm12, %v2711_v7, %v2707_v39 }
 0x3ee   :  { %v6455_v58 = vpop.permute.xlu1 %2527  ;;  %v2760_v29 = vsel %vm2613_vm0, %v2759_v31, %v2755_v20  ;;  %v6625_v6 = vsel %vm2648_vm3, %v2716_v42, %v2712_v21 }
 0x3ef   :  { %v6457_v15 = vpop.permute.xlu0 %2530  ;;  %v2764_v10 = vrot.slane %v6455_v58, %v6495_v37  ;;  %v2740_v58 = vrot.slane %v6445_v54, %v6524_v16 }
 0x3f0   :  { %v2769_v59 = vrot.slane %v6457_v15, %v6511_v32 }
 0x3f1   :  { %v2765_v54 = vsel %vm2620_vm1, %v2764_v10, %v2760_v29  ;;  %v2741_v35 = vsel %vm2634_vm4, %v2740_v58, %v2736_v44 }
 0x3f2   :  { %v6459_v26 = vpop.permute.xlu1 %2533  ;;  %v2770_v33 = vsel %vm2627_vm2, %v2769_v59, %v2765_v54 }
 0x3f3   :  { %v6461_v23 = vpop.permute.xlu0 %2536  ;;  %v2774_v15 = vrot.slane %v6459_v26, %v6524_v16 }
 0x3f6   :  { %v6463_v12 = vpop.permute.xlu1 %2539 }
 0x3f7   :  { %v6465_v49 = vpop.permute.xlu0 %2542  ;;  %v2784_v10 = vrot.slane %v6463_v12, %v6550_v18 }
 0x3f8   :  { %v2789_v34 = vrot.slane %v6465_v49, %v6489_v4 }
 0x3fb   :  { %v6467_v63 = vpop.permute.xlu1 %2545  ;;  %v6469_v13 = vpop.permute.xlu0 %2548 }
 0x3fc   :  { %v2793_v38 = vrot.slane %v6467_v63, %v6492_v41  ;;  %v2745_v63 = vrot.slane %v6447_v62, %v6531_v60  ;;  %v2798_v26 = vrot.slane %v6469_v13, %v6495_v37  ;;  %v2775_v13 = vsel %vm2634_vm4, %v2774_v15, %v2770_v33 }
 0x3fe   :  { %v2794_v62 = vsel %vm2613_vm0, %v2793_v38, %v2789_v34  ;;  %v2746_v31 = vsel %vm2641_vm12, %v2745_v63, %v2741_v35 }
 0x3ff   :  { %v6471_v17 = vpop.permute.xlu1 %2551  ;;  %v6473_v25 = vpop.permute.xlu0 %2554  ;;  %v2799_v43 = vsel %vm2620_vm1, %v2798_v26, %v2794_v62 }
 0x400   :  { %v2803_v57 = vrot.slane %v6471_v17, %v6511_v32 }
 0x403   :  { %v6475_v0 = vpop.permute.xlu1 %2557  ;;  %v6477_v2 = vpop.permute.xlu0 %2560 }
 0x404   :  { %v2813_v56 = vrot.slane %v6475_v0, %v6531_v60  ;;  %v2818_v59 = vrot.slane %v6477_v2, %v6550_v18 }
 0x407   :  { %v6479_v14 = vpop.permute.xlu1 %2563 }
 0x408   :  { %v2823_v27 = vrot.slane %v6479_v14, %v6489_v4 }
 0x40b   :  { %v6483_v45 = vpop.permute.xlu1 %2569  ;;  %v6485_v9 = vpop.permute.xlu0 %2566 }
 0x40c   :  { %v2827_v30 = vrot.slane %v6485_v9, %v6492_v41  ;;  %v2750_v9 = vrot.slane %v6449_v11, %v6550_v18  ;;  %v2832_v49 = vrot.slane %v6483_v45, %v6495_v37  ;;  %v2779_v45 = vrot.slane %v6461_v23, %v6531_v60 }
 0x40d   :  { %v2808_v23 = vrot.slane %v6473_v25, %v6524_v16 }
 0x40e   :  { %v2828_v11 = vsel %vm2613_vm0, %v2827_v30, %v2823_v27  ;;  %v2751_v29 = vsel %vm2648_vm3, %v2750_v9, %v2746_v31  ;;  %v2889_v27 = vsel %vm1920_vm14, %v6625_v6, %v6614_v40 }
 0x40f   :  { %v6498_v50 = vpop.permute.xlu0 %2572  ;;  %v6506_v36 = vpop.permute.xlu1 %2575 }
 0x410   :  { %v2837_v14 = vrot.slane %v6498_v50, %v6511_v32 }
 0x413   :  { %v6517_v19 = vpop.permute.xlu0 %2578  ;;  %v6540_v24 = vpop.permute.xlu1 %2581 }
 0x414   :  { %v2847_v12 = vrot.slane %v6517_v19, %v6531_v60 }
 0x417   :  { %v6542_v61 = vpop.permute.xlu0 %2584 }
 0x41b   :  { %v2588_v22 = vpop.permute.xlu1 %2587  ;;  %v6564_v53 = vpop.permute.xlu0 %2590 }
 0x41c   :  { %v2861_v8 = vrot.slane %v2588_v22, %v6492_v41  ;;  %v2857_v41 = vrot.slane %v6542_v61, %v6489_v4  ;;  %v2866_v17 = vrot.slane %v6564_v53, %v6495_v37  ;;  %v2833_v37 = vsel %vm2620_vm1, %v2832_v49, %v2828_v11 }
 0x41d   :  { %v2804_v53 = vsel %vm2627_vm2, %v2803_v57, %v2799_v43  ;;  %v7721_v43 = vsub.s32 4, %v7625_v55 }
 0x41e   :  { %v2862_v1 = vsel %vm2613_vm0, %v2861_v8, %v2857_v41  ;;  %v2809_v19 = vsel %vm2634_vm4, %v2808_v23, %v2804_v53  ;;  %vm2970_vm0 = vcmask 457728  }
 0x41f   :  { %v6591_v48 = vpop.permute.xlu1 %2593  ;;  %v6593_v3 = vpop.permute.xlu0 %2596  ;;  %v2867_v52 = vsel %vm2620_vm1, %v2866_v17, %v2862_v1  ;;  %v2814_v38 = vsel %vm2641_vm12, %v2813_v56, %v2809_v19  ;;  %v7723_v56 = vsub.s32 6, %v7625_v55  ;;  %vm4738_vm1 = vcmask 162816  }
 0x420   :  { %v2871_v50 = vrot.slane %v6591_v48, %v6511_v32  ;;  %v2842_v32 = vrot.slane %v6506_v36, %v6524_v16  ;;  %v2838_v48 = vsel %vm2627_vm2, %v2837_v14, %v2833_v37  ;;  %v2876_v25 = vrot.slane %v6593_v3, %v6524_v16 }
 0x421   :  { %v2780_v3 = vsel %vm2641_vm12, %v2779_v45, %v2775_v13  ;;  %v2819_v8 = vsel %vm2648_vm3, %v2818_v59, %v2814_v38  ;;  %v7717_v45 = vsub.s32 0, %v7625_v55  ;;  %v7722_v37 = vsub.s32 5, %v7625_v55  ;;  %v7728_v38 = vld [vmem:[#allocation22_spill] sm:$0xff] }
 0x422   :  { %v2872_v58 = vsel %vm2627_vm2, %v2871_v50, %v2867_v52  ;;  %v2843_v21 = vsel %vm2634_vm4, %v2842_v32, %v2838_v48  ;;  %v2785_v34 = vsel %vm2648_vm3, %v2784_v10, %v2780_v3  ;;  %v7719_v50 = vsub.s32 2, %v7625_v55  ;;  %v7725_v52 = vld [vmem:[#allocation61_spill] sm:$0xff] }
 0x423   :  { %v6620_v47 = vpop.permute.xlu1 %2599  ;;  %v6622_v46 = vpop.permute.xlu0 %2602  ;;  %v2877_v63 = vsel %vm2634_vm4, %v2876_v25, %v2872_v58  ;;  %v7724_v48 = vsub.s32 7, %v7625_v55  ;;  %vm4740_vm2 = vcmask 687104  }
 0x424   :  { %v2881_v0 = vrot.slane %v6620_v47, %v6531_v60  ;;  %v2852_v60 = vrot.slane %v6540_v24, %v6550_v18  ;;  %v2848_v47 = vsel %vm2641_vm12, %v2847_v12, %v2843_v21  ;;  %v2886_v2 = vrot.slane %v6622_v46, %v6550_v18 }
 0x425   :  { %v2890_v18 = vsel %vm1922_vm15, %v2751_v29, %v2889_v27 }
 0x426   :  { %v2882_v35 = vsel %vm2641_vm12, %v2881_v0, %v2877_v63  ;;  %v2853_v46 = vsel %vm2648_vm3, %v2852_v60, %v2848_v47  ;;  %v2892_v49 = vsel %vm2891_vm8, %v2785_v34, %v2890_v18 }
 0x427   :  { %v2907_v22 = vpop.permute.xlu1 %2906  ;;  %v2910_v20 = vpop.permute.xlu0 %2909  ;;  %v2887_v57 = vsel %vm2648_vm3, %v2886_v2, %v2882_v35  ;;  %v2893_v40 = vsel %vm1912_vm9, %v2819_v8, %v2892_v49  ;;  %v7730_v35 = vld [vmem:[#allocation53_spill] sm:$0xff]  ;;  %v7733_v49 = vld [vmem:[#allocation54_spill] sm:$0xff]  ;;  %vm4181_vm3 = vcmask 9216  }
 0x428   :  { %v2933_v61 = vrot.slane %v2907_v22, %v6605_v5  ;;  %v2937_v7 = vrot.slane %v2910_v20, %v6605_v5  ;;  %v2894_v41 = vsel %vm1914_vm10, %v2853_v46, %v2893_v40 }
 0x429   :  { %v2895_v20 = vsel %vm1916_vm11, %v2887_v57, %v2894_v41 }
 0x42a   :  { %v2962_v36 = vsel %vm1918_vm13, %v2937_v7, %v2933_v61  ;;  %v7720_v7 = vsub.s32 3, %v7625_v55 }
 0x42b   :  { %v2913_v39 = vpop.permute.xlu1 %2912  ;;  %v2916_v42 = vpop.permute.xlu0 %2915 }
 0x42c   :  { %v2941_v51 = vrot.slane %v2913_v39, %v6605_v5  ;;  %v2945_v44 = vrot.slane %v2916_v42, %v6605_v5 }
 0x42e   :  { %v2963_v16 = vsel %vm1920_vm14, %v2941_v51, %v2962_v36  ;;  %v7726_v51 = vld [vmem:[#allocation58_spill] sm:$0xff] }
 0x42f   :  { %v2919_v54 = vpop.permute.xlu1 %2918  ;;  %v2922_v30 = vpop.permute.xlu0 %2921  ;;  %v2964_v9 = vsel %vm1922_vm15, %v2945_v44, %v2963_v16  ;;  %v7727_v16 = vld [vmem:[#allocation24_spill] sm:$0xff] }
 0x430   :  { %v2949_v15 = vrot.slane %v2919_v54, %v6605_v5  ;;  %v2953_v24 = vrot.slane %v2922_v30, %v6605_v5 }
 0x432   :  { %v2965_v33 = vsel %vm2891_vm8, %v2949_v15, %v2964_v9  ;;  %v7729_v15 = vld [vmem:[#allocation47_spill] sm:$0xff]  ;;  %vm4278_vm8 = vcmask 1041408  }
 0x433   :  { %v2925_v62 = vpop.permute.xlu1 %2924  ;;  %v2928_v26 = vpop.permute.xlu0 %2927  ;;  %v2966_v6 = vsel %vm1912_vm9, %v2953_v24, %v2965_v33  ;;  %vm4679_vm9 = vcmask 556512  }
 0x434   :  { %v2957_v11 = vrot.slane %v2925_v62, %v6605_v5  ;;  %v2961_v14 = vrot.slane %v2928_v26, %v6605_v5  ;;  %v7718_v5 = vsub.s32 1, %v7625_v55  ;;  %v7731_v62 = vld [vmem:[#allocation25_spill] sm:$0xff] }
 0x436   :  { %v2967_v22 = vsel %vm1914_vm10, %v2957_v11, %v2966_v6  ;;  %vm4686_vm10 = vcmask 622112  }
 0x437   :  { %v2968_v31 = vsel %vm1916_vm11, %v2961_v14, %v2967_v22 }
 0x438   :  { %v2971_v13 = vsel %vm2970_vm0, %v2895_v20, %v2968_v31  ;;  %v7735_v20 = vld [vmem:[#allocation69_spill] sm:$0xff] }
 0x439   :  { %v2976_v17 = vrot.slane %v2971_v13, %v7717_v45  ;;  %v3011_v1 = vrot.slane %v2971_v13, %v7718_v5  ;;  %v3046_v61 = vrot.slane %v2971_v13, %v7719_v50  ;;  %v3081_v10 = vrot.slane %v2971_v13, %v7720_v7 }
 0x43a   :  { %v3116_v23 = vrot.slane %v2971_v13, %v7721_v43  ;;  %v3151_v53 = vrot.slane %v2971_v13, %v7722_v37  ;;  %v3186_v32 = vrot.slane %v2971_v13, %v7723_v56  ;;  %v3221_v39 = vrot.slane %v2971_v13, %v7724_v48  ;;  %v7736_v13 = vld [vmem:[#allocation14_spill] sm:$0xff] }
 0x43b   :  { %2986 = vbcast.lane.b32.xlu0 %v2976_v17, 272  ;;  %2978 = vbcast.lane.b32.xlu1 %v2976_v17, 256 }
 0x43f   :  { %3002 = vbcast.lane.b32.xlu0 %v2976_v17, 304  ;;  %2994 = vbcast.lane.b32.xlu1 %v2976_v17, 288 }
 0x443   :  { %3021 = vbcast.lane.b32.xlu0 %v3011_v1, 272  ;;  %3013 = vbcast.lane.b32.xlu1 %v3011_v1, 256 }
 0x447   :  { %3037 = vbcast.lane.b32.xlu0 %v3011_v1, 304  ;;  %3029 = vbcast.lane.b32.xlu1 %v3011_v1, 288 }
 0x44b   :  { %3056 = vbcast.lane.b32.xlu0 %v3046_v61, 272  ;;  %3048 = vbcast.lane.b32.xlu1 %v3046_v61, 256 }
 0x44f   :  { %3072 = vbcast.lane.b32.xlu0 %v3046_v61, 304  ;;  %3064 = vbcast.lane.b32.xlu1 %v3046_v61, 288 }
 0x453   :  { %3091 = vbcast.lane.b32.xlu0 %v3081_v10, 272  ;;  %3083 = vbcast.lane.b32.xlu1 %v3081_v10, 256 }
 0x457   :  { %3107 = vbcast.lane.b32.xlu0 %v3081_v10, 304  ;;  %3099 = vbcast.lane.b32.xlu1 %v3081_v10, 288  ;;  %v7737_v10 = vld [vmem:[#allocation37_spill] sm:$0xff] }
 0x45b   :  { %3126 = vbcast.lane.b32.xlu0 %v3116_v23, 272  ;;  %3118 = vbcast.lane.b32.xlu1 %v3116_v23, 256 }
 0x45f   :  { %3142 = vbcast.lane.b32.xlu0 %v3116_v23, 304  ;;  %3134 = vbcast.lane.b32.xlu1 %v3116_v23, 288  ;;  %v7738_v23 = vld [vmem:[#allocation52_spill] sm:$0xff] }
 0x463   :  { %3161 = vbcast.lane.b32.xlu0 %v3151_v53, 272  ;;  %3153 = vbcast.lane.b32.xlu1 %v3151_v53, 256 }
 0x467   :  { %3177 = vbcast.lane.b32.xlu0 %v3151_v53, 304  ;;  %3169 = vbcast.lane.b32.xlu1 %v3151_v53, 288 }
 0x46b   :  { %3196 = vbcast.lane.b32.xlu0 %v3186_v32, 272  ;;  %3188 = vbcast.lane.b32.xlu1 %v3186_v32, 256 }
 0x46f   :  { %3212 = vbcast.lane.b32.xlu0 %v3186_v32, 304  ;;  %3204 = vbcast.lane.b32.xlu1 %v3186_v32, 288 }
 0x473   :  { %3231 = vbcast.lane.b32.xlu0 %v3221_v39, 272  ;;  %3223 = vbcast.lane.b32.xlu1 %v3221_v39, 256 }
 0x477   :  { %3247 = vbcast.lane.b32.xlu0 %v3221_v39, 304  ;;  %3239 = vbcast.lane.b32.xlu1 %v3221_v39, 288 }
 0x4ad   :  { %v2987_v42 = vpop.permute.xlu0 %2986  ;;  %v2979_v12 = vpop.permute.xlu1 %2978 }
 0x4ae   :  { %v6739_v25 = vmax.f32 %v7725_v52, %v2987_v42  ;;  %v6742_v58 = vmax.f32 %v7726_v51, %v2979_v12  ;;  %v7739_v12 = vld [vmem:[#allocation42_spill] sm:$0xff]  ;;  %v7740_v51 = vld [vmem:[#allocation15_spill] sm:$0xff] }
 0x4b0   :  { %v4758_v0 = vrot.slane %v6742_v58, 10  ;;  %3414 = vperm.xlu1 %4829, %v6742_v58  }
 0x4b1   :  { %v6748_v44 = vpop.permute.xlu0 %3002  ;;  %v6750_v29 = vpop.permute.xlu1 %2994 }
 0x4b2   :  { %3417 = vperm.xlu0 %4828, %v4758_v0  }
 0x4b5   :  { %v3022_v19 = vpop.permute.xlu0 %3021  ;;  %v3014_v59 = vpop.permute.xlu1 %3013 }
 0x4b6   :  { %v6753_v3 = vmax.f32 %v7727_v16, %v3022_v19  ;;  %v6756_v60 = vmax.f32 %v7728_v38, %v3014_v59 }
 0x4b8   :  { %v4762_v21 = vrot.slane %v6756_v60, 10  ;;  %3420 = vperm.xlu1 %4829, %v6756_v60  }
 0x4b9   :  { %v6762_v30 = vpop.permute.xlu0 %3037  ;;  %v6764_v47 = vpop.permute.xlu1 %3029 }
 0x4ba   :  { %3423 = vperm.xlu0 %4828, %v4762_v21  }
 0x4bd   :  { %v3057_v63 = vpop.permute.xlu0 %3056  ;;  %v3049_v2 = vpop.permute.xlu1 %3048 }
 0x4be   :  { %v6767_v34 = vmax.f32 %v7729_v15, %v3057_v63  ;;  %v6770_v9 = vmax.f32 %v7730_v35, %v3049_v2  ;;  %v7741_v2 = vld [vmem:[#allocation39_spill] sm:$0xff] }
 0x4bf   :  { %v7742_v35 = vld [vmem:[#allocation11_spill] sm:$0xff] }
 0x4c0   :  { %v4766_v24 = vrot.slane %v6770_v9, 10  ;;  %3426 = vperm.xlu1 %4829, %v6770_v9  }
 0x4c1   :  { %v6776_v8 = vpop.permute.xlu0 %3072  ;;  %v6778_v33 = vpop.permute.xlu1 %3064 }
 0x4c2   :  { %3429 = vperm.xlu0 %4828, %v4766_v24  }
 0x4c5   :  { %v3092_v18 = vpop.permute.xlu0 %3091  ;;  %v3084_v46 = vpop.permute.xlu1 %3083 }
 0x4c6   :  { %v6781_v26 = vmax.f32 %v7731_v62, %v3092_v18  ;;  %v6784_v57 = vmax.f32 %v7733_v49, %v3084_v46  ;;  %v4759_v62 = vrot.slane %v6739_v25, 10  ;;  %v4763_v49 = vrot.slane %v6753_v3, 10 }
 0x4c8   :  { %7732 = vst [vmem:[#allocation16_spill] sm:$0xff] %v6781_v26  ;;  %7734 = vst [vmem:[#allocation36_spill] sm:$0xff] %v6784_v57  ;;  %v4770_v11 = vrot.slane %v6784_v57, 10  ;;  %3432 = vperm.xlu1 %4829, %v6784_v57  }
 0x4c9   :  { %v6790_v40 = vpop.permute.xlu0 %3107  ;;  %v6792_v6 = vpop.permute.xlu1 %3099 }
 0x4ca   :  { %3435 = vperm.xlu0 %4828, %v4770_v11   ;;  %v4767_v11 = vrot.slane %v6767_v34, 10 }
 0x4cd   :  { %v3127_v41 = vpop.permute.xlu0 %3126  ;;  %v3119_v22 = vpop.permute.xlu1 %3118 }
 0x4ce   :  { %v6795_v31 = vmax.f32 %v7735_v20, %v3127_v41  ;;  %v6798_v45 = vmax.f32 %v7736_v13, %v3119_v22  ;;  %v4771_v41 = vrot.slane %v6781_v26, 10 }
 0x4d0   :  { %v4774_v17 = vrot.slane %v6798_v45, 10  ;;  %3438 = vperm.xlu1 %4829, %v6798_v45   ;;  %v4775_v22 = vrot.slane %v6795_v31, 10 }
 0x4d1   :  { %v6804_v1 = vpop.permute.xlu0 %3142  ;;  %v6806_v50 = vpop.permute.xlu1 %3134 }
 0x4d2   :  { %3441 = vperm.xlu0 %4828, %v4774_v17   ;;  %v7743_v17 = vld [vmem:[#allocation64_spill] sm:$0xff] }
 0x4d5   :  { %v3162_v61 = vpop.permute.xlu0 %3161  ;;  %v3154_v7 = vpop.permute.xlu1 %3153 }
 0x4d6   :  { %v6809_v43 = vmax.f32 %v7737_v10, %v3162_v61  ;;  %v6812_v37 = vmax.f32 %v7738_v23, %v3154_v7  ;;  %v6858_v61 = vmax.f32 %v7743_v17, %v6750_v29  ;;  %v7744_v23 = vld [vmem:[#allocation32_spill] sm:$0xff] }
 0x4d8   :  { %v4778_v53 = vrot.slane %v6812_v37, 10  ;;  %3444 = vperm.xlu1 %4829, %v6812_v37   ;;  %v4779_v20 = vrot.slane %v6809_v43, 10  ;;  %v4760_v10 = vrot.slane %v6858_v61, 10 }
 0x4d9   :  { %v6818_v32 = vpop.permute.xlu0 %3177  ;;  %v3170_v48 = vpop.permute.xlu1 %3169 }
 0x4da   :  { %3447 = vperm.xlu0 %4828, %v4778_v53   ;;  %v6865_v53 = vmax.f32 %v7744_v23, %v6764_v47 }
 0x4dd   :  { %v3197_v39 = vpop.permute.xlu0 %3196  ;;  %v3189_v42 = vpop.permute.xlu1 %3188 }
 0x4de   :  { %v6821_v52 = vmax.f32 %v7739_v12, %v3197_v39  ;;  %v6824_v0 = vmax.f32 %v7740_v51, %v3189_v42  ;;  %v4764_v39 = vrot.slane %v6865_v53, 10  ;;  %v7745_v42 = vld [vmem:[#allocation56_spill] sm:$0xff]  ;;  %v7746_v51 = vld [vmem:[#allocation33_spill] sm:$0xff] }
 0x4df   :  { %v6871_v29 = vmax.f32 %v7745_v42, %v6778_v33 }
 0x4e0   :  { %v4782_v19 = vrot.slane %v6824_v0, 10  ;;  %3450 = vperm.xlu1 %4829, %v6824_v0   ;;  %v4783_v13 = vrot.slane %v6821_v52, 10 }
 0x4e1   :  { %v6830_v16 = vpop.permute.xlu0 %3212  ;;  %v3205_v38 = vpop.permute.xlu1 %3204  ;;  %v4768_v12 = vrot.slane %v6871_v29, 10 }
 0x4e2   :  { %3453 = vperm.xlu0 %4828, %v4782_v19   ;;  %v6877_v19 = vmax.f32 %v7746_v51, %v6792_v6 }
 0x4e4   :  { %7747 = vst [vmem:[#allocation21_spill] sm:$0xff] %v6877_v19  ;;  %v4772_v47 = vrot.slane %v6877_v19, 10 }
 0x4e5   :  { %v3232_v21 = vpop.permute.xlu0 %3231  ;;  %v3224_v63 = vpop.permute.xlu1 %3223 }
 0x4e6   :  { %v6833_v15 = vmax.f32 %v7741_v2, %v3232_v21  ;;  %v6836_v24 = vmax.f32 %v7742_v35, %v3224_v63  ;;  %v7748_v21 = vld [vmem:[#allocation71_spill] sm:$0xff]  ;;  %v7749_v2 = vld [vmem:[#allocation26_spill] sm:$0xff] }
 0x4e7   :  { %v6883_v63 = vmax.f32 %v7748_v21, %v6806_v50  ;;  %v6888_v35 = vmax.f32 %v7749_v2, %v3170_v48  ;;  %v7753_v48 = vld [vmem:[#allocation62_spill] sm:$0xff] }
 0x4e8   :  { %v4786_v18 = vrot.slane %v6836_v24, 10  ;;  %3456 = vperm.xlu1 %4829, %v6836_v24   ;;  %v4787_v7 = vrot.slane %v6833_v15, 10 }
 0x4e9   :  { %v4776_v33 = vrot.slane %v6883_v63, 10  ;;  %v4780_v6 = vrot.slane %v6888_v35, 10  ;;  %v3240_v50 = vpop.permute.xlu1 %3239 }
 0x4ea   :  { %3459 = vperm.xlu0 %4828, %v4786_v18   ;;  %v7750_v18 = vld [vmem:[#allocation72_spill] sm:$0xff] }
 0x4ec   :  { %3462 = vperm.xlu1 %4829, %v6739_v25  }
 0x4ee   :  { %3465 = vperm.xlu0 %4828, %v4759_v62   ;;  %v6893_v62 = vmax.f32 %v7750_v18, %v3205_v38  ;;  %v7761_v18 = vld [vmem:[#allocation60_spill] sm:$0xff] }
 0x4f0   :  { %3468 = vperm.xlu1 %4829, %v6753_v3  }
 0x4f2   :  { %3471 = vperm.xlu0 %4828, %v4763_v49   ;;  %v4784_v49 = vrot.slane %v6893_v62, 10 }
 0x4f4   :  { %3474 = vperm.xlu1 %4829, %v6767_v34  }
 0x4f6   :  { %3477 = vperm.xlu0 %4828, %v4767_v11   ;;  %v7751_v11 = vld [vmem:[#allocation59_spill] sm:$0xff] }
 0x4f8   :  { %3480 = vperm.xlu1 %4829, %v6781_v26  }
 0x4fa   :  { %3483 = vperm.xlu0 %4828, %v4771_v41   ;;  %v6898_v41 = vmax.f32 %v7751_v11, %v3240_v50 }
 0x4fc   :  { %3486 = vperm.xlu1 %4829, %v6795_v31   ;;  %7752 = vst [vmem:[#allocation29_spill] sm:$0xff] %v6898_v41 }
 0x4fe   :  { %3489 = vperm.xlu0 %4828, %v4775_v22   ;;  %v6903_v22 = vmax.f32 %v7753_v48, %v6748_v44 }
 0x500   :  { %3492 = vperm.xlu1 %4829, %v6809_v43   ;;  %v4761_v38 = vrot.slane %v6903_v22, 10 }
 0x502   :  { %3495 = vperm.xlu0 %4828, %v4779_v20   ;;  %v4788_v20 = vrot.slane %v6898_v41, 10 }
 0x504   :  { %3498 = vperm.xlu1 %4829, %v6821_v52  }
 0x506   :  { %3501 = vperm.xlu0 %4828, %v4783_v13   ;;  %v7754_v13 = vld [vmem:[#allocation40_spill] sm:$0xff] }
 0x507   :  { %v6910_v17 = vmax.f32 %v7754_v13, %v6762_v30 }
 0x508   :  { %3504 = vperm.xlu1 %4829, %v6833_v15  }
 0x50a   :  { %3507 = vperm.xlu0 %4828, %v4787_v7   ;;  %v4765_v7 = vrot.slane %v6910_v17, 10 }
 0x50c   :  { %3510 = vperm.xlu1 %4829, %v6858_v61  }
 0x50e   :  { %3513 = vperm.xlu0 %4828, %v4760_v10   ;;  %v7755_v10 = vld [vmem:[#allocation65_spill] sm:$0xff] }
 0x50f   :  { %v6916_v44 = vmax.f32 %v7755_v10, %v6776_v8 }
 0x510   :  { %3516 = vperm.xlu1 %4829, %v6865_v53  }
 0x511   :  { %v4769_v23 = vrot.slane %v6916_v44, 10 }
 0x512   :  { %3519 = vperm.xlu0 %4828, %v4764_v39   ;;  %v7756_v39 = vld [vmem:[#allocation41_spill] sm:$0xff] }
 0x513   :  { %v6922_v42 = vmax.f32 %v7756_v39, %v6790_v40 }
 0x514   :  { %3522 = vperm.xlu1 %4829, %v6871_v29  }
 0x515   :  { %7757 = vst [vmem:[#allocation13_spill] sm:$0xff] %v6922_v42  ;;  %v4773_v30 = vrot.slane %v6922_v42, 10 }
 0x516   :  { %3525 = vperm.xlu0 %4828, %v4768_v12   ;;  %v7758_v12 = vld [vmem:[#allocation70_spill] sm:$0xff] }
 0x517   :  { %v6928_v51 = vmax.f32 %v7758_v12, %v6804_v1  ;;  %v3248_v1 = vpop.permute.xlu0 %3247 }
 0x518   :  { %3528 = vperm.xlu1 %4829, %v6877_v19   ;;  %v6945_v50 = vmax.f32 %v7761_v18, %v3248_v1 }
 0x519   :  { %v4777_v8 = vrot.slane %v6928_v51, 10 }
 0x51a   :  { %3531 = vperm.xlu0 %4828, %v4772_v47   ;;  %v7759_v47 = vld [vmem:[#allocation34_spill] sm:$0xff]  ;;  %7762 = vst [vmem:[#allocation30_spill] sm:$0xff] %v6945_v50 }
 0x51b   :  { %v6934_v21 = vmax.f32 %v7759_v47, %v6818_v32  ;;  %v4789_v32 = vrot.slane %v6945_v50, 10 }
 0x51c   :  { %3534 = vperm.xlu1 %4829, %v6883_v63  }
 0x51d   :  { %v4781_v40 = vrot.slane %v6934_v21, 10 }
 0x51e   :  { %3537 = vperm.xlu0 %4828, %v4776_v33   ;;  %v7760_v33 = vld [vmem:[#allocation57_spill] sm:$0xff] }
 0x51f   :  { %v6940_v2 = vmax.f32 %v7760_v33, %v6830_v16 }
 0x520   :  { %3540 = vperm.xlu1 %4829, %v6888_v35  }
 0x522   :  { %3543 = vperm.xlu0 %4828, %v4780_v6   ;;  %v4785_v6 = vrot.slane %v6940_v2, 10 }
 0x524   :  { %3546 = vperm.xlu1 %4829, %v6893_v62  }
 0x526   :  { %3549 = vperm.xlu0 %4828, %v4784_v49  }
 0x528   :  { %3552 = vperm.xlu1 %4829, %v6898_v41  }
 0x52a   :  { %3555 = vperm.xlu0 %4828, %v4788_v20  }
 0x52c   :  { %3558 = vperm.xlu1 %4829, %v6903_v22  }
 0x52e   :  { %3561 = vperm.xlu0 %4828, %v4761_v38  }
 0x52f   :  { %v3415_v49 = vpop.permute.xlu1 %3414 }
 0x530   :  { %3564 = vperm.xlu1 %4829, %v6910_v17   ;;  %v3608_v12 = vrot.slane %v3415_v49, %v6489_v4 }
 0x531   :  { %v3418_v16 = vpop.permute.xlu0 %3417 }
 0x532   :  { %3567 = vperm.xlu0 %4828, %v4765_v7   ;;  %v3612_v39 = vrot.slane %v3418_v16, %v6489_v4 }
 0x534   :  { %3570 = vperm.xlu1 %4829, %v6916_v44   ;;  %v3863_v47 = vcombine.low %v3608_v12, %v3612_v39 }
 0x536   :  { %3573 = vperm.xlu0 %4828, %v4769_v23  }
 0x537   :  { %v6950_v11 = vpop.permute.xlu1 %3420 }
 0x538   :  { %3576 = vperm.xlu1 %4829, %v6922_v42  }
 0x539   :  { %v6952_v48 = vpop.permute.xlu0 %3423 }
 0x53a   :  { %3579 = vperm.xlu0 %4828, %v4773_v30  }
 0x53c   :  { %3582 = vperm.xlu1 %4829, %v6928_v51  }
 0x53e   :  { %3585 = vperm.xlu0 %4828, %v4777_v8  }
 0x53f   :  { %v6954_v20 = vpop.permute.xlu1 %3426 }
 0x540   :  { %3588 = vperm.xlu1 %4829, %v6934_v21  }
 0x541   :  { %v6956_v38 = vpop.permute.xlu0 %3429 }
 0x542   :  { %3591 = vperm.xlu0 %4828, %v4781_v40  }
 0x544   :  { %3594 = vperm.xlu1 %4829, %v6940_v2  }
 0x546   :  { %3597 = vperm.xlu0 %4828, %v4785_v6   ;;  %v7763_v6 = vld [vmem:[#allocation12_spill] sm:$0xff] }
 0x547   :  { %v6958_v13 = vpop.permute.xlu1 %3432  ;;  %v3870_v18 = vrot.slane %v3863_v47, %v7763_v6 }
 0x548   :  { %3600 = vperm.xlu1 %4829, %v6945_v50  }
 0x549   :  { %v6960_v7 = vpop.permute.xlu0 %3435  ;;  %v4182_v16 = vsel %vm4181_vm3, %v3870_v18, -inf }
 0x54a   :  { %3603 = vperm.xlu0 %4828, %v4789_v32  }
 0x54f   :  { %v6962_v10 = vpop.permute.xlu1 %3438 }
 0x551   :  { %v6964_v23 = vpop.permute.xlu0 %3441 }
 0x557   :  { %v6967_v30 = vpop.permute.xlu1 %3444 }
 0x559   :  { %v6970_v8 = vpop.permute.xlu0 %3447 }
 0x55f   :  { %v6972_v40 = vpop.permute.xlu1 %3450 }
 0x561   :  { %v6974_v33 = vpop.permute.xlu0 %3453 }
 0x567   :  { %v6976_v1 = vpop.permute.xlu1 %3456 }
 0x569   :  { %v6979_v32 = vpop.permute.xlu0 %3459 }
 0x56b   :  { %v3463_v14 = vpop.permute.xlu1 %3462 }
 0x56c   :  { %4183 = vmax.xlane.f32.xlu1 %v4182_v16  ;;  %v3672_v49 = vrot.slane %v3463_v14, %v6489_v4 }
 0x56d   :  { %v3466_v59 = vpop.permute.xlu0 %3465 }
 0x56e   :  { %v3676_v39 = vrot.slane %v3466_v59, %v6489_v4 }
 0x56f   :  { %v3469_v12 = vpop.permute.xlu1 %3468 }
 0x570   :  { %v3943_v56 = vcombine.low %v3672_v49, %v3676_v39  ;;  %v3680_v46 = vrot.slane %v3469_v12, %v6489_v4 }
 0x571   :  { %v3472_v36 = vpop.permute.xlu0 %3471 }
 0x572   :  { %v3684_v27 = vrot.slane %v3472_v36, %v6489_v4  ;;  %v3950_v47 = vrot.slane %v3943_v56, %v7763_v6 }
 0x573   :  { %v3475_v54 = vpop.permute.xlu1 %3474 }
 0x574   :  { %v6987_v5 = vcombine.low %v3680_v46, %v3684_v27  ;;  %v4185_v18 = vsel %vm4181_vm3, %v3950_v47, -inf  ;;  %v3688_v14 = vrot.slane %v3475_v54, %v6489_v4 }
 0x575   :  { %v3478_v16 = vpop.permute.xlu0 %3477  ;;  %4186 = vmax.xlane.f32.xlu0 %v4185_v18 }
 0x576   :  { %v3692_v59 = vrot.slane %v3478_v16, %v6489_v4 }
 0x577   :  { %v3481_v55 = vpop.permute.xlu1 %3480 }
 0x578   :  { %v6992_v49 = vcombine.low %v3688_v14, %v3692_v59  ;;  %v3696_v12 = vrot.slane %v3481_v55, %v6489_v4 }
 0x579   :  { %v3484_v39 = vpop.permute.xlu0 %3483 }
 0x57a   :  { %v3700_v36 = vrot.slane %v3484_v39, %v6489_v4 }
 0x57b   :  { %v3487_v56 = vpop.permute.xlu1 %3486 }
 0x57c   :  { %v6996_v28 = vcombine.low %v3696_v12, %v3700_v36  ;;  %v3704_v46 = vrot.slane %v3487_v56, %v6489_v4 }
 0x57d   :  { %v3490_v27 = vpop.permute.xlu0 %3489 }
 0x57e   :  { %v3708_v47 = vrot.slane %v3490_v27, %v6489_v4 }
 0x57f   :  { %v3493_v18 = vpop.permute.xlu1 %3492 }
 0x580   :  { %v7000_v54 = vcombine.low %v3704_v46, %v3708_v47  ;;  %v3712_v14 = vrot.slane %v3493_v18, %v6489_v4  ;;  %v3620_v18 = vrot.slane %v6952_v48, %v6489_v4 }
 0x581   :  { %v3496_v16 = vpop.permute.xlu0 %3495 }
 0x582   :  { %v3716_v59 = vrot.slane %v3496_v16, %v6489_v4 }
 0x583   :  { %v3499_v41 = vpop.permute.xlu1 %3498 }
 0x584   :  { %v7004_v55 = vcombine.low %v3712_v14, %v3716_v59  ;;  %v3720_v12 = vrot.slane %v3499_v41, %v6489_v4  ;;  %v3616_v41 = vrot.slane %v6950_v11, %v6489_v4 }
 0x585   :  { %v3502_v39 = vpop.permute.xlu0 %3501 }
 0x586   :  { %v3724_v36 = vrot.slane %v3502_v39, %v6489_v4 }
 0x587   :  { %v3505_v50 = vpop.permute.xlu1 %3504 }
 0x588   :  { %v7008_v56 = vcombine.low %v3720_v12, %v3724_v36  ;;  %v3728_v46 = vrot.slane %v3505_v50, %v6489_v4  ;;  %v3873_v36 = vcombine.low %v3616_v41, %v3620_v18  ;;  %v3624_v18 = vrot.slane %v6954_v20, %v6489_v4 }
 0x589   :  { %v3508_v27 = vpop.permute.xlu0 %3507 }
 0x58a   :  { %v3732_v47 = vrot.slane %v3508_v27, %v6489_v4 }
 0x58b   :  { %v3511_v19 = vpop.permute.xlu1 %3510 }
 0x58c   :  { %v7014_v16 = vcombine.low %v3728_v46, %v3732_v47  ;;  %v3736_v59 = vrot.slane %v3511_v19, %v6489_v4  ;;  %v3628_v47 = vrot.slane %v6956_v38, %v6489_v4  ;;  %v3880_v19 = vrot.slane %v3873_v36, %v7763_v6 }
 0x58d   :  { %v3514_v14 = vpop.permute.xlu0 %3513  ;;  %v3636_v36 = vrot.slane %v6960_v7, %v6489_v4 }
 0x58e   :  { %v3740_v39 = vrot.slane %v3514_v14, %v6489_v4 }
 0x58f   :  { %v3517_v12 = vpop.permute.xlu1 %3516 }
 0x590   :  { %v4023_v42 = vcombine.low %v3736_v59, %v3740_v39  ;;  %v3744_v27 = vrot.slane %v3517_v12, %v6489_v4  ;;  %v3883_v59 = vcombine.low %v3624_v18, %v3628_v47 }
 0x591   :  { %v3520_v50 = vpop.permute.xlu0 %3519 }
 0x592   :  { %v3748_v26 = vrot.slane %v3520_v50, %v6489_v4  ;;  %v4030_v48 = vrot.slane %v4023_v42, %v7763_v6  ;;  %v4194_v42 = vsel %vm4181_vm3, %v3880_v19, -inf  ;;  %v3890_v20 = vrot.slane %v3883_v59, %v7763_v6 }
 0x593   :  { %v3523_v46 = vpop.permute.xlu1 %3522  ;;  %v3644_v59 = vrot.slane %v6964_v23, %v6489_v4 }
 0x594   :  { %v4033_v57 = vcombine.low %v3744_v27, %v3748_v26  ;;  %v4188_v11 = vsel %vm4181_vm3, %v4030_v48, -inf  ;;  %v3752_v26 = vrot.slane %v3523_v46, %v6489_v4  ;;  %v4206_v46 = vsel %vm4181_vm3, %v3890_v20, -inf }
 0x595   :  { %v3526_v14 = vpop.permute.xlu0 %3525  ;;  %4189 = vmax.xlane.f32.xlu0 %v4188_v11  ;;  %v3632_v11 = vrot.slane %v6958_v13, %v6489_v4 }
 0x596   :  { %v3756_v39 = vrot.slane %v3526_v14, %v6489_v4  ;;  %v4040_v12 = vrot.slane %v4033_v57, %v7763_v6 }
 0x597   :  { %v3529_v41 = vpop.permute.xlu1 %3528  ;;  %v3893_v57 = vcombine.low %v3632_v11, %v3636_v36 }
 0x598   :  { %v4043_v27 = vcombine.low %v3752_v26, %v3756_v39  ;;  %v4200_v48 = vsel %vm4181_vm3, %v4040_v12, -inf  ;;  %v3760_v7 = vrot.slane %v3529_v41, %v6489_v4 }
 0x599   :  { %v3532_v50 = vpop.permute.xlu0 %3531  ;;  %4195 = vmax.xlane.f32.xlu0 %v4194_v42  ;;  %v3900_v26 = vrot.slane %v3893_v57, %v7763_v6  ;;  %v3652_v57 = vrot.slane %v6970_v8, %v6489_v4 }
 0x59a   :  { %v3764_v14 = vrot.slane %v3532_v50, %v6489_v4  ;;  %v4050_v18 = vrot.slane %v4043_v27, %v7763_v6  ;;  %v3640_v50 = vrot.slane %v6962_v10, %v6489_v4 }
 0x59b   :  { %v3535_v38 = vpop.permute.xlu1 %3534  ;;  %v4218_v20 = vsel %vm4181_vm3, %v3900_v26, -inf }
 0x59c   :  { %v4053_v12 = vcombine.low %v3760_v7, %v3764_v14  ;;  %v4212_v13 = vsel %vm4181_vm3, %v4050_v18, -inf  ;;  %v3768_v14 = vrot.slane %v3535_v38, %v6489_v4 }
 0x59d   :  { %v3538_v47 = vpop.permute.xlu0 %3537  ;;  %4201 = vmax.xlane.f32.xlu0 %v4200_v48  ;;  %v3903_v48 = vcombine.low %v3640_v50, %v3644_v59 }
 0x59e   :  { %v3772_v41 = vrot.slane %v3538_v47, %v6489_v4  ;;  %v4060_v11 = vrot.slane %v4053_v12, %v7763_v6  ;;  %v3648_v47 = vrot.slane %v6967_v30, %v6489_v4 }
 0x59f   :  { %v3541_v19 = vpop.permute.xlu1 %3540  ;;  %v3910_v7 = vrot.slane %v3903_v48, %v7763_v6 }
 0x5a0   :  { %v4063_v18 = vcombine.low %v3768_v14, %v3772_v41  ;;  %v4224_v10 = vsel %vm4181_vm3, %v4060_v11, -inf  ;;  %v3913_v26 = vcombine.low %v3648_v47, %v3652_v57  ;;  %v3776_v48 = vrot.slane %v3541_v19, %v6489_v4 }
 0x5a1   :  { %v3544_v42 = vpop.permute.xlu0 %3543  ;;  %4207 = vmax.xlane.f32.xlu0 %v4206_v46  ;;  %v4230_v41 = vsel %vm4181_vm3, %v3910_v7, -inf  ;;  %v3660_v57 = vrot.slane %v6974_v33, %v6489_v4 }
 0x5a2   :  { %v3780_v50 = vrot.slane %v3544_v42, %v6489_v4  ;;  %v3920_v42 = vrot.slane %v3913_v26, %v7763_v6 }
 0x5a3   :  { %v7043_v39 = vpop.permute.xlu1 %3546 }
 0x5a4   :  { %v4073_v7 = vcombine.low %v3776_v48, %v3780_v50  ;;  %v4242_v33 = vsel %vm4181_vm3, %v3920_v42, -inf  ;;  %v3664_v42 = vrot.slane %v6976_v1, %v6489_v4 }
 0x5a5   :  { %v3550_v36 = vpop.permute.xlu0 %3549  ;;  %4213 = vmax.xlane.f32.xlu0 %v4212_v13 }
 0x5a7   :  { %v7051_v27 = vpop.permute.xlu1 %3552 }
 0x5a8   :  { %v3792_v1 = vrot.slane %v7051_v27, %v6489_v4 }
 0x5a9   :  { %v7056_v23 = vpop.permute.xlu0 %3555  ;;  %4219 = vmax.xlane.f32.xlu0 %v4218_v20  ;;  %v4070_v20 = vrot.slane %v4063_v18, %v7763_v6 }
 0x5ab   :  { %v3559_v46 = vpop.permute.xlu1 %3558  ;;  %v4236_v47 = vsel %vm4181_vm3, %v4070_v20, -inf }
 0x5ac   :  { %v3800_v12 = vrot.slane %v3559_v46, %v6489_v4 }
 0x5ad   :  { %v3562_v59 = vpop.permute.xlu0 %3561  ;;  %4225 = vmax.xlane.f32.xlu0 %v4224_v10  ;;  %v3960_v10 = vrot.slane %v6987_v5, %v7763_v6  ;;  %v3788_v5 = vrot.slane %v3550_v36, %v6489_v4  ;;  %v3970_v36 = vrot.slane %v6992_v49, %v7763_v6  ;;  %v3796_v49 = vrot.slane %v7056_v23, %v6489_v4 }
 0x5ae   :  { %v3804_v13 = vrot.slane %v3562_v59, %v6489_v4  ;;  %v3656_v59 = vrot.slane %v6972_v40, %v6489_v4  ;;  %v3784_v40 = vrot.slane %v7043_v39, %v6489_v4 }
 0x5af   :  { %v3565_v38 = vpop.permute.xlu1 %3564  ;;  %v4197_v26 = vsel %vm4181_vm3, %v3960_v10, -inf }
 0x5b0   :  { %v4103_v8 = vcombine.low %v3800_v12, %v3804_v13  ;;  %v3808_v30 = vrot.slane %v3565_v38, %v6489_v4  ;;  %v3923_v13 = vcombine.low %v3656_v59, %v3660_v57 }
 0x5b1   :  { %v3568_v11 = vpop.permute.xlu0 %3567  ;;  %4231 = vmax.xlane.f32.xlu0 %v4230_v41 }
 0x5b2   :  { %v3812_v14 = vrot.slane %v3568_v11, %v6489_v4  ;;  %v4110_v46 = vrot.slane %v4103_v8, %v7763_v6  ;;  %v4080_v8 = vrot.slane %v4073_v7, %v7763_v6  ;;  %v3668_v11 = vrot.slane %v6979_v32, %v6489_v4 }
 0x5b3   :  { %v3571_v38 = vpop.permute.xlu1 %3570  ;;  %v3930_v48 = vrot.slane %v3923_v13, %v7763_v6 }
 0x5b4   :  { %v4113_v18 = vcombine.low %v3808_v30, %v3812_v14  ;;  %v4191_v19 = vsel %vm4181_vm3, %v4110_v46, -inf  ;;  %v3816_v20 = vrot.slane %v3571_v38, %v6489_v4  ;;  %v4083_v30 = vcombine.low %v3784_v40, %v3788_v5 }
 0x5b5   :  { %v3574_v12 = vpop.permute.xlu0 %3573  ;;  %4237 = vmax.xlane.f32.xlu0 %v4236_v47  ;;  %4192 = vmax.xlane.f32.xlu1 %v4191_v19  ;;  %v4248_v46 = vsel %vm4181_vm3, %v4080_v8, -inf  ;;  %v3933_v10 = vcombine.low %v3664_v42, %v3668_v11  ;;  %v4254_v32 = vsel %vm4181_vm3, %v3930_v48, -inf  ;;  %v3980_v38 = vrot.slane %v6996_v28, %v7763_v6 }
 0x5b6   :  { %v3820_v50 = vrot.slane %v3574_v12, %v6489_v4  ;;  %v4120_v41 = vrot.slane %v4113_v18, %v7763_v6  ;;  %v4209_v18 = vsel %vm4181_vm3, %v3970_v36, -inf  ;;  %v4090_v19 = vrot.slane %v4083_v30, %v7763_v6 }
 0x5b7   :  { %v3577_v7 = vpop.permute.xlu1 %3576  ;;  %v3940_v13 = vrot.slane %v3933_v10, %v7763_v6  ;;  %v4221_v40 = vsel %vm4181_vm3, %v3980_v38, -inf }
 0x5b8   :  { %v4123_v14 = vcombine.low %v3816_v20, %v3820_v50  ;;  %v4203_v57 = vsel %vm4181_vm3, %v4120_v41, -inf  ;;  %v3824_v12 = vrot.slane %v3577_v7, %v6489_v4 }
 0x5b9   :  { %4243 = vmax.xlane.f32.xlu0 %v4242_v33  ;;  %4198 = vmax.xlane.f32.xlu1 %v4197_v26  ;;  %v3580_v39 = vpop.permute.xlu0 %3579  ;;  %v4093_v33 = vcombine.low %v3792_v1, %v3796_v49  ;;  %v4260_v26 = vsel %vm4181_vm3, %v4090_v19, -inf  ;;  %v4266_v41 = vsel %vm4181_vm3, %v3940_v13, -inf  ;;  %v4000_v49 = vrot.slane %v7004_v55, %v7763_v6 }
 0x5ba   :  { %v3828_v47 = vrot.slane %v3580_v39, %v6489_v4  ;;  %v4130_v59 = vrot.slane %v4123_v14, %v7763_v6  ;;  %v3990_v14 = vrot.slane %v7000_v54, %v7763_v6 }
 0x5bb   :  { %v3583_v8 = vpop.permute.xlu1 %3582  ;;  %v4100_v20 = vrot.slane %v4093_v33, %v7763_v6  ;;  %v4010_v33 = vrot.slane %v7008_v56, %v7763_v6  ;;  %v4020_v56 = vrot.slane %v7014_v16, %v7763_v6 }
 0x5bc   :  { %v4133_v23 = vcombine.low %v3824_v12, %v3828_v47  ;;  %v4215_v5 = vsel %vm4181_vm3, %v4130_v59, -inf  ;;  %v3832_v11 = vrot.slane %v3583_v8, %v6489_v4  ;;  %v4233_v39 = vsel %vm4181_vm3, %v3990_v14, -inf }
 0x5bd   :  { %4249 = vmax.xlane.f32.xlu0 %v4248_v46  ;;  %4204 = vmax.xlane.f32.xlu1 %v4203_v57  ;;  %v3586_v50 = vpop.permute.xlu0 %3585  ;;  %v4272_v36 = vsel %vm4181_vm3, %v4100_v20, -inf  ;;  %v4245_v59 = vsel %vm4181_vm3, %v4000_v49, -inf  ;;  %v7765_v20 = vcombine.low %v6756_v60, %v6753_v3  ;;  %v4592_v3 = vcombine.low %v6871_v29, %v6916_v44 }
 0x5be   :  { %v3836_v27 = vrot.slane %v3586_v50, %v6489_v4  ;;  %v4140_v28 = vrot.slane %v4133_v23, %v7763_v6  ;;  %v7767_v60 = vcombine.low %v6836_v24, %v6833_v15  ;;  %v4598_v15 = vcombine.low %v6888_v35, %v6934_v21  ;;  %v7771_v24 = vld [vmem:[#allocation36_spill] sm:$0xff] }
 0x5bf   :  { %v3589_v57 = vpop.permute.xlu1 %3588 }
 0x5c0   :  { %v4143_v48 = vcombine.low %v3832_v11, %v3836_v27  ;;  %v4227_v30 = vsel %vm4181_vm3, %v4140_v28, -inf  ;;  %v3840_v7 = vrot.slane %v3589_v57, %v6489_v4  ;;  %v4269_v28 = vsel %vm4181_vm3, %v4020_v56, -inf }
 0x5c1   :  { %4255 = vmax.xlane.f32.xlu0 %v4254_v32  ;;  %4210 = vmax.xlane.f32.xlu1 %v4209_v18  ;;  %v3592_v46 = vpop.permute.xlu0 %3591 }
 0x5c2   :  { %v3844_v42 = vrot.slane %v3592_v46, %v6489_v4  ;;  %v4150_v10 = vrot.slane %v4143_v48, %v7763_v6  ;;  %v4590_v48 = vcombine.low %v6865_v53, %v6910_v17  ;;  %v7768_v53 = vcombine.low %v6742_v58, %v6739_v25 }
 0x5c3   :  { %v3595_v47 = vpop.permute.xlu1 %3594  ;;  %v4588_v17 = vcombine.low %v6858_v61, %v6903_v22  ;;  %v7770_v25 = vcombine.low %v6824_v0, %v6821_v52  ;;  %v4600_v58 = vcombine.low %v6893_v62, %v6940_v2  ;;  %v7772_v61 = vld [vmem:[#allocation16_spill] sm:$0xff] }
 0x5c4   :  { %v4153_v32 = vcombine.low %v3840_v7, %v3844_v42  ;;  %v4239_v18 = vsel %vm4181_vm3, %v4150_v10, -inf  ;;  %v3848_v12 = vrot.slane %v3595_v47, %v6489_v4  ;;  %v7773_v29 = vcombine.low %v7771_v24, %v7772_v61 }
 0x5c5   :  { %4261 = vmax.xlane.f32.xlu0 %v4260_v26  ;;  %4216 = vmax.xlane.f32.xlu1 %v4215_v5  ;;  %v3598_v54 = vpop.permute.xlu0 %3597  ;;  %v4257_v5 = vsel %vm4181_vm3, %v4010_v33, -inf }
 0x5c6   :  { %v3852_v19 = vrot.slane %v3598_v54, %v6489_v4  ;;  %v4160_v1 = vrot.slane %v4153_v32, %v7763_v6 }
 0x5c7   :  { %v3601_v55 = vpop.permute.xlu1 %3600 }
 0x5c8   :  { %v4163_v13 = vcombine.low %v3848_v12, %v3852_v19  ;;  %v4251_v38 = vsel %vm4181_vm3, %v4160_v1, -inf  ;;  %v3856_v8 = vrot.slane %v3601_v55, %v6489_v4 }
 0x5c9   :  { %4267 = vmax.xlane.f32.xlu0 %v4266_v41  ;;  %4222 = vmax.xlane.f32.xlu1 %v4221_v40  ;;  %v3604_v23 = vpop.permute.xlu0 %3603  ;;  %v7764_v41 = vcombine.low %v6798_v45, %v6795_v31  ;;  %v7766_v45 = vcombine.low %v6770_v9, %v6767_v34  ;;  %v4596_v34 = vcombine.low %v6883_v63, %v6928_v51 }
 0x5ca   :  { %v3860_v26 = vrot.slane %v3604_v23, %v6489_v4  ;;  %v4170_v50 = vrot.slane %v4163_v13, %v7763_v6  ;;  %v7769_v9 = vcombine.low %v6812_v37, %v6809_v43 }
 0x5cc   :  { %v4173_v27 = vcombine.low %v3856_v8, %v3860_v26  ;;  %v4263_v40 = vsel %vm4181_vm3, %v4170_v50, -inf }
 0x5cd   :  { %4273 = vmax.xlane.f32.xlu0 %v4272_v36  ;;  %4228 = vmax.xlane.f32.xlu1 %v4227_v30 }
 0x5ce   :  { %v4180_v11 = vrot.slane %v4173_v27, %v7763_v6 }
 0x5d0   :  { %v4275_v31 = vsel %vm4181_vm3, %v4180_v11, -inf }
 0x5d1   :  { %4234 = vmax.xlane.f32.xlu1 %v4233_v39 }
 0x5d5   :  { %4240 = vmax.xlane.f32.xlu1 %v4239_v18 }
 0x5d9   :  { %4246 = vmax.xlane.f32.xlu1 %v4245_v59 }
 0x5dd   :  { %4252 = vmax.xlane.f32.xlu1 %v4251_v38 }
 0x5e1   :  { %4258 = vmax.xlane.f32.xlu1 %v4257_v5 }
 0x5e3   :  { %4628 = vperm.xlu0 %4828, %v7764_v41  }
 0x5e5   :  { %4264 = vmax.xlane.f32.xlu1 %v4263_v40 }
 0x5e7   :  { %4610 = vperm.xlu0 %4828, %v7765_v20  }
 0x5e9   :  { %4270 = vmax.xlane.f32.xlu1 %v4269_v28 }
 0x5eb   :  { %4613 = vperm.xlu0 %4828, %v4590_v48   ;;  %v7774_v48 = vld [vmem:[#allocation10_spill] sm:$0xff] }
 0x5ed   :  { %4276 = vmax.xlane.f32.xlu1 %v4275_v31 }
 0x5ef   :  { %4616 = vperm.xlu0 %4828, %v7766_v45  }
 0x5f3   :  { %4619 = vperm.xlu0 %4828, %v4592_v3  }
 0x5f7   :  { %4646 = vperm.xlu0 %4828, %v7767_v60  }
 0x5f9   :  { %v4184_v37 = vpop.xlane.xlu1 %4183 }
 0x5fa   :  { %v4279_v51 = vsel %vm4278_vm8, %v4184_v37, -inf }
 0x5fe   :  { %4604 = vperm.xlu1 %4829, %v7768_v53  }
 0x602   :  { %4607 = vperm.xlu1 %4829, %v4588_v17   ;;  %v4187_v63 = vpop.xlane.xlu0 %4186 }
 0x603   :  { %v4280_v35 = vsel %vm4278_vm8, %v4187_v63, -inf }
 0x604   :  { %v4281_v52 = vmax.f32 %v4279_v51, %v4280_v35 }
 0x606   :  { %4631 = vperm.xlu1 %4829, %v4596_v34   ;;  %v4327_v21 = vsel %vm4278_vm8, %v4281_v52, -inf }
 0x607   :  { %v4328_v62 = vrot.slane %v4327_v21, 4 }
 0x609   :  { %v4329_v6 = vmax.f32 %v4327_v21, %v4328_v62 }
 0x60a   :  { %4634 = vperm.xlu1 %4829, %v7769_v9  }
 0x60b   :  { %v4330_v16 = vrot.slane %v4329_v6, 2 }
 0x60d   :  { %v4331_v42 = vmax.f32 %v4329_v6, %v4330_v16 }
 0x60e   :  { %4637 = vperm.xlu1 %4829, %v4598_v15  }
 0x60f   :  { %v4332_v19 = vrot.slane %v4331_v42, 1 }
 0x611   :  { %v4333_v40 = vmax.f32 %v4331_v42, %v4332_v19 }
 0x612   :  { %4640 = vperm.xlu1 %4829, %v7770_v25  }
 0x616   :  { %4643 = vperm.xlu1 %4829, %v4600_v58  }
 0x61a   :  { %4622 = vperm.xlu1 %4829, %v7773_v29  }
 0x622   :  { %v4190_v22 = vpop.xlane.xlu0 %4189 }
 0x623   :  { %v4282_v14 = vsel %vm4278_vm8, %v4190_v22, -inf }
 0x626   :  { %v4196_v43 = vpop.xlane.xlu0 %4195 }
 0x627   :  { %v4285_v7 = vsel %vm4278_vm8, %v4196_v43, -inf }
 0x62a   :  { %v4202_v44 = vpop.xlane.xlu0 %4201 }
 0x62b   :  { %v4288_v12 = vsel %vm4278_vm8, %v4202_v44, -inf }
 0x62e   :  { %v4208_v0 = vpop.xlane.xlu0 %4207 }
 0x62f   :  { %v4291_v11 = vsel %vm4278_vm8, %v4208_v0, -inf }
 0x632   :  { %v4214_v2 = vpop.xlane.xlu0 %4213 }
 0x633   :  { %v4294_v61 = vsel %vm4278_vm8, %v4214_v2, -inf }
 0x636   :  { %v4220_v36 = vpop.xlane.xlu0 %4219 }
 0x637   :  { %v4297_v21 = vsel %vm4278_vm8, %v4220_v36, -inf }
 0x63a   :  { %v4226_v49 = vpop.xlane.xlu0 %4225 }
 0x63e   :  { %v4232_v50 = vpop.xlane.xlu0 %4231 }
 0x642   :  { %v4193_v30 = vpop.xlane.xlu1 %4192  ;;  %v4238_v29 = vpop.xlane.xlu0 %4237 }
 0x643   :  { %v4283_v46 = vsel %vm4278_vm8, %v4193_v30, -inf }
 0x644   :  { %v4284_v57 = vmax.f32 %v4282_v14, %v4283_v46 }
 0x646   :  { %v4334_v39 = vsel %vm4278_vm8, %v4284_v57, -inf  ;;  %v4199_v10 = vpop.xlane.xlu1 %4198  ;;  %v4487_v23 = vcombine.low %v4281_v52, %v4284_v57  ;;  %v4244_v46 = vpop.xlane.xlu0 %4243 }
 0x647   :  { %v4335_v32 = vrot.slane %v4334_v39, 4  ;;  %v4286_v18 = vsel %vm4278_vm8, %v4199_v10, -inf  ;;  %v4300_v10 = vsel %vm4278_vm8, %v4226_v49, -inf }
 0x648   :  { %v4287_v54 = vmax.f32 %v4285_v7, %v4286_v18  ;;  %v4495_v31 = vrot.slane %v4487_v23, %v7774_v48  ;;  %v4303_v23 = vsel %vm4278_vm8, %v4232_v50, -inf }
 0x649   :  { %v4336_v47 = vmax.f32 %v4334_v39, %v4335_v32 }
 0x64a   :  { %v4341_v59 = vsel %vm4278_vm8, %v4287_v54, -inf  ;;  %v4205_v1 = vpop.xlane.xlu1 %4204 }
 0x64b   :  { %v4337_v13 = vrot.slane %v4336_v47, 2  ;;  %v4342_v38 = vrot.slane %v4341_v59, 4  ;;  %v4289_v33 = vsel %vm4278_vm8, %v4205_v1, -inf }
 0x64c   :  { %v4290_v55 = vmax.f32 %v4288_v12, %v4289_v33 }
 0x64d   :  { %v4338_v26 = vmax.f32 %v4336_v47, %v4337_v13  ;;  %v4343_v5 = vmax.f32 %v4341_v59, %v4342_v38 }
 0x64e   :  { %v4348_v8 = vsel %vm4278_vm8, %v4290_v55, -inf  ;;  %v4488_v41 = vcombine.low %v4287_v54, %v4290_v55  ;;  %v4211_v27 = vpop.xlane.xlu1 %4210 }
 0x64f   :  { %v4339_v56 = vrot.slane %v4338_v26, 1  ;;  %v4344_v20 = vrot.slane %v4343_v5, 2  ;;  %v4349_v28 = vrot.slane %v4348_v8, 4  ;;  %v4292_v3 = vsel %vm4278_vm8, %v4211_v27, -inf }
 0x650   :  { %v4502_v45 = vrot.slane %v4488_v41, %v7774_v48  ;;  %v4293_v34 = vmax.f32 %v4291_v11, %v4292_v3  ;;  %v4306_v3 = vsel %vm4278_vm8, %v4238_v29, -inf }
 0x651   :  { %v4340_v60 = vmax.f32 %v4338_v26, %v4339_v56  ;;  %v4345_v53 = vmax.f32 %v4343_v5, %v4344_v20  ;;  %v4350_v17 = vmax.f32 %v4348_v8, %v4349_v28  ;;  %v4250_v5 = vpop.xlane.xlu0 %4249 }
 0x652   :  { %v4217_v9 = vpop.xlane.xlu1 %4216  ;;  %v4503_v15 = vcombine.low %v4495_v31, %v4502_v45  ;;  %v4355_v24 = vsel %vm4278_vm8, %v4293_v34, -inf }
 0x653   :  { %v4439_v25 = vmax.f32 %v4333_v40, %v4340_v60  ;;  %v4351_v58 = vrot.slane %v4350_v17, 2  ;;  %v4356_v63 = vrot.slane %v4355_v24, 4  ;;  %v4295_v22 = vsel %vm4278_vm8, %v4217_v9, -inf }
 0x654   :  { %4556 = vperm.xlu0 %4828, %v4503_v15   ;;  %v4346_v43 = vrot.slane %v4345_v53, 1  ;;  %v4296_v35 = vmax.f32 %v4294_v61, %v4295_v22 }
 0x655   :  { %v4352_v37 = vmax.f32 %v4350_v17, %v4351_v58  ;;  %v4357_v44 = vmax.f32 %v4355_v24, %v4356_v63  ;;  %v4256_v61 = vpop.xlane.xlu0 %4255 }
 0x656   :  { %v4223_v51 = vpop.xlane.xlu1 %4222  ;;  %v4362_v0 = vsel %vm4278_vm8, %v4296_v35, -inf  ;;  %v4347_v2 = vmax.f32 %v4345_v53, %v4346_v43  ;;  %v4504_v59 = vcombine.low %v4293_v34, %v4296_v35 }
 0x657   :  { %v4353_v52 = vrot.slane %v4352_v37, 1  ;;  %v4358_v62 = vrot.slane %v4357_v44, 2  ;;  %v4363_v6 = vrot.slane %v4362_v0, 4  ;;  %v4298_v16 = vsel %vm4278_vm8, %v4223_v51, -inf }
 0x658   :  { %v4299_v14 = vmax.f32 %v4297_v21, %v4298_v16  ;;  %v4512_v40 = vrot.slane %v4504_v59, %v7774_v48 }
 0x659   :  { %v4354_v30 = vmax.f32 %v4352_v37, %v4353_v52  ;;  %v4359_v57 = vmax.f32 %v4357_v44, %v4358_v62  ;;  %v4364_v42 = vmax.f32 %v4362_v0, %v4363_v6  ;;  %v4309_v44 = vsel %vm4278_vm8, %v4244_v46, -inf }
 0x65a   :  { %v4229_v39 = vpop.xlane.xlu1 %4228  ;;  %v4369_v32 = vsel %vm4278_vm8, %v4299_v14, -inf }
 0x65b   :  { %v4440_v7 = vmax.f32 %v4347_v2, %v4354_v30  ;;  %v4301_v18 = vsel %vm4278_vm8, %v4229_v39, -inf  ;;  %v4365_v54 = vrot.slane %v4364_v42, 2  ;;  %v4370_v36 = vrot.slane %v4369_v32, 4 }
 0x65c   :  { %v4302_v47 = vmax.f32 %v4300_v10, %v4301_v18  ;;  %v4360_v1 = vrot.slane %v4359_v57, 1 }
 0x65d   :  { %v4455_v19 = vsel %vm1918_vm13, %v4440_v7, %v4439_v25  ;;  %v4366_v12 = vmax.f32 %v4364_v42, %v4365_v54  ;;  %v4371_v13 = vmax.f32 %v4369_v32, %v4370_v36  ;;  %v4262_v42 = vpop.xlane.xlu0 %4261 }
 0x65e   :  { %v4376_v38 = vsel %vm4278_vm8, %v4302_v47, -inf  ;;  %v4235_v33 = vpop.xlane.xlu1 %4234  ;;  %v4505_v55 = vcombine.low %v4299_v14, %v4302_v47  ;;  %v4361_v28 = vmax.f32 %v4359_v57, %v4360_v1  ;;  %v4312_v57 = vsel %vm4278_vm8, %v4250_v5, -inf }
 0x65f   :  { %v4377_v49 = vrot.slane %v4376_v38, 4  ;;  %v4304_v26 = vsel %vm4278_vm8, %v4235_v33, -inf  ;;  %v4367_v8 = vrot.slane %v4366_v12, 1  ;;  %v4372_v41 = vrot.slane %v4371_v13, 2 }
 0x660   :  { %v7215_v27 = vmax.f32 %v4303_v23, %v4304_v26  ;;  %v4519_v20 = vrot.slane %v4505_v55, %v7774_v48  ;;  %v4318_v5 = vsel %vm4278_vm8, %v4262_v42, -inf }
 0x661   :  { %v4378_v56 = vmax.f32 %v4376_v38, %v4377_v49  ;;  %v4368_v11 = vmax.f32 %v4366_v12, %v4367_v8  ;;  %v4373_v31 = vmax.f32 %v4371_v13, %v4372_v41  ;;  %v4315_v12 = vsel %vm4278_vm8, %v4256_v61, -inf  ;;  %v4268_v8 = vpop.xlane.xlu0 %4267 }
 0x662   :  { %v4383_v50 = vsel %vm4278_vm8, %v7215_v27, -inf  ;;  %v4241_v45 = vpop.xlane.xlu1 %4240  ;;  %v4520_v25 = vcombine.low %v4512_v40, %v4519_v20 }
 0x663   :  { %v4379_v60 = vrot.slane %v4378_v56, 2  ;;  %v4384_v53 = vrot.slane %v4383_v50, 4  ;;  %v4307_v17 = vsel %vm4278_vm8, %v4241_v45, -inf  ;;  %v4441_v34 = vmax.f32 %v4361_v28, %v4368_v11 }
 0x664   :  { %v4374_v9 = vrot.slane %v4373_v31, 1  ;;  %v4308_v15 = vmax.f32 %v4306_v3, %v4307_v17  ;;  %4559 = vperm.xlu0 %4828, %v4520_v25  }
 0x665   :  { %v4380_v58 = vmax.f32 %v4378_v56, %v4379_v60  ;;  %v4385_v24 = vmax.f32 %v4383_v50, %v4384_v53  ;;  %v4456_v63 = vsel %vm1920_vm14, %v4441_v34, %v4455_v19 }
 0x666   :  { %v4390_v22 = vsel %vm4278_vm8, %v4308_v15, -inf  ;;  %v4247_v43 = vpop.xlane.xlu1 %4246  ;;  %v4375_v51 = vmax.f32 %v4373_v31, %v4374_v9  ;;  %v4521_v19 = vcombine.low %v7215_v27, %v4308_v15  ;;  %v4321_v15 = vsel %vm4278_vm8, %v4268_v8, -inf  ;;  %v7777_v8 = vld [vmem:[#allocation30_spill] sm:$0xff] }
 0x667   :  { %v4381_v37 = vrot.slane %v4380_v58, 1  ;;  %v4386_v35 = vrot.slane %v4385_v24, 2  ;;  %v4391_v29 = vrot.slane %v4390_v22, 4  ;;  %v4310_v52 = vsel %vm4278_vm8, %v4247_v43, -inf  ;;  %v7775_v43 = vld [vmem:[#allocation13_spill] sm:$0xff] }
 0x668   :  { %v4311_v6 = vmax.f32 %v4309_v44, %v4310_v52  ;;  %v4529_v20 = vrot.slane %v4521_v19, %v7774_v48 }
 0x669   :  { %v4382_v0 = vmax.f32 %v4380_v58, %v4381_v37  ;;  %v4387_v21 = vmax.f32 %v4385_v24, %v4386_v35  ;;  %v4392_v62 = vmax.f32 %v4390_v22, %v4391_v29  ;;  %v4274_v24 = vpop.xlane.xlu0 %4273  ;;  %v7776_v37 = vld [vmem:[#allocation21_spill] sm:$0xff] }
 0x66a   :  { %v4253_v16 = vpop.xlane.xlu1 %4252  ;;  %v4397_v14 = vsel %vm4278_vm8, %v4311_v6, -inf  ;;  %v4594_v35 = vcombine.low %v7776_v37, %v7775_v43 }
 0x66b   :  { %v4442_v2 = vmax.f32 %v4375_v51, %v4382_v0  ;;  %v4393_v30 = vrot.slane %v4392_v62, 2  ;;  %v4398_v39 = vrot.slane %v4397_v14, 4  ;;  %v4313_v10 = vsel %vm4278_vm8, %v4253_v16, -inf }
 0x66c   :  { %v4388_v7 = vrot.slane %v4387_v21, 1  ;;  %v4314_v32 = vmax.f32 %v4312_v57, %v4313_v10 }
 0x66d   :  { %v4394_v46 = vmax.f32 %v4392_v62, %v4393_v30  ;;  %v7231_v18 = vsel %vm1922_vm15, %v4442_v2, %v4456_v63  ;;  %v4399_v54 = vmax.f32 %v4397_v14, %v4398_v39  ;;  %v4324_v62 = vsel %vm4278_vm8, %v4274_v24, -inf }
 0x66e   :  { %v4259_v36 = vpop.xlane.xlu1 %4258  ;;  %v4404_v59 = vsel %vm4278_vm8, %v4314_v32, -inf  ;;  %v4522_v1 = vcombine.low %v4311_v6, %v4314_v32  ;;  %v4389_v23 = vmax.f32 %v4387_v21, %v4388_v7 }
 0x66f   :  { %v4395_v47 = vrot.slane %v4394_v46, 1  ;;  %v4400_v13 = vrot.slane %v4399_v54, 2  ;;  %v4405_v38 = vrot.slane %v4404_v59, 4  ;;  %v4316_v33 = vsel %vm4278_vm8, %v4259_v36, -inf }
 0x670   :  { %v4536_v55 = vrot.slane %v4522_v1, %v7774_v48  ;;  %v4317_v26 = vmax.f32 %v4315_v12, %v4316_v33 }
 0x671   :  { %v4396_v49 = vmax.f32 %v4394_v46, %v4395_v47  ;;  %v4401_v41 = vmax.f32 %v4399_v54, %v4400_v13  ;;  %v4406_v40 = vmax.f32 %v4404_v59, %v4405_v38 }
 0x672   :  { %v4265_v27 = vpop.xlane.xlu1 %4264  ;;  %v4411_v28 = vsel %vm4278_vm8, %v4317_v26, -inf  ;;  %v4537_v3 = vcombine.low %v4529_v20, %v4536_v55 }
 0x673   :  { %v4443_v56 = vmax.f32 %v4389_v23, %v4396_v49  ;;  %v4319_v11 = vsel %vm4278_vm8, %v4265_v27, -inf  ;;  %v4407_v31 = vrot.slane %v4406_v40, 2  ;;  %v4412_v50 = vrot.slane %v4411_v28, 4 }
 0x674   :  { %v4320_v45 = vmax.f32 %v4318_v5, %v4319_v11  ;;  %v4402_v60 = vrot.slane %v4401_v41, 1  ;;  %4562 = vperm.xlu1 %4829, %v4537_v3   ;;  %v4464_v11 = vrot.slane %v7231_v18, %v6489_v4 }
 0x675   :  { %v4408_v53 = vmax.f32 %v4406_v40, %v4407_v31  ;;  %v4413_v17 = vmax.f32 %v4411_v28, %v4412_v50 }
 0x676   :  { %v4418_v34 = vsel %vm4278_vm8, %v4320_v45, -inf  ;;  %v4271_v9 = vpop.xlane.xlu1 %4270  ;;  %v4403_v44 = vmax.f32 %v4401_v41, %v4402_v60  ;;  %v4538_v14 = vcombine.low %v4317_v26, %v4320_v45  ;;  %v7778_v41 = vld [vmem:[#allocation29_spill] sm:$0xff]  ;;  %v4629_v60 = vpop.permute.xlu0 %4628 }
 0x677   :  { %v4419_v25 = vrot.slane %v4418_v34, 4  ;;  %v4322_v58 = vsel %vm4278_vm8, %v4271_v9, -inf  ;;  %v4409_v61 = vrot.slane %v4408_v53, 1  ;;  %v4414_v63 = vrot.slane %v4413_v17, 2 }
 0x678   :  { %v4323_v22 = vmax.f32 %v4321_v15, %v4322_v58  ;;  %4625 = vperm.xlu1 %4829, %v4594_v35   ;;  %v4546_v19 = vrot.slane %v4538_v14, %v7774_v48  ;;  %v4602_v40 = vcombine.low %v7778_v41, %v7777_v8 }
 0x679   :  { %v4420_v29 = vmax.f32 %v4418_v34, %v4419_v25  ;;  %v4410_v51 = vmax.f32 %v4408_v53, %v4409_v61  ;;  %v4415_v52 = vmax.f32 %v4413_v17, %v4414_v63 }
 0x67a   :  { %v4425_v0 = vsel %vm4278_vm8, %v4323_v22, -inf  ;;  %v4277_v21 = vpop.xlane.xlu1 %4276  ;;  %v4611_v17 = vpop.permute.xlu0 %4610 }
 0x67b   :  { %v4421_v6 = vrot.slane %v4420_v29, 2  ;;  %v4426_v16 = vrot.slane %v4425_v0, 4  ;;  %v4325_v2 = vsel %vm4278_vm8, %v4277_v21, -inf  ;;  %v4444_v30 = vmax.f32 %v4403_v44, %v4410_v51  ;;  %v7781_v44 = vld [vmem:[#allocation68_spill] sm:$0xff] }
 0x67c   :  { %v4326_v57 = vmax.f32 %v4324_v62, %v4325_v2  ;;  %v4416_v42 = vrot.slane %v4415_v52, 1  ;;  %v4663_v51 = vrot.slane %v4611_v17, %v7781_v44 }
 0x67d   :  { %v4422_v39 = vmax.f32 %v4420_v29, %v4421_v6  ;;  %v4427_v10 = vmax.f32 %v4425_v0, %v4426_v16  ;;  %v4458_v7 = vsel %vm1918_vm13, %v4444_v30, %v4443_v56 }
 0x67e   :  { %v4432_v46 = vsel %vm4278_vm8, %v4326_v57, -inf  ;;  %v4539_v32 = vcombine.low %v4323_v22, %v4326_v57  ;;  %v4417_v1 = vmax.f32 %v4415_v52, %v4416_v42  ;;  %v4605_v45 = vpop.permute.xlu1 %4604  ;;  %v4614_v9 = vpop.permute.xlu0 %4613  ;;  %v7779_v22 = vld [vmem:[#allocation66_spill] sm:$0xff]  ;;  %v7782_v52 = vld [vmem:[#allocation49_spill] sm:$0xff]  ;;  %v7783_v57 = vld [vmem:[#allocation67_spill] sm:$0xff] }
 0x67f   :  { %v4423_v54 = vrot.slane %v4422_v39, 1  ;;  %v4428_v36 = vrot.slane %v4427_v10, 2  ;;  %v4433_v47 = vrot.slane %v4432_v46, 4  ;;  %v4681_v0 = vadd.s32 4294967228, %v7782_v52 }
 0x680   :  { %v4553_v59 = vrot.slane %v4539_v32, %v7774_v48  ;;  %v4688_v6 = vadd.s32 4294967220, %v7782_v52  ;;  %v4668_v42 = vrot.slane %v4614_v9, %v7783_v57 }
 0x681   :  { %v4424_v12 = vmax.f32 %v4422_v39, %v4423_v54  ;;  %v4429_v13 = vmax.f32 %v4427_v10, %v4428_v36  ;;  %v4434_v38 = vmax.f32 %v4432_v46, %v4433_v47  ;;  %v7784_v10 = vld [vmem:[#allocation9_spill] sm:$0xff]  ;;  %v7785_v46 = vld [vmem:[#allocation63_spill] sm:$0xff] }
 0x682   :  { %v4554_v33 = vcombine.low %v4546_v19, %v4553_v59  ;;  %v4608_v3 = vpop.permute.xlu1 %4607  ;;  %v4617_v25 = vpop.permute.xlu0 %4616  ;;  %v7786_v47 = vld [vmem:[#allocation43_spill] sm:$0xff]  ;;  %v4691_v59 = vsub.s32 %v4688_v6, %v7784_v10 }
 0x683   :  { %v4445_v23 = vmax.f32 %v4417_v1, %v4424_v12  ;;  %v4435_v49 = vrot.slane %v4434_v38, 2  ;;  %v4430_v26 = vrot.slane %v4429_v13, 1  ;;  %v4658_v18 = vrot.slane %v4608_v3, %v7779_v22 }
 0x684   :  { %4565 = vperm.xlu0 %4828, %v4554_v33   ;;  %v4673_v1 = vrot.slane %v4617_v25, %v7785_v46 }
 0x685   :  { %v4459_v55 = vsel %vm1920_vm14, %v4445_v23, %v4458_v7  ;;  %v4436_v5 = vmax.f32 %v4434_v38, %v4435_v49  ;;  %v4431_v56 = vmax.f32 %v4429_v13, %v4430_v26  ;;  %v4684_v7 = vsub.s32 %v4681_v0, %v7784_v10  ;;  %v7787_v13 = vld [vmem:[#allocation46_spill] sm:$0xff] }
 0x686   :  { %v4632_v53 = vpop.permute.xlu1 %4631  ;;  %v4620_v24 = vpop.permute.xlu0 %4619  ;;  %vm4693_vm14 = vcmask 687712  }
 0x687   :  { %v4437_v27 = vrot.slane %v4436_v5, 1  ;;  %v4702_v62 = vrot.slane %v4632_v53, %v7779_v22 }
 0x688   :  { %4649 = vperm.xlu0 %4828, %v4602_v40  }
 0x689   :  { %v4438_v20 = vmax.f32 %v4436_v5, %v4437_v27 }
 0x68a   :  { %v4635_v34 = vpop.permute.xlu1 %4634  ;;  %v4647_v63 = vpop.permute.xlu0 %4646 }
 0x68b   :  { %v4446_v48 = vmax.f32 %v4431_v56, %v4438_v20  ;;  %v4707_v2 = vrot.slane %v4635_v34, %v7781_v44  ;;  %v4678_v56 = vrot.slane %v4620_v24, %v7786_v47 }
 0x68d   :  { %v4460_v28 = vsel %vm1922_vm15, %v4446_v48, %v4459_v55  ;;  %v7788_v55 = vld [vmem:[#allocation45_spill] sm:$0xff]  ;;  %vm4736_vm15 = vcmask 31744  }
 0x68e   :  { %v4468_v31 = vrot.slane %v4460_v28, %v6489_v4  ;;  %v4638_v15 = vpop.permute.xlu1 %4637  ;;  %v7780_v4 = vld [vmem:[#allocation44_spill] sm:$0xff] }
 0x68f   :  { %v4654_v37 = vrot.slane %v4605_v45, %v7780_v4  ;;  %v4698_v14 = vrot.slane %v4629_v60, %v7780_v4  ;;  %v4712_v39 = vrot.slane %v4638_v15, %v7783_v57 }
 0x690   :  { %v7262_v50 = vsel %vm1918_vm13, %v4468_v31, %v4464_v11  ;;  %v4727_v11 = vrot.slane %v4647_v63, %v4684_v7 }
 0x691   :  { %v4659_v29 = vsel %vm1616_vm5, %v4658_v18, %v4654_v37  ;;  %v4703_v36 = vsel %vm1616_vm5, %v4702_v62, %v4698_v14  ;;  %vm7789_vm5 = vcmask 490912  }
 0x692   :  { %v4641_v58 = vpop.permute.xlu1 %4640  ;;  %v4664_v16 = vsel %vm1623_vm6, %v4663_v51, %v4659_v29  ;;  %v4708_v12 = vsel %vm1623_vm6, %v4707_v2, %v4703_v36  ;;  %vm7790_vm11 = vmmov %vm7789_vm5  ;;  %vm7791_vm6 = vcmask 162912  }
 0x693   :  { %v4717_v32 = vrot.slane %v4641_v58, %v7785_v46  ;;  %v4669_v54 = vsel %vm1630_vm7, %v4668_v42, %v4664_v16  ;;  %v4713_v49 = vsel %vm1630_vm7, %v4712_v39, %v4708_v12  ;;  %vm7792_vm7 = vmmov %vm7791_vm6 }
 0x694   :  { %v4674_v41 = vsel %vm7790_vm11, %v4673_v1, %v4669_v54 }
 0x695   :  { %v4718_v8 = vsel %vm7789_vm5, %v4717_v32, %v4713_v49  ;;  %v4680_v3 = vsel %vm4679_vm9, %v4678_v56, %v4674_v41 }
 0x696   :  { %v4644_v61 = vpop.permute.xlu1 %4643 }
 0x697   :  { %v4722_v19 = vrot.slane %v4644_v61, %v7786_v47 }
 0x699   :  { %v4723_v20 = vsel %vm4679_vm9, %v4722_v19, %v4718_v8 }
 0x69a   :  { %v4623_v43 = vpop.permute.xlu1 %4622  ;;  %v4728_v34 = vsel %vm4686_vm10, %v4727_v11, %v4723_v20 }
 0x69b   :  { %v4685_v40 = vrot.slane %v4623_v43, %v4684_v7 }
 0x69d   :  { %v4687_v17 = vsel %vm4686_vm10, %v4685_v40, %v4680_v3 }
 0x6d3   :  { %v4557_v35 = vpop.permute.xlu0 %4556 }
 0x6d4   :  { %v4570_v27 = vrot.slane %v4557_v35, %v7788_v55 }
 0x6e3   :  { %v4560_v30 = vpop.permute.xlu0 %4559 }
 0x6e4   :  { %v4574_v38 = vrot.slane %v4560_v30, %v7787_v13 }
 0x6e6   :  { %v4575_v31 = vsel %vm7792_vm7, %v4574_v38, %v4570_v27 }
 0x6f3   :  { %v4563_v21 = vpop.permute.xlu1 %4562 }
 0x6f4   :  { %v4579_v26 = vrot.slane %v4563_v21, %v7788_v55 }
 0x6f7   :  { %v4626_v33 = vpop.permute.xlu1 %4625 }
 0x6f8   :  { %v4692_v48 = vrot.slane %v4626_v33, %v4691_v59 }
 0x6fa   :  { %v4694_v9 = vsel %vm4693_vm14, %v4692_v48, %v4687_v17 }
 0x703   :  { %v4566_v23 = vpop.permute.xlu0 %4565 }
 0x704   :  { %v4583_v5 = vrot.slane %v4566_v23, %v7787_v13 }
 0x706   :  { %v4584_v28 = vsel %vm7791_vm6, %v4583_v5, %v4579_v26 }
 0x707   :  { %v4650_v45 = vpop.permute.xlu0 %4649  ;;  %v4585_v60 = vsel %vm1918_vm13, %v4584_v28, %v4575_v31 }
 0x708   :  { %v4732_v53 = vrot.slane %v4650_v45, %v4691_v59  ;;  %v4737_v58 = vsel %vm4736_vm15, %v7262_v50, %v4585_v60 }
 0x70a   :  { %v4733_v15 = vsel %vm4693_vm14, %v4732_v53, %v4728_v34 }
 0x70b   :  { %v4734_v25 = vsel %vm1918_vm13, %v4733_v15, %v4694_v9 }
 0x70c   :  { %v4739_v24 = vsel %vm4738_vm1, %v4737_v58, %v4734_v25 }
 0x70d   :  { %v4741_v61 = vsel %vm4740_vm2, %v4739_v24, 0.0 }
 0x70e   :  { %4742 = vst [vmem:[#allocation5] sm:$0x3] %v4741_v61 }
 0x70f   :  { %4863 = shalt.err (!%p4860_p12)
}
 0x710   :  { %s4864_s25 = scalar_lea.hbm %s7314_s1, 32 }
 0x711   :  { %p4865_p13 = scmp.ne.s32.totalorder %s7314_s1, %s4864_s25  ;;  %p4868_p0 = scmp.lt.u32.totalorder %s4864_s25, %s7314_s1 }
 0x713   :  { %p4870_p1 = pnand %p4868_p0, %p4865_p13 }
 0x715   :  { %4873 = shalt.err (!%p4870_p1)
}
 0x716   :  { %4752 = dma.vmem_to_hbm [thread:$0]  %s4750_s21, 32, %s7314_s1, [#allocation4]  }
 0x717   :  { %4876 = dma.done.wait [#allocation4], 32  }
 0x718   :  { %4877 = vsyncadd [#allocation4], 4294967264 }
 0x719   :  { %4756 = vsyncpa [#allocation3], 1 }
 0x71a   :  { %4757 = vsyncpa [#allocation4], 1 }

</bundles_post_ra>
